<compile_context>
chip_gen: v7x
topology: tpu7x:2x2x1
jax: 0.10.0
libtpu: 0.0.40
codegen_flags: <defaults>
</compile_context>

<pallas_src>
import functools
import math

import jax
import jax.numpy as jnp
from jax.experimental import pallas as pl
from jax.experimental.pallas import tpu as pltpu


def _pos_embed_kernel(nm_ref, fused_ref, invt_ref, phase_ref, out_ref, *,
                      num_pos_feats, normalize, scale, offset):
    """One grid step == one batch tile, all data in (channels, H*W) layout.

    nm_ref:    (Bt, 1, HW) bf16  flattened not_mask (1.0 == valid position)
    fused_ref: (HW, K)     bf16  [cum_y | cum_x | same_col | same_row] 0/1 matrix
                                 (K = 4*HW if normalize else 2*HW)
    invt_ref:  (1, 2F, HW) f32   1/dim_t, pre-broadcast over lanes, tiled [y; x]
    phase_ref: (1, 2F, HW) f32   0 / pi/2 phase (cos = sin(+pi/2)), tiled [y; x]
    out_ref:   (Bt, 2F, HW) f32  channel-major output block (lane-dense store)
    """
    F = num_pos_feats
    Bt, _, HW = out_ref.shape

    nm = nm_ref[:, 0, :]                                                   # (Bt, HW) bf16

    # One MXU dot yields both cumulative sums and (if normalizing) both per-position
    # denominators.  bf16 x bf16 with f32 accumulation is exact for 0/1 counts.
    res = jnp.dot(nm, fused_ref[...], preferred_element_type=jnp.float32)  # (Bt, K) f32

    y_cum = res[:, 0:HW]
    x_cum = res[:, HW:2 * HW]

    if normalize:
        eps = 1e-6
        den_y = res[:, 2 * HW:3 * HW]            # column totals broadcast per position
        den_x = res[:, 3 * HW:4 * HW]            # row totals broadcast per position
        if offset != 0.0:
            y_cum = y_cum + offset
            x_cum = x_cum + offset
        y_emb = y_cum * (scale / (den_y + eps))
        x_emb = x_cum * (scale / (den_x + eps))
    else:
        y_emb = y_cum
        x_emb = x_cum

    # channel 2k   -> sin(pos / t_k)
    # channel 2k+1 -> cos(pos / t_k) == sin(pos / t_k + pi/2)   (dim_t pairs are equal)
    # Single (Bt, 2F, HW) argument -> one sin, one contiguous unmasked store stream.
    emb = jnp.concatenate(
        [jnp.broadcast_to(y_emb[:, None, :], (Bt, F, HW)),
         jnp.broadcast_to(x_emb[:, None, :], (Bt, F, HW))], axis=1)        # (Bt, 2F, HW)
    out_ref[...] = jnp.sin(emb * invt_ref[...] + phase_ref[...])


def _resident_spec(shape):
    """BlockSpec for a grid-invariant input; single-buffered when supported."""
    index_map = lambda b: (0,) * len(shape)
    if hasattr(pl, "Buffered"):
        try:
            return pl.BlockSpec(shape, index_map, pipeline_mode=pl.Buffered(1))
        except TypeError:           # older BlockSpec without pipeline_mode kwarg
            pass
    return pl.BlockSpec(shape, index_map)


def position_embedding_sine(mask, *, num_pos_feats=16, temperature=10000,
                            normalize=True, scale=None, offset=0.0,
                            batch_tile=None):
    """JAX/Pallas equivalent of PositionEmbeddingSine.forward.

    mask: bool array [B, H, W]; True (non-zero) == ignored position.
    returns: float32 array [B, 2*num_pos_feats, H, W] (NCHW, like the PyTorch module).

    batch_tile: batch elements per grid step.  Default = B (single grid step -> best on
    the single-TC v5e/v6e).  On v7x set batch_tile = ceil(B/2) so the parallel batch
    axis shards across both TensorCores.
    """
    if scale is not None and not normalize:
        raise ValueError("normalize should be True if scale is passed")
    if scale is None:
        scale = 2 * math.pi

    B, H, W = mask.shape
    F = num_pos_feats
    HW = H * W

    if batch_tile is None:
        batch_tile = B
    assert B % batch_tile == 0, "batch_tile must divide the batch size"
    num_steps = B // batch_tile

    # flattened not_mask, (B, 1, HW) bf16 (exact 0/1) so block trailing dims are (1, HW)
    not_mask = jnp.logical_not(mask).reshape(B, 1, HW).astype(jnp.bfloat16)

    # ---- grid-invariant constants (built once, resident across the grid) ----
    q = jnp.arange(HW, dtype=jnp.int32)
    qh, qw = q // W, q % W
    same_col = qw[:, None] == qw[None, :]                                   # (HW, HW)
    same_row = qh[:, None] == qh[None, :]                                   # (HW, HW)
    cum_y = same_col & (qh[:, None] <= qh[None, :])                         # cumsum over H
    cum_x = same_row & (qw[:, None] <= qw[None, :])                         # cumsum over W
    blocks = [cum_y, cum_x]
    if normalize:
        blocks += [same_col, same_row]          # per-position column / row totals
    fused = jnp.concatenate(blocks, axis=1).astype(jnp.bfloat16)            # (HW, K)
    K = fused.shape[1]

    dt = jnp.arange(F, dtype=jnp.float32)
    dim_t = temperature ** (2.0 * jnp.floor(dt / 2.0) / F)
    inv_dim_t = (1.0 / dim_t).astype(jnp.float32)                           # multiply, don't divide
    ph = ((dt % 2.0) * (math.pi / 2.0)).astype(jnp.float32)
    inv_row = jnp.concatenate([inv_dim_t, inv_dim_t])                       # (2F,) [y | x]
    ph_row = jnp.concatenate([ph, ph])                                      # (2F,)
    inv_full = jnp.broadcast_to(inv_row[None, :, None], (1, 2 * F, HW)).astype(jnp.float32)
    ph_full = jnp.broadcast_to(ph_row[None, :, None], (1, 2 * F, HW)).astype(jnp.float32)

    kernel = functools.partial(
        _pos_embed_kernel,
        num_pos_feats=F, normalize=normalize, scale=float(scale), offset=float(offset))

    extra_kwargs = {}
    if hasattr(pl, "CostEstimate"):
        extra_kwargs["cost_estimate"] = pl.CostEstimate(
            flops=2 * B * HW * K + 6 * B * 2 * F * HW,
            transcendentals=B * 2 * F * HW,
            bytes_accessed=(int(fused.size) * 2 + int(inv_full.size) * 4
                            + int(ph_full.size) * 4 + int(not_mask.size) * 2
                            + B * 2 * F * HW * 4),
        )

    pos_flat = pl.pallas_call(
        kernel,
        out_shape=jax.ShapeDtypeStruct((B, 2 * F, HW), jnp.float32),
        grid=(num_steps,),
        in_specs=[
            pl.BlockSpec((batch_tile, 1, HW), lambda b: (b, 0, 0)),   # not_mask (per step)
            _resident_spec((HW, K)),                                  # fused 0/1 matrix
            _resident_spec((1, 2 * F, HW)),                           # 1/dim_t slab
            _resident_spec((1, 2 * F, HW)),                           # phase slab
        ],
        out_specs=pl.BlockSpec((batch_tile, 2 * F, HW), lambda b: (b, 0, 0)),
        compiler_params=pltpu.CompilerParams(dimension_semantics=("parallel",)),
        **extra_kwargs,
    )(not_mask, fused, inv_full, ph_full)

    # channel-major (B, 2F, H*W) -> (B, 2F, H, W): contiguous reshape, no transpose.
    return pos_flat.reshape(B, 2 * F, H, W)


def _reference(mask, *, num_pos_feats, temperature, normalize, scale, offset):
    """Pure-JAX reference (mirrors the PyTorch forward exactly)."""
    if scale is None:
        scale = 2 * math.pi
    not_mask = jnp.logical_not(mask).astype(jnp.float32)
    y_embed = jnp.cumsum(not_mask, axis=1)
    x_embed = jnp.cumsum(not_mask, axis=2)
    if normalize:
        eps = 1e-6
        y_embed = (y_embed + offset) / (y_embed[:, -1:, :] + eps) * scale
        x_embed = (x_embed + offset) / (x_embed[:, :, -1:] + eps) * scale
    dt = jnp.arange(num_pos_feats, dtype=jnp.float32)
    dim_t = temperature ** (2.0 * jnp.floor(dt / 2.0) / num_pos_feats)
    pos_x = x_embed[:, :, :, None] / dim_t
    pos_y = y_embed[:, :, :, None] / dim_t
    B, H, W = mask.shape
    pos_x = jnp.stack((jnp.sin(pos_x[..., 0::2]), jnp.cos(pos_x[..., 1::2])),
                      axis=4).reshape(B, H, W, -1)
    pos_y = jnp.stack((jnp.sin(pos_y[..., 0::2]), jnp.cos(pos_y[..., 1::2])),
                      axis=4).reshape(B, H, W, -1)
    pos = jnp.concatenate((pos_y, pos_x), axis=3)
    return jnp.transpose(pos, (0, 3, 1, 2))


if __name__ == "__main__":
    key = jax.random.PRNGKey(0)
    B, H, W = 2, 16, 16
    NUM_POS_FEATS = 16  # output channels = 2 * 16 = 32

    # ByteTensor-like mask: True (non-zero) == ignored position.
    mask = jax.random.bernoulli(key, 0.3, (B, H, W))

    out = position_embedding_sine(
        mask, num_pos_feats=NUM_POS_FEATS, temperature=10000,
        normalize=True, scale=None, offset=0.0)
    out = jax.block_until_ready(out)

    ref = _reference(mask, num_pos_feats=NUM_POS_FEATS, temperature=10000,
                     normalize=True, scale=None, offset=0.0)

    assert out.shape == (B, 2 * NUM_POS_FEATS, H, W), out.shape
    max_err = float(jnp.max(jnp.abs(out - ref)))
    assert jnp.allclose(out, ref, rtol=1e-5, atol=2e-5), \
        f"mismatch vs reference, max abs err = {max_err}"
    print("KERNEL_OK")
</pallas_src>

<mosaic_0001>
module attributes {stable_mosaic.version = 11 : i64} {
  func.func @_pos_embed_kernel(%arg0: i32, %arg1: memref<2x1x256xbf16, #tpu.memory_space<vmem>>, %arg2: memref<256x1024xbf16, #tpu.memory_space<vmem>>, %arg3: memref<1x32x256xf32, #tpu.memory_space<vmem>>, %arg4: memref<1x32x256xf32, #tpu.memory_space<vmem>>, %arg5: memref<2x32x256xf32, #tpu.memory_space<vmem>>) attributes {dimension_semantics = [#tpu.dimension_semantics<parallel>], iteration_bounds = array<i64: 1>, scalar_prefetch = 0 : i64, scratch_operands = 0 : i64, tpu.core_type = #tpu.core_type<tc>, window_params = [{transform_indices = @transform_0, window_bounds = array<i64: 2, 1, 256>}, {pipeline_mode = #tpu.pipeline_mode<synchronous>, transform_indices = @transform_1, window_bounds = array<i64: 256, 1024>}, {pipeline_mode = #tpu.pipeline_mode<synchronous>, transform_indices = @transform_2, window_bounds = array<i64: 1, 32, 256>}, {pipeline_mode = #tpu.pipeline_mode<synchronous>, transform_indices = @transform_3, window_bounds = array<i64: 1, 32, 256>}, {transform_indices = @transform_4, window_bounds = array<i64: 2, 32, 256>}]} {
    %c0 = arith.constant 0 : index
    %c0_0 = arith.constant 0 : index
    %c0_1 = arith.constant 0 : index
    %0 = vector.load %arg1[%c0, %c0_0, %c0_1] : memref<2x1x256xbf16, #tpu.memory_space<vmem>>, vector<2x1x256xbf16>
    %1 = vector.shape_cast %0 : vector<2x1x256xbf16> to vector<2x256xbf16>
    %c0_2 = arith.constant 0 : index
    %c0_3 = arith.constant 0 : index
    %2 = vector.load %arg2[%c0_2, %c0_3] : memref<256x1024xbf16, #tpu.memory_space<vmem>>, vector<256x1024xbf16>
    %cst = arith.constant dense<0.000000e+00> : vector<2x1024xf32>
    %3 = tpu.matmul %1, %2, %cst {dimension_numbers = #tpu.dot_dimension_numbers<[1], [0], [0], [1], [0, 0, 1, 1], [], []>} : vector<2x256xbf16>, vector<256x1024xbf16>, vector<2x1024xf32> -> vector<2x1024xf32>
    %4 = vector.extract_strided_slice %3 {offsets = [0, 0], sizes = [2, 256], strides = [1, 1]} : vector<2x1024xf32> to vector<2x256xf32>
    %5 = vector.extract_strided_slice %3 {offsets = [0, 256], sizes = [2, 256], strides = [1, 1]} : vector<2x1024xf32> to vector<2x256xf32>
    %6 = vector.extract_strided_slice %3 {offsets = [0, 512], sizes = [2, 256], strides = [1, 1]} : vector<2x1024xf32> to vector<2x256xf32>
    %7 = vector.extract_strided_slice %3 {offsets = [0, 768], sizes = [2, 256], strides = [1, 1]} : vector<2x1024xf32> to vector<2x256xf32>
    %cst_4 = arith.constant 9.99999997E-7 : f32
    %8 = vector.broadcast %cst_4 : f32 to vector<2x256xf32>
    %9 = arith.addf %6, %8 : vector<2x256xf32>
    %cst_5 = arith.constant 6.28318548 : f32
    %10 = vector.broadcast %cst_5 : f32 to vector<2x256xf32>
    %11 = arith.divf %10, %9 : vector<2x256xf32>
    %12 = arith.mulf %4, %11 : vector<2x256xf32>
    %cst_6 = arith.constant 9.99999997E-7 : f32
    %13 = vector.broadcast %cst_6 : f32 to vector<2x256xf32>
    %14 = arith.addf %7, %13 : vector<2x256xf32>
    %cst_7 = arith.constant 6.28318548 : f32
    %15 = vector.broadcast %cst_7 : f32 to vector<2x256xf32>
    %16 = arith.divf %15, %14 : vector<2x256xf32>
    %17 = arith.mulf %5, %16 : vector<2x256xf32>
    %18 = vector.shape_cast %12 : vector<2x256xf32> to vector<2x1x256xf32>
    %19 = vector.shape_cast %18 : vector<2x1x256xf32> to vector<2x1x256xf32>
    %20 = vector.broadcast %19 : vector<2x1x256xf32> to vector<2x16x256xf32>
    %21 = vector.shape_cast %17 : vector<2x256xf32> to vector<2x1x256xf32>
    %22 = vector.shape_cast %21 : vector<2x1x256xf32> to vector<2x1x256xf32>
    %23 = vector.broadcast %22 : vector<2x1x256xf32> to vector<2x16x256xf32>
    %24 = tpu.concatenate %20, %23 in 1 : vector<2x16x256xf32>, vector<2x16x256xf32> -> vector<2x32x256xf32>
    %c0_8 = arith.constant 0 : index
    %c0_9 = arith.constant 0 : index
    %c0_10 = arith.constant 0 : index
    %25 = vector.load %arg3[%c0_8, %c0_9, %c0_10] : memref<1x32x256xf32, #tpu.memory_space<vmem>>, vector<1x32x256xf32>
    %26 = vector.broadcast %25 : vector<1x32x256xf32> to vector<2x32x256xf32>
    %27 = arith.mulf %24, %26 : vector<2x32x256xf32>
    %c0_11 = arith.constant 0 : index
    %c0_12 = arith.constant 0 : index
    %c0_13 = arith.constant 0 : index
    %28 = vector.load %arg4[%c0_11, %c0_12, %c0_13] : memref<1x32x256xf32, #tpu.memory_space<vmem>>, vector<1x32x256xf32>
    %29 = vector.broadcast %28 : vector<1x32x256xf32> to vector<2x32x256xf32>
    %30 = arith.addf %27, %29 : vector<2x32x256xf32>
    %31 = math.sin %30 : vector<2x32x256xf32>
    %c0_14 = arith.constant 0 : index
    %c0_15 = arith.constant 0 : index
    %c0_16 = arith.constant 0 : index
    %32 = vector.load %arg5[%c0_14, %c0_15, %c0_16] : memref<2x32x256xf32, #tpu.memory_space<vmem>>, vector<2x32x256xf32>
    tpu.vector_store %arg5[%c0_14, %c0_15, %c0_16], %31 {strides = array<i32>} : memref<2x32x256xf32, #tpu.memory_space<vmem>>, vector<2x32x256xf32>,
    return
  }
  func.func @transform_0(%arg0: i32) -> (i32, i32, i32) {
    %c0_i32 = arith.constant 0 : i32
    %c0_i32_0 = arith.constant 0 : i32
    %c0_i32_1 = arith.constant 0 : i32
    return %arg0, %c0_i32, %c0_i32_0 : i32, i32, i32
  }
  func.func @transform_1(%arg0: i32) -> (i32, i32) {
    %c0_i32 = arith.constant 0 : i32
    %c0_i32_0 = arith.constant 0 : i32
    %c0_i32_1 = arith.constant 0 : i32
    return %c0_i32, %c0_i32_0 : i32, i32
  }
  func.func @transform_2(%arg0: i32) -> (i32, i32, i32) {
    %c0_i32 = arith.constant 0 : i32
    %c0_i32_0 = arith.constant 0 : i32
    %c0_i32_1 = arith.constant 0 : i32
    %c0_i32_2 = arith.constant 0 : i32
    return %c0_i32, %c0_i32_0, %c0_i32_1 : i32, i32, i32
  }
  func.func @transform_3(%arg0: i32) -> (i32, i32, i32) {
    %c0_i32 = arith.constant 0 : i32
    %c0_i32_0 = arith.constant 0 : i32
    %c0_i32_1 = arith.constant 0 : i32
    %c0_i32_2 = arith.constant 0 : i32
    return %c0_i32, %c0_i32_0, %c0_i32_1 : i32, i32, i32
  }
  func.func @transform_4(%arg0: i32) -> (i32, i32, i32) {
    %c0_i32 = arith.constant 0 : i32
    %c0_i32_0 = arith.constant 0 : i32
    %c0_i32_1 = arith.constant 0 : i32
    return %arg0, %c0_i32, %c0_i32_0 : i32, i32, i32
  }
}

</mosaic_0001>

<bundles_post_ra>
// kernel: tpu_custom_call.1
= control target key start
LH: loop header
LB: loop body
LE: loop exit
PB: predicated region body
PF: predicated region fallthrough
CT: control target
= control target key end

     0   :  { %9 = vsyncpa [#allocation3], 0  ;;  %s4756_s0 = inlined_call_operand.vmem [shape: bf16[2,1,256], index: 0, kind: input, shape index: {}]   ;;  %s4757_s1 = inlined_call_operand.hbm [shape: bf16[256,1024], index: 1, kind: input, shape index: {}]   ;;  %s4758_s2 = inlined_call_operand.hbm [shape: f32[1,32,256], index: 2, kind: input, shape index: {}]   ;;  %s4759_s3 = inlined_call_operand.hbm [shape: f32[1,32,256], index: 3, kind: input, shape index: {}]   ;;  %s4760_s4 = inlined_call_operand.hbm [shape: f32[2,32,256], index: 4, kind: output, shape index: {}]  }
   0x1   :  { %10 = vsyncpa [#allocation6], 0 }
   0x2   :  { %11 = vsyncpa [#allocation4], 0  ;;  %s3343_s15 = smov [#allocation5]   ;;  %s3249_s19 = scalar_lea.hbm %s4758_s2, 1024 }
   0x3   :  { %s31_s16 = sshll.u32 %s3343_s15, 4  ;;  %p3250_p0 = scmp.ne.s32.totalorder %s4758_s2, %s3249_s19  ;;  %s32_s16 = int_to_ptr.vmem [resolvable:$true] %s31_s16 }
   0x4   :  { %p3253_p1 = scmp.lt.u32.totalorder %s3249_s19, %s4758_s2 }
   0x6   :  { %p3255_p2 = pnand %p3253_p1, %p3250_p0 }
   0x8   :  { %3258 = shalt.err (!%p3255_p2)
}
   0x9   :  { %s3259_s24 = scalar_lea.vmem %s32_s16, 1024  ;;  %p3264_p4 = scmp.lt.s32.totalorder %s32_s16, %s32_s16 }
   0xa   :  { %p3260_p3 = scmp.ne.s32.totalorder %s32_s16, %s3259_s24  ;;  %p3265_p5 = scmp.lt.s32.totalorder %s3259_s24, %s3259_s24 }
   0xc   :  { %p3266_p6 = por %p3265_p5, %p3264_p4 }
   0xe   :  { %p3267_p7 = pnand %p3266_p6, %p3260_p3 }
  0x10   :  { %3270 = shalt.err (!%p3267_p7)
}
  0x11   :  { %s3344_s25 = smov 256   ;;  %s3345_s26 = smov 16  }
  0x12   :  { %37 = dma.hbm_to_vmem [thread:$0]  %s4758_s2, 1024, %s32_s16, [#allocation6], %s3344_s25, %s3344_s25, %s3345_s26  }
  0x13   :  { %s3346_s29 = smov [#allocation2]   ;;  %s3271_s7 = scalar_lea.hbm %s4757_s1, 16384 }
  0x14   :  { %s19_s30 = sshll.u32 %s3346_s29, 4  ;;  %p3272_p8 = scmp.ne.s32.totalorder %s4757_s1, %s3271_s7  ;;  %s20_s30 = int_to_ptr.vmem [resolvable:$true] %s19_s30 }
  0x15   :  { %p3275_p9 = scmp.lt.u32.totalorder %s3271_s7, %s4757_s1 }
  0x17   :  { %p3277_p10 = pnand %p3275_p9, %p3272_p8 }
  0x19   :  { %3280 = shalt.err (!%p3277_p10)
}
  0x1a   :  { %s3281_s12 = scalar_lea.vmem %s20_s30, 16384  ;;  %p3286_p12 = scmp.lt.s32.totalorder %s20_s30, %s20_s30 }
  0x1b   :  { %p3282_p11 = scmp.ne.s32.totalorder %s20_s30, %s3281_s12  ;;  %p3287_p13 = scmp.lt.s32.totalorder %s3281_s12, %s3281_s12 }
  0x1d   :  { %p3288_p0 = por %p3287_p13, %p3286_p12 }
  0x1f   :  { %p3289_p1 = pnand %p3288_p0, %p3282_p11 }
  0x21   :  { %3292 = shalt.err (!%p3289_p1)
}
  0x22   :  { %s3347_s2 = smov 512   ;;  %s3348_s13 = smov 32  }
  0x23   :  { %25 = dma.hbm_to_vmem [thread:$0]  %s4757_s1, 16384, %s20_s30, [#allocation3], %s3347_s2, %s3347_s2, %s3348_s13  }
  0x24   :  { %s3349_s16 = smov [#allocation7]   ;;  %s3293_s20 = scalar_lea.hbm %s4759_s3, 1024 }
  0x25   :  { %s43_s17 = sshll.u32 %s3349_s16, 4  ;;  %p3294_p2 = scmp.ne.s32.totalorder %s4759_s3, %s3293_s20  ;;  %s44_s17 = int_to_ptr.vmem [resolvable:$true] %s43_s17 }
  0x26   :  { %p3297_p3 = scmp.lt.u32.totalorder %s3293_s20, %s4759_s3 }
  0x28   :  { %p3299_p4 = pnand %p3297_p3, %p3294_p2 }
  0x2a   :  { %3302 = shalt.err (!%p3299_p4)
}
  0x2b   :  { %s3303_s27 = scalar_lea.vmem %s44_s17, 1024  ;;  %p3308_p6 = scmp.lt.s32.totalorder %s44_s17, %s44_s17 }
  0x2c   :  { %p3304_p5 = scmp.ne.s32.totalorder %s44_s17, %s3303_s27  ;;  %p3309_p7 = scmp.lt.s32.totalorder %s3303_s27, %s3303_s27 }
  0x2e   :  { %p3310_p8 = por %p3309_p7, %p3308_p6 }
  0x30   :  { %p3311_p9 = pnand %p3310_p8, %p3304_p5 }
  0x32   :  { %3314 = shalt.err (!%p3311_p9)
}
  0x33   :  { %49 = dma.hbm_to_vmem [thread:$0]  %s4759_s3, 1024, %s44_s17, [#allocation6], %s3344_s25, %s3344_s25, %s3345_s26  }
  0x34   :  { %3337 = dma.done.wait [#allocation3], 16384  }
  0x35   :  { %3338 = vsyncadd [#allocation3], 4294950912 }
  0x36   :  { %3339 = dma.done.wait [#allocation6], 2048  }
  0x37   :  { %3340 = vsyncadd [#allocation6], 4294965248  ;;  %v61_v0 = vld [vmem:[#allocation2] sm:$0xff]  ;;  %v62_v2 = vld [vmem:[#allocation2 + $0x8] sm:$0xff]  ;;  %v3350_v37 = vmov 1966171168   ;;  %v202_v39 = vlaneseq }
  0x38   :  { %v65_v1 = vld [vmem:[#allocation2 + $0x20] sm:$0xff]  ;;  %v66_v4 = vld [vmem:[#allocation2 + $0x28] sm:$0xff]  ;;  %v200_v38 = vunpack.c.l.s4 %v3350_v37  ;;  %v3430_v58 = vld.sshfl [vmem:[%s4756_s0] sm:$0x11 pattern:$0x75316420] }
  0x39   :  { %v2907_v3 = vcombine.high %v61_v0, %v65_v1  ;;  %v2906_v5 = vcombine.low %v61_v0, %v65_v1  ;;  %v69_v6 = vld [vmem:[#allocation2 + $0x40] sm:$0xff]  ;;  %v2909_v8 = vcombine.high %v62_v2, %v66_v4  ;;  %v2908_v9 = vcombine.low %v62_v2, %v66_v4  ;;  %v70_v11 = vld [vmem:[#allocation2 + $0x48] sm:$0xff]  ;;  %v3438_v63 = vld.sshfl [vmem:[%s4756_s0 + $0x2] sm:$0x11 pattern:$0x75316420] }
  0x3a   :  { %v73_v7 = vld [vmem:[#allocation2 + $0x60] sm:$0xff]  ;;  %v74_v12 = vld [vmem:[#allocation2 + $0x68] sm:$0xff]  ;;  %v201_v48 = vunpack.c.0.s8 %v200_v38  ;;  %v3425_v49 = vshrl.u32 %v202_v39, 7  ;;  %v198_v0 = vcombine.high %v3430_v58, %v3430_v58  ;;  %vm240_vm0 = vcmask 1041409   ;;  %s3357_s0 = smov [#allocation8]  }
  0x3b   :  { %v2915_v10 = vcombine.high %v69_v6, %v73_v7  ;;  %v77_v13 = vld [vmem:[#allocation2 + $0x80] sm:$0xff]  ;;  %888 = vmatprep.subr.bf16.mxu0 %v2907_v3  ;;  %v2917_v14 = vcombine.high %v70_v11, %v74_v12  ;;  %v78_v16 = vld [vmem:[#allocation2 + $0x88] sm:$0xff]  ;;  %929 = vmatprep.subr.bf16.mxu1 %v2909_v8  ;;  %v2914_v18 = vcombine.low %v69_v6, %v73_v7  ;;  %s2891_s6 = sshll.u32 %s3357_s0, 4  ;;  %s2892_s6 = int_to_ptr.vmem [resolvable:$true] %s2891_s6 }
  0x3c   :  { %v81_v15 = vld [vmem:[#allocation2 + $0xa0] sm:$0xff]  ;;  %v82_v17 = vld [vmem:[#allocation2 + $0xa8] sm:$0xff]  ;;  %889 = vmatpush1.bf16.msra.mxu0 %v2906_v5  ;;  %930 = vmatpush1.bf16.msra.mxu1 %v2908_v9  ;;  %v2916_v19 = vcombine.low %v70_v11, %v74_v12  ;;  %v3433_v59 = vsub.s32 %v201_v48, %v3425_v49  ;;  %v220_v3 = vcombine.high %v3438_v63, %v3438_v63  ;;  %s3315_s7 = scalar_lea.vmem %s2892_s6, 2048  ;;  %p3320_p11 = scmp.lt.s32.totalorder %s2892_s6, %s2892_s6 }
  0x3d   :  { %890 = vmatprep.subr.bf16.mxu0 %v2915_v10  ;;  %v2923_v20 = vcombine.high %v77_v13, %v81_v15  ;;  %931 = vmatprep.subr.bf16.mxu1 %v2917_v14  ;;  %v2925_v21 = vcombine.high %v78_v16, %v82_v17  ;;  %v85_v22 = vld [vmem:[#allocation2 + $0xc0] sm:$0xff]  ;;  %v86_v24 = vld [vmem:[#allocation2 + $0xc8] sm:$0xff]  ;;  %v2922_v26 = vcombine.low %v77_v13, %v81_v15  ;;  %p3316_p10 = scmp.ne.s32.totalorder %s2892_s6, %s3315_s7  ;;  %p3321_p12 = scmp.lt.s32.totalorder %s3315_s7, %s3315_s7 }
  0x3e   :  { %v89_v23 = vld [vmem:[#allocation2 + $0xe0] sm:$0xff]  ;;  %v90_v25 = vld [vmem:[#allocation2 + $0xe8] sm:$0xff]  ;;  %v2924_v27 = vcombine.low %v78_v16, %v82_v17  ;;  %v212_v5 = vrot.slane %v198_v0, %v3433_v59  ;;  %v234_v8 = vrot.slane %v220_v3, %v3433_v59  ;;  %v227_v0 = vrot.slane %v3438_v63, %v3433_v59 }
  0x3f   :  { %v2931_v28 = vcombine.high %v85_v22, %v89_v23  ;;  %v2933_v29 = vcombine.high %v86_v24, %v90_v25  ;;  %v93_v30 = vld [vmem:[#allocation2 + $0x100] sm:$0xff]  ;;  %v94_v32 = vld [vmem:[#allocation2 + $0x108] sm:$0xff]  ;;  %v2930_v34 = vcombine.low %v85_v22, %v89_v23  ;;  %v2932_v35 = vcombine.low %v86_v24, %v90_v25  ;;  %p3322_p13 = por %p3321_p12, %p3320_p11 }
  0x40   :  { %891 = vmatpush1.bf16.msra.mxu0 %v2914_v18  ;;  %932 = vmatpush1.bf16.msra.mxu1 %v2916_v19  ;;  %v97_v31 = vld [vmem:[#allocation2 + $0x120] sm:$0xff]  ;;  %v98_v33 = vld [vmem:[#allocation2 + $0x128] sm:$0xff]  ;;  %v236_v14 = vunpack.c.l.b16 %v212_v5  ;;  %v238_v15 = vunpack.c.l.b16 %v234_v8 }
  0x41   :  { %892 = vmatprep.subr.bf16.mxu0 %v2923_v20  ;;  %933 = vmatprep.subr.bf16.mxu1 %v2925_v21  ;;  %v2939_v36 = vcombine.high %v93_v30, %v97_v31  ;;  %v2941_v40 = vcombine.high %v94_v32, %v98_v33  ;;  %v101_v41 = vld [vmem:[#allocation2 + $0x140] sm:$0xff]  ;;  %v102_v43 = vld [vmem:[#allocation2 + $0x148] sm:$0xff]  ;;  %v2938_v45 = vcombine.low %v93_v30, %v97_v31  ;;  %p3323_p0 = pnand %p3322_p13, %p3316_p10 }
  0x42   :  { %v105_v42 = vld [vmem:[#allocation2 + $0x160] sm:$0xff]  ;;  %v106_v44 = vld [vmem:[#allocation2 + $0x168] sm:$0xff]  ;;  %v2940_v46 = vcombine.low %v94_v32, %v98_v33  ;;  %v242_v19 = vrot.slane %v238_v15, 7 }
  0x43   :  { %v2947_v47 = vcombine.high %v101_v41, %v105_v42  ;;  %v2949_v50 = vcombine.high %v102_v43, %v106_v44  ;;  %v109_v51 = vld [vmem:[#allocation2 + $0x180] sm:$0xff]  ;;  %v110_v53 = vld [vmem:[#allocation2 + $0x188] sm:$0xff]  ;;  %v2946_v55 = vcombine.low %v101_v41, %v105_v42  ;;  %v2948_v56 = vcombine.low %v102_v43, %v106_v44 }
  0x44   :  { %893 = vmatpush1.bf16.msra.mxu0 %v2922_v26  ;;  %934 = vmatpush1.bf16.msra.mxu1 %v2924_v27  ;;  %v113_v52 = vld [vmem:[#allocation2 + $0x1a0] sm:$0xff]  ;;  %v114_v54 = vld [vmem:[#allocation2 + $0x1a8] sm:$0xff]  ;;  %v243_v25 = vsel %vm240_vm0, %v242_v19, %v236_v14 }
  0x45   :  { %894 = vmatprep.subr.bf16.mxu0 %v2931_v28  ;;  %935 = vmatprep.subr.bf16.mxu1 %v2933_v29  ;;  %v2955_v57 = vcombine.high %v109_v51, %v113_v52  ;;  %v2957_v60 = vcombine.high %v110_v53, %v114_v54  ;;  %v117_v61 = vld [vmem:[#allocation2 + $0x1c0] sm:$0xff]  ;;  %v118_v1 = vld [vmem:[#allocation2 + $0x1c8] sm:$0xff]  ;;  %v2954_v4 = vcombine.low %v109_v51, %v113_v52 }
  0x46   :  { %v121_v62 = vld [vmem:[#allocation2 + $0x1e0] sm:$0xff]  ;;  %v122_v2 = vld [vmem:[#allocation2 + $0x1e8] sm:$0xff]  ;;  %v2956_v6 = vcombine.low %v110_v53, %v114_v54  ;;  %v3447_v27 = vpack.c.b16 %v243_v25, %v243_v25  ;;  %v68_v25 = vld [vmem:[#allocation2 + $0x38] sm:$0xff] }
  0x47   :  { %v2963_v7 = vcombine.high %v117_v61, %v121_v62  ;;  %v2965_v9 = vcombine.high %v118_v1, %v122_v2  ;;  %v125_v10 = vld [vmem:[#allocation2 + $0x200] sm:$0xff]  ;;  %v126_v12 = vld [vmem:[#allocation2 + $0x208] sm:$0xff]  ;;  %v2962_v16 = vcombine.low %v117_v61, %v121_v62  ;;  %v2964_v17 = vcombine.low %v118_v1, %v122_v2 }
  0x48   :  { %895 = vmatpush1.bf16.msra.mxu0 %v2930_v34  ;;  %936 = vmatpush1.bf16.msra.mxu1 %v2932_v35  ;;  %v129_v11 = vld [vmem:[#allocation2 + $0x220] sm:$0xff]  ;;  %v130_v13 = vld [vmem:[#allocation2 + $0x228] sm:$0xff] }
  0x49   :  { %896 = vmatprep.subr.bf16.mxu0 %v2939_v36  ;;  %937 = vmatprep.subr.bf16.mxu1 %v2941_v40  ;;  %v2971_v18 = vcombine.high %v125_v10, %v129_v11  ;;  %v2973_v20 = vcombine.high %v126_v12, %v130_v13  ;;  %v133_v21 = vld [vmem:[#allocation2 + $0x240] sm:$0xff]  ;;  %v134_v23 = vld [vmem:[#allocation2 + $0x248] sm:$0xff]  ;;  %v2970_v26 = vcombine.low %v125_v10, %v129_v11  ;;  %v237_v10 = vunpack.c.l.b16 %v227_v0  ;;  %v100_v0 = vld [vmem:[#allocation2 + $0x138] sm:$0xff] }
  0x4a   :  { %v137_v22 = vld [vmem:[#allocation2 + $0x260] sm:$0xff]  ;;  %v138_v24 = vld [vmem:[#allocation2 + $0x268] sm:$0xff]  ;;  %v2972_v28 = vcombine.low %v126_v12, %v130_v13  ;;  %920 = vmatprep.mubr.bf16.mxu0 %v3447_v27  ;;  %961 = vmatprep.mubr.bf16.mxu1 %v3447_v27 }
  0x4b   :  { %v2979_v29 = vcombine.high %v133_v21, %v137_v22  ;;  %v2981_v30 = vcombine.high %v134_v23, %v138_v24  ;;  %v141_v31 = vld [vmem:[#allocation2 + $0x280] sm:$0xff]  ;;  %v142_v33 = vld [vmem:[#allocation2 + $0x288] sm:$0xff]  ;;  %v2978_v35 = vcombine.low %v133_v21, %v137_v22  ;;  %v2980_v36 = vcombine.low %v134_v23, %v138_v24  ;;  %v63_v22 = vld [vmem:[#allocation2 + $0x10] sm:$0xff] }
  0x4c   :  { %897 = vmatpush1.bf16.msra.mxu0 %v2938_v45  ;;  %938 = vmatpush1.bf16.msra.mxu1 %v2940_v46  ;;  %v145_v32 = vld [vmem:[#allocation2 + $0x2a0] sm:$0xff]  ;;  %v146_v34 = vld [vmem:[#allocation2 + $0x2a8] sm:$0xff]  ;;  %v239_v19 = vrot.slane %v237_v10, 7  ;;  %v67_v23 = vld [vmem:[#allocation2 + $0x30] sm:$0xff] }
  0x4d   :  { %898 = vmatprep.subr.bf16.mxu0 %v2947_v47  ;;  %939 = vmatprep.subr.bf16.mxu1 %v2949_v50  ;;  %v2987_v37 = vcombine.high %v141_v31, %v145_v32  ;;  %v2989_v38 = vcombine.high %v142_v33, %v146_v34  ;;  %v149_v39 = vld [vmem:[#allocation2 + $0x2c0] sm:$0xff]  ;;  %v150_v41 = vld [vmem:[#allocation2 + $0x2c8] sm:$0xff]  ;;  %v2986_v43 = vcombine.low %v141_v31, %v145_v32  ;;  %v64_v24 = vld [vmem:[#allocation2 + $0x18] sm:$0xff] }
  0x4e   :  { %v153_v40 = vld [vmem:[#allocation2 + $0x2e0] sm:$0xff]  ;;  %v154_v42 = vld [vmem:[#allocation2 + $0x2e8] sm:$0xff]  ;;  %v2988_v44 = vcombine.low %v142_v33, %v146_v34  ;;  %v2913_v31 = vcombine.high %v64_v24, %v68_v25  ;;  %v71_v32 = vld [vmem:[#allocation2 + $0x50] sm:$0xff] }
  0x4f   :  { %v2995_v45 = vcombine.high %v149_v39, %v153_v40  ;;  %v2997_v46 = vcombine.high %v150_v41, %v154_v42  ;;  %v157_v47 = vld [vmem:[#allocation2 + $0x300] sm:$0xff]  ;;  %v158_v50 = vld [vmem:[#allocation2 + $0x308] sm:$0xff]  ;;  %v2994_v52 = vcombine.low %v149_v39, %v153_v40  ;;  %v2996_v53 = vcombine.low %v150_v41, %v154_v42  ;;  %v75_v33 = vld [vmem:[#allocation2 + $0x70] sm:$0xff] }
  0x50   :  { %899 = vmatpush1.bf16.msra.mxu0 %v2946_v55  ;;  %940 = vmatpush1.bf16.msra.mxu1 %v2948_v56  ;;  %v161_v48 = vld [vmem:[#allocation2 + $0x320] sm:$0xff]  ;;  %v162_v51 = vld [vmem:[#allocation2 + $0x328] sm:$0xff]  ;;  %v2919_v39 = vcombine.high %v71_v32, %v75_v33  ;;  %v79_v41 = vld [vmem:[#allocation2 + $0x90] sm:$0xff] }
  0x51   :  { %900 = vmatprep.subr.bf16.mxu0 %v2955_v57  ;;  %941 = vmatprep.subr.bf16.mxu1 %v2957_v60  ;;  %v3003_v54 = vcombine.high %v157_v47, %v161_v48  ;;  %v3005_v55 = vcombine.high %v158_v50, %v162_v51  ;;  %v165_v56 = vld [vmem:[#allocation2 + $0x340] sm:$0xff]  ;;  %v166_v60 = vld [vmem:[#allocation2 + $0x348] sm:$0xff]  ;;  %v3002_v62 = vcombine.low %v157_v47, %v161_v48  ;;  %v83_v42 = vld [vmem:[#allocation2 + $0xb0] sm:$0xff] }
  0x52   :  { %v169_v57 = vld [vmem:[#allocation2 + $0x360] sm:$0xff]  ;;  %v170_v61 = vld [vmem:[#allocation2 + $0x368] sm:$0xff]  ;;  %v3004_v1 = vcombine.low %v158_v50, %v162_v51  ;;  %v2927_v47 = vcombine.high %v79_v41, %v83_v42  ;;  %v87_v50 = vld [vmem:[#allocation2 + $0xd0] sm:$0xff] }
  0x53   :  { %v3011_v2 = vcombine.high %v165_v56, %v169_v57  ;;  %v3013_v3 = vcombine.high %v166_v60, %v170_v61  ;;  %v177_v5 = vld [vmem:[#allocation2 + $0x3a0] sm:$0xff]  ;;  %v3010_v8 = vcombine.low %v165_v56, %v169_v57  ;;  %v3012_v11 = vcombine.low %v166_v60, %v170_v61  ;;  %v182_v15 = vld [vmem:[#allocation2 + $0x3c8] sm:$0xff]  ;;  %v91_v51 = vld [vmem:[#allocation2 + $0xf0] sm:$0xff] }
  0x54   :  { %901 = vmatpush1.bf16.msra.mxu0 %v2954_v4  ;;  %942 = vmatpush1.bf16.msra.mxu1 %v2956_v6  ;;  %v173_v4 = vld [vmem:[#allocation2 + $0x380] sm:$0xff]  ;;  %v174_v6 = vld [vmem:[#allocation2 + $0x388] sm:$0xff]  ;;  %v2935_v56 = vcombine.high %v87_v50, %v91_v51  ;;  %v95_v60 = vld [vmem:[#allocation2 + $0x110] sm:$0xff] }
  0x55   :  { %902 = vmatprep.subr.bf16.mxu0 %v2963_v7  ;;  %943 = vmatprep.subr.bf16.mxu1 %v2965_v9  ;;  %v178_v7 = vld [vmem:[#allocation2 + $0x3a8] sm:$0xff]  ;;  %v205_v9 = vrot.slane %v3430_v58, %v3433_v59  ;;  %v3019_v63 = vcombine.high %v173_v4, %v177_v5  ;;  %v181_v13 = vld [vmem:[#allocation2 + $0x3c0] sm:$0xff]  ;;  %v99_v61 = vld [vmem:[#allocation2 + $0x130] sm:$0xff] }
  0x56   :  { %v3021_v12 = vcombine.high %v174_v6, %v178_v7  ;;  %v185_v14 = vld [vmem:[#allocation2 + $0x3e0] sm:$0xff] }
  0x57   :  { %v3027_v21 = vcombine.high %v181_v13, %v185_v14 }
  0x58   :  { %903 = vmatpush1.bf16.msra.mxu0 %v2962_v16  ;;  %944 = vmatpush1.bf16.msra.mxu1 %v2964_v17  ;;  %v186_v16 = vld [vmem:[#allocation2 + $0x3e8] sm:$0xff]  ;;  %v3018_v17 = vcombine.low %v173_v4, %v177_v5  ;;  %v103_v4 = vld [vmem:[#allocation2 + $0x150] sm:$0xff] }
  0x59   :  { %904 = vmatprep.subr.bf16.mxu0 %v2971_v18  ;;  %945 = vmatprep.subr.bf16.mxu1 %v2973_v20  ;;  %v235_v18 = vunpack.c.l.b16 %v205_v9  ;;  %v3020_v20 = vcombine.low %v174_v6, %v178_v7  ;;  %v3029_v58 = vcombine.high %v182_v15, %v186_v16  ;;  %v107_v5 = vld [vmem:[#allocation2 + $0x170] sm:$0xff]  ;;  %v104_v6 = vld [vmem:[#allocation2 + $0x158] sm:$0xff] }
  0x5a   :  { %v108_v7 = vld [vmem:[#allocation2 + $0x178] sm:$0xff]  ;;  %v2951_v10 = vcombine.high %v103_v4, %v107_v5 }
  0x5c   :  { %905 = vmatpush1.bf16.msra.mxu0 %v2970_v26  ;;  %946 = vmatpush1.bf16.msra.mxu1 %v2972_v28  ;;  %v3026_v26 = vcombine.low %v181_v13, %v185_v14  ;;  %v241_v28 = vsel %vm240_vm0, %v239_v19, %v235_v18  ;;  %v112_v13 = vld [vmem:[#allocation2 + $0x198] sm:$0xff]  ;;  %v119_v19 = vld [vmem:[#allocation2 + $0x1d0] sm:$0xff] }
  0x5d   :  { %906 = vmatprep.subr.bf16.mxu0 %v2979_v29  ;;  %947 = vmatprep.subr.bf16.mxu1 %v2981_v30  ;;  %v3028_v29 = vcombine.low %v182_v15, %v186_v16  ;;  %v2911_v30 = vcombine.high %v63_v22, %v67_v23  ;;  %v3456_v34 = vpack.c.b16 %v241_v28, %v241_v28  ;;  %v116_v14 = vld [vmem:[#allocation2 + $0x1b8] sm:$0xff]  ;;  %v131_v28 = vld [vmem:[#allocation2 + $0x230] sm:$0xff] }
  0x5e   :  { %v2950_v15 = vcombine.low %v103_v4, %v107_v5  ;;  %v2952_v16 = vcombine.low %v104_v6, %v108_v7  ;;  %v2961_v18 = vcombine.high %v112_v13, %v116_v14 }
  0x60   :  { %907 = vmatpush1.bf16.msra.mxu0 %v2978_v35  ;;  %948 = vmatpush1.bf16.msra.mxu1 %v2980_v36  ;;  %v72_v35 = vld [vmem:[#allocation2 + $0x58] sm:$0xff] }
  0x61   :  { %908 = vmatprep.subr.bf16.mxu0 %v2987_v37  ;;  %949 = vmatprep.subr.bf16.mxu1 %v2989_v38  ;;  %v76_v36 = vld [vmem:[#allocation2 + $0x78] sm:$0xff]  ;;  %v2910_v37 = vcombine.low %v63_v22, %v67_v23  ;;  %v2912_v38 = vcombine.low %v64_v24, %v68_v25  ;;  %v2960_v23 = vcombine.low %v112_v13, %v116_v14  ;;  %v175_v14 = vld [vmem:[#allocation2 + $0x390] sm:$0xff] }
  0x62   :  { %v2921_v40 = vcombine.high %v72_v35, %v76_v36 }
  0x64   :  { %909 = vmatpush1.bf16.msra.mxu0 %v2986_v43  ;;  %950 = vmatpush1.bf16.msra.mxu1 %v2988_v44  ;;  %v80_v43 = vld [vmem:[#allocation2 + $0x98] sm:$0xff] }
  0x65   :  { %910 = vmatprep.subr.bf16.mxu0 %v2995_v45  ;;  %951 = vmatprep.subr.bf16.mxu1 %v2997_v46  ;;  %v84_v44 = vld [vmem:[#allocation2 + $0xb8] sm:$0xff]  ;;  %v2918_v45 = vcombine.low %v71_v32, %v75_v33  ;;  %v2920_v46 = vcombine.low %v72_v35, %v76_v36  ;;  %v135_v36 = vld [vmem:[#allocation2 + $0x250] sm:$0xff] }
  0x66   :  { %v2929_v48 = vcombine.high %v80_v43, %v84_v44 }
  0x68   :  { %911 = vmatpush1.bf16.msra.mxu0 %v2994_v52  ;;  %952 = vmatpush1.bf16.msra.mxu1 %v2996_v53  ;;  %v88_v52 = vld [vmem:[#allocation2 + $0xd8] sm:$0xff] }
  0x69   :  { %912 = vmatprep.subr.bf16.mxu0 %v3003_v54  ;;  %953 = vmatprep.subr.bf16.mxu1 %v3005_v55  ;;  %v92_v53 = vld [vmem:[#allocation2 + $0xf8] sm:$0xff]  ;;  %v2926_v54 = vcombine.low %v79_v41, %v83_v42  ;;  %v2928_v55 = vcombine.low %v80_v43, %v84_v44  ;;  %v143_v44 = vld [vmem:[#allocation2 + $0x290] sm:$0xff] }
  0x6a   :  { %v2937_v57 = vcombine.high %v88_v52, %v92_v53 }
  0x6c   :  { %913 = vmatpush1.bf16.msra.mxu0 %v3002_v62  ;;  %954 = vmatpush1.bf16.msra.mxu1 %v3004_v1  ;;  %v96_v62 = vld [vmem:[#allocation2 + $0x118] sm:$0xff]  ;;  %v2934_v1 = vcombine.low %v87_v50, %v91_v51 }
  0x6d   :  { %914 = vmatprep.subr.bf16.mxu0 %v3011_v2  ;;  %955 = vmatprep.subr.bf16.mxu1 %v3013_v3  ;;  %v2936_v2 = vcombine.low %v88_v52, %v92_v53  ;;  %v2943_v3 = vcombine.high %v95_v60, %v99_v61  ;;  %v2944_v9 = vcombine.low %v96_v62, %v100_v0  ;;  %v151_v53 = vld [vmem:[#allocation2 + $0x2d0] sm:$0xff] }
  0x70   :  { %915 = vmatpush1.bf16.msra.mxu0 %v3010_v8  ;;  %956 = vmatpush1.bf16.msra.mxu1 %v3012_v11  ;;  %v2942_v8 = vcombine.low %v95_v60, %v99_v61  ;;  %v2953_v11 = vcombine.high %v104_v6, %v108_v7  ;;  %v167_v7 = vld [vmem:[#allocation2 + $0x350] sm:$0xff] }
  0x71   :  { %916 = vmatprep.subr.bf16.mxu0 %v3019_v63  ;;  %957 = vmatprep.subr.bf16.mxu1 %v3021_v12  ;;  %v111_v63 = vld [vmem:[#allocation2 + $0x190] sm:$0xff] }
  0x72   :  { %v115_v12 = vld [vmem:[#allocation2 + $0x1b0] sm:$0xff] }
  0x73   :  { %v2958_v22 = vcombine.low %v111_v63, %v115_v12 }
  0x74   :  { %917 = vmatpush1.bf16.msra.mxu0 %v3018_v17  ;;  %958 = vmatpush1.bf16.msra.mxu1 %v3020_v20  ;;  %v2959_v17 = vcombine.high %v111_v63, %v115_v12  ;;  %v123_v20 = vld [vmem:[#allocation2 + $0x1f0] sm:$0xff] }
  0x75   :  { %918 = vmatprep.subr.bf16.mxu0 %v3027_v21  ;;  %959 = vmatprep.subr.bf16.mxu1 %v3029_v58  ;;  %v120_v21 = vld [vmem:[#allocation2 + $0x1d8] sm:$0xff]  ;;  %v2967_v24 = vcombine.high %v119_v19, %v123_v20 }
  0x76   :  { %v124_v58 = vld [vmem:[#allocation2 + $0x1f8] sm:$0xff] }
  0x77   :  { %v2969_v25 = vcombine.high %v120_v21, %v124_v58  ;;  %v2968_v32 = vcombine.low %v120_v21, %v124_v58  ;;  %v183_v58 = vld [vmem:[#allocation2 + $0x3d0] sm:$0xff] }
  0x78   :  { %919 = vmatpush1.bf16.msra.mxu0 %v3026_v26  ;;  %960 = vmatpush1.bf16.msra.mxu1 %v3028_v29  ;;  %v127_v26 = vld [vmem:[#allocation2 + $0x210] sm:$0xff]  ;;  %v128_v29 = vld [vmem:[#allocation2 + $0x218] sm:$0xff] }
  0x79   :  { %970 = vmatprep.subr.bf16.mxu0 %v2911_v30  ;;  %1011 = vmatprep.subr.bf16.mxu1 %v2913_v31  ;;  %v132_v30 = vld [vmem:[#allocation2 + $0x238] sm:$0xff]  ;;  %v2966_v31 = vcombine.low %v119_v19, %v123_v20  ;;  %v2975_v33 = vcombine.high %v127_v26, %v131_v28 }
  0x7a   :  { %v2977_v35 = vcombine.high %v128_v29, %v132_v30  ;;  %v2976_v41 = vcombine.low %v128_v29, %v132_v30 }
  0x7b   :  { %921 = vmatmul.mubr.bf16.vlgmr.msra.gmra.mrb[0].mxu0 %v3456_v34  ;;  %962 = vmatmul.mubr.bf16.vlgmr.msra.gmra.mrb[0].mxu1 %v3456_v34 }
  0x7c   :  { %971 = vmatpush1.bf16.msra.mxu0 %v2910_v37  ;;  %1012 = vmatpush1.bf16.msra.mxu1 %v2912_v38  ;;  %v139_v37 = vld [vmem:[#allocation2 + $0x270] sm:$0xff]  ;;  %v136_v38 = vld [vmem:[#allocation2 + $0x258] sm:$0xff] }
  0x7d   :  { %972 = vmatprep.subr.bf16.mxu0 %v2919_v39  ;;  %1013 = vmatprep.subr.bf16.mxu1 %v2921_v40  ;;  %v140_v39 = vld [vmem:[#allocation2 + $0x278] sm:$0xff]  ;;  %v2974_v40 = vcombine.low %v127_v26, %v131_v28  ;;  %v2983_v42 = vcombine.high %v135_v36, %v139_v37 }
  0x7e   :  { %1002 = vmatprep.mubr.bf16.mxu0 %v3447_v27  ;;  %1043 = vmatprep.mubr.bf16.mxu1 %v3447_v27  ;;  %v2945_v27 = vcombine.high %v96_v62, %v100_v0  ;;  %v2985_v43 = vcombine.high %v136_v38, %v140_v39  ;;  %v2984_v50 = vcombine.low %v136_v38, %v140_v39  ;;  %v159_v0 = vld [vmem:[#allocation2 + $0x310] sm:$0xff] }
  0x80   :  { %973 = vmatpush1.bf16.msra.mxu0 %v2918_v45  ;;  %1014 = vmatpush1.bf16.msra.mxu1 %v2920_v46  ;;  %v147_v45 = vld [vmem:[#allocation2 + $0x2b0] sm:$0xff]  ;;  %v144_v46 = vld [vmem:[#allocation2 + $0x298] sm:$0xff] }
  0x81   :  { %974 = vmatprep.subr.bf16.mxu0 %v2927_v47  ;;  %1015 = vmatprep.subr.bf16.mxu1 %v2929_v48  ;;  %v148_v47 = vld [vmem:[#allocation2 + $0x2b8] sm:$0xff]  ;;  %v2982_v48 = vcombine.low %v135_v36, %v139_v37  ;;  %v2991_v51 = vcombine.high %v143_v44, %v147_v45 }
  0x82   :  { %v2993_v52 = vcombine.high %v144_v46, %v148_v47  ;;  %v2992_v60 = vcombine.low %v144_v46, %v148_v47 }
  0x84   :  { %975 = vmatpush1.bf16.msra.mxu0 %v2926_v54  ;;  %1016 = vmatpush1.bf16.msra.mxu1 %v2928_v55  ;;  %v155_v54 = vld [vmem:[#allocation2 + $0x2f0] sm:$0xff]  ;;  %v152_v55 = vld [vmem:[#allocation2 + $0x2d8] sm:$0xff] }
  0x85   :  { %976 = vmatprep.subr.bf16.mxu0 %v2935_v56  ;;  %1017 = vmatprep.subr.bf16.mxu1 %v2937_v57  ;;  %v156_v56 = vld [vmem:[#allocation2 + $0x2f8] sm:$0xff]  ;;  %v2990_v57 = vcombine.low %v143_v44, %v147_v45  ;;  %v2999_v61 = vcombine.high %v151_v53, %v155_v54 }
  0x86   :  { %v3001_v62 = vcombine.high %v152_v55, %v156_v56  ;;  %v3000_v4 = vcombine.low %v152_v55, %v156_v56 }
  0x88   :  { %977 = vmatpush1.bf16.msra.mxu0 %v2934_v1  ;;  %1018 = vmatpush1.bf16.msra.mxu1 %v2936_v2  ;;  %v163_v1 = vld [vmem:[#allocation2 + $0x330] sm:$0xff]  ;;  %v160_v2 = vld [vmem:[#allocation2 + $0x318] sm:$0xff] }
  0x89   :  { %978 = vmatprep.subr.bf16.mxu0 %v2943_v3  ;;  %1019 = vmatprep.subr.bf16.mxu1 %v2945_v27  ;;  %v164_v3 = vld [vmem:[#allocation2 + $0x338] sm:$0xff]  ;;  %v2998_v27 = vcombine.low %v151_v53, %v155_v54  ;;  %v3007_v5 = vcombine.high %v159_v0, %v163_v1 }
  0x8a   :  { %v3009_v6 = vcombine.high %v160_v2, %v164_v3  ;;  %v3008_v63 = vcombine.low %v160_v2, %v164_v3  ;;  %v1158_v3 = vld [vmem:[#allocation5] sm:$0xff] }
  0x8c   :  { %979 = vmatpush1.bf16.msra.mxu0 %v2942_v8  ;;  %1020 = vmatpush1.bf16.msra.mxu1 %v2944_v9  ;;  %v171_v8 = vld [vmem:[#allocation2 + $0x370] sm:$0xff]  ;;  %v168_v9 = vld [vmem:[#allocation2 + $0x358] sm:$0xff] }
  0x8d   :  { %980 = vmatprep.subr.bf16.mxu0 %v2951_v10  ;;  %1021 = vmatprep.subr.bf16.mxu1 %v2953_v11  ;;  %v172_v10 = vld [vmem:[#allocation2 + $0x378] sm:$0xff]  ;;  %v3006_v11 = vcombine.low %v159_v0, %v163_v1  ;;  %v3015_v12 = vcombine.high %v167_v7, %v171_v8  ;;  %v3473_v0 = vsub.s32 1, %v3425_v49 }
  0x8e   :  { %v3017_v13 = vcombine.high %v168_v9, %v172_v10  ;;  %v3016_v19 = vcombine.low %v168_v9, %v172_v10 }
  0x90   :  { %981 = vmatpush1.bf16.msra.mxu0 %v2950_v15  ;;  %1022 = vmatpush1.bf16.msra.mxu1 %v2952_v16  ;;  %v179_v15 = vld [vmem:[#allocation2 + $0x3b0] sm:$0xff]  ;;  %v176_v16 = vld [vmem:[#allocation2 + $0x398] sm:$0xff] }
  0x91   :  { %982 = vmatprep.subr.bf16.mxu0 %v2959_v17  ;;  %1023 = vmatprep.subr.bf16.mxu1 %v2961_v18  ;;  %v180_v17 = vld [vmem:[#allocation2 + $0x3b8] sm:$0xff]  ;;  %v3014_v18 = vcombine.low %v167_v7, %v171_v8  ;;  %v3023_v20 = vcombine.high %v175_v14, %v179_v15  ;;  %v1160_v7 = vld [vmem:[#allocation5 + $0x10] sm:$0xff] }
  0x92   :  { %v3025_v21 = vcombine.high %v176_v16, %v180_v17  ;;  %v3024_v26 = vcombine.low %v176_v16, %v180_v17 }
  0x94   :  { %983 = vmatpush1.bf16.msra.mxu0 %v2958_v22  ;;  %1024 = vmatpush1.bf16.msra.mxu1 %v2960_v23  ;;  %v187_v22 = vld [vmem:[#allocation2 + $0x3f0] sm:$0xff]  ;;  %v184_v23 = vld [vmem:[#allocation2 + $0x3d8] sm:$0xff] }
  0x95   :  { %984 = vmatprep.subr.bf16.mxu0 %v2967_v24  ;;  %1025 = vmatprep.subr.bf16.mxu1 %v2969_v25  ;;  %v188_v24 = vld [vmem:[#allocation2 + $0x3f8] sm:$0xff]  ;;  %v3022_v25 = vcombine.low %v175_v14, %v179_v15  ;;  %v3031_v28 = vcombine.high %v183_v58, %v187_v22  ;;  %v3030_v30 = vcombine.low %v183_v58, %v187_v22 }
  0x96   :  { %v3033_v29 = vcombine.high %v184_v23, %v188_v24 }
  0x98   :  { %985 = vmatpush1.bf16.msra.mxu0 %v2966_v31  ;;  %1026 = vmatpush1.bf16.msra.mxu1 %v2968_v32  ;;  %v3032_v31 = vcombine.low %v184_v23, %v188_v24 }
  0x99   :  { %986 = vmatprep.subr.bf16.mxu0 %v2975_v33  ;;  %1027 = vmatprep.subr.bf16.mxu1 %v2977_v35 }
  0x9c   :  { %987 = vmatpush1.bf16.msra.mxu0 %v2974_v40  ;;  %1028 = vmatpush1.bf16.msra.mxu1 %v2976_v41 }
  0x9d   :  { %988 = vmatprep.subr.bf16.mxu0 %v2983_v42  ;;  %1029 = vmatprep.subr.bf16.mxu1 %v2985_v43 }
  0xa0   :  { %989 = vmatpush1.bf16.msra.mxu0 %v2982_v48  ;;  %1030 = vmatpush1.bf16.msra.mxu1 %v2984_v50 }
  0xa1   :  { %990 = vmatprep.subr.bf16.mxu0 %v2991_v51  ;;  %1031 = vmatprep.subr.bf16.mxu1 %v2993_v52 }
  0xa4   :  { %991 = vmatpush1.bf16.msra.mxu0 %v2990_v57  ;;  %1032 = vmatpush1.bf16.msra.mxu1 %v2992_v60 }
  0xa5   :  { %992 = vmatprep.subr.bf16.mxu0 %v2999_v61  ;;  %1033 = vmatprep.subr.bf16.mxu1 %v3001_v62  ;;  %v3470_v62 = vsub.s32 0, %v3425_v49  ;;  %v1182_v49 = vld [vmem:[#allocation7] sm:$0xff] }
  0xa8   :  { %993 = vmatpush1.bf16.msra.mxu0 %v2998_v27  ;;  %1034 = vmatpush1.bf16.msra.mxu1 %v3000_v4  ;;  %v1159_v27 = vld [vmem:[#allocation5 + $0x8] sm:$0xff] }
  0xa9   :  { %994 = vmatprep.subr.bf16.mxu0 %v3007_v5  ;;  %1035 = vmatprep.subr.bf16.mxu1 %v3009_v6 }
  0xac   :  { %995 = vmatpush1.bf16.msra.mxu0 %v3006_v11  ;;  %1036 = vmatpush1.bf16.msra.mxu1 %v3008_v63  ;;  %v1183_v63 = vld [vmem:[#allocation7 + $0x8] sm:$0xff] }
  0xad   :  { %996 = vmatprep.subr.bf16.mxu0 %v3015_v12  ;;  %1037 = vmatprep.subr.bf16.mxu1 %v3017_v13  ;;  %v1184_v12 = vld [vmem:[#allocation7 + $0x10] sm:$0xff]  ;;  %v1161_v13 = vld [vmem:[#allocation5 + $0x18] sm:$0xff] }
  0xb0   :  { %997 = vmatpush1.bf16.msra.mxu0 %v3014_v18  ;;  %1038 = vmatpush1.bf16.msra.mxu1 %v3016_v19  ;;  %v1185_v19 = vld [vmem:[#allocation7 + $0x18] sm:$0xff] }
  0xb1   :  { %998 = vmatprep.subr.bf16.mxu0 %v3023_v20  ;;  %1039 = vmatprep.subr.bf16.mxu1 %v3025_v21 }
  0xb4   :  { %999 = vmatpush1.bf16.msra.mxu0 %v3022_v25  ;;  %1040 = vmatpush1.bf16.msra.mxu1 %v3024_v26 }
  0xb5   :  { %1000 = vmatprep.subr.bf16.mxu0 %v3031_v28  ;;  %1041 = vmatprep.subr.bf16.mxu1 %v3033_v29 }
  0xb8   :  { %1001 = vmatpush1.bf16.msra.mxu0 %v3030_v30  ;;  %1042 = vmatpush1.bf16.msra.mxu1 %v3032_v31 }
  0xbb   :  { %1003 = vmatmul.mubr.bf16.vlgmr.msra.gmra.mrb[4].mxu0 %v3456_v34  ;;  %1044 = vmatmul.mubr.bf16.vlgmr.msra.gmra.mrb[4].mxu1 %v3456_v34 }
 0x14e   :  { %v922_v32 = vpop.f32.mrb[0].mxu0  ;;  %v963_v33 = vpop.f32.mrb[0].mxu1 }
 0x14f   :  { %v924_v35 = vpop.f32.mrb[1].mxu0  ;;  %v3464_v36 = vpop.f32.mrb[1].mxu1 }
 0x150   :  { %v926_v37 = vpop.f32.mrb[2].mxu0  ;;  %v967_v38 = vpop.f32.mrb[2].mxu1 }
 0x151   :  { %v927_v39 = vpop.f32.mrb[3].mxu0  ;;  %v968_v40 = vpop.f32.mrb[3].mxu1 }
 0x18e   :  { %v1004_v41 = vpop.f32.mrb[4].mxu0  ;;  %v1045_v43 = vpop.f32.mrb[4].mxu1 }
 0x18f   :  { %v1052_v42 = vadd.f32 1e-06, %v1004_v41  ;;  %v1006_v44 = vpop.f32.mrb[5].mxu0  ;;  %v1060_v45 = vadd.f32 1e-06, %v1045_v43  ;;  %v3497_v29 = vpop.f32.mrb[5].mxu1 }
 0x190   :  { %v1053_v46 = vadd.f32 1e-06, %v1006_v44  ;;  %v1008_v47 = vpop.f32.mrb[6].mxu0 }
 0x191   :  { %3177 = vrcp.f32 %v1052_v42  ;;  %v1009_v48 = vpop.f32.mrb[7].mxu0 }
 0x192   :  { %3179 = vrcp.f32 %v1060_v45 }
 0x193   :  { %3181 = vrcp.f32 %v1053_v46 }
 0x19b   :  { %v3178_v34 = vpop.eup %3177 }
 0x19c   :  { %v3180_v50 = vpop.eup %3179  ;;  %v1055_v51 = vmul.f32 6.2831855, %v3178_v34 }
 0x19d   :  { %v3182_v52 = vpop.eup %3181  ;;  %v1063_v53 = vmul.f32 6.2831855, %v3180_v50 }
 0x19e   :  { %v1058_v54 = vmul.f32 %v1055_v51, %v922_v32  ;;  %v1057_v55 = vmul.f32 6.2831855, %v3182_v52  ;;  %v1049_v32 = vpop.f32.mrb[6].mxu1 }
 0x19f   :  { %v3466_v56 = vmul.f32 %v1063_v53, %v963_v33  ;;  %v1050_v42 = vpop.f32.mrb[7].mxu1 }
 0x1a0   :  { %v1059_v57 = vmul.f32 %v1057_v55, %v924_v35 }
 0x1a2   :  { %v1070_v60 = vcombine.low %v1058_v54, %v1059_v57 }
 0x1a4   :  { %v1077_v61 = vrot.slane %v1070_v60, %v3433_v59 }
 0x1a6   :  { %v1078_v1 = vcombine.high %v1077_v61, %v1077_v61  ;;  %v1085_v2 = vrot.slane %v1077_v61, %v3433_v59 }
 0x1a8   :  { %v1092_v4 = vrot.slane %v1078_v1, %v3433_v59  ;;  %v1096_v5 = vrot.slane %v1085_v2, %v3470_v62  ;;  %v1100_v6 = vrot.slane %v1085_v2, %v3473_v0 }
 0x1aa   :  { %v1104_v8 = vrot.slane %v1092_v4, %v3470_v62  ;;  %v1108_v9 = vrot.slane %v1092_v4, %v3473_v0  ;;  %v1166_v10 = vmul.f32 %v1158_v3, %v1096_v5  ;;  %v1167_v11 = vmul.f32 %v1159_v27, %v1100_v6 }
 0x1ab   :  { %v1168_v14 = vmul.f32 %v1160_v7, %v1096_v5  ;;  %v1169_v33 = vmul.f32 %v1161_v13, %v1100_v6 }
 0x1ac   :  { %v1174_v15 = vmul.f32 %v1158_v3, %v1104_v8  ;;  %v1175_v16 = vmul.f32 %v1159_v27, %v1108_v9  ;;  %v1176_v17 = vmul.f32 %v1160_v7, %v1104_v8  ;;  %v1177_v18 = vmul.f32 %v1161_v13, %v1108_v9 }
 0x1ad   :  { %v3481_v20 = vadd.f32 %v1182_v49, %v1166_v10  ;;  %v3483_v21 = vadd.f32 %v1183_v63, %v1167_v11  ;;  %v3485_v58 = vadd.f32 %v1184_v12, %v1168_v14  ;;  %v3506_v45 = vadd.f32 %v1185_v19, %v1169_v33 }
 0x1ae   :  { %v3487_v22 = vadd.f32 %v1182_v49, %v1174_v15  ;;  %v3489_v23 = vadd.f32 %v1183_v63, %v1175_v16  ;;  %v3491_v24 = vadd.f32 %v1184_v12, %v1176_v17  ;;  %v3493_v25 = vadd.f32 %v1185_v19, %v1177_v18 }
 0x1af   :  { %v1206_v26 = vand.u32 2147483647, %v3481_v20  ;;  %v1209_v28 = vand.u32 2139095040, %v3481_v20  ;;  %v1310_v30 = vand.u32 2147483647, %v3483_v21  ;;  %v1313_v31 = vand.u32 2139095040, %v3483_v21 }
 0x1b0   :  { %v1417_v40 = vand.u32 2139095040, %v3485_v58  ;;  %v1414_v50 = vand.u32 2147483647, %v3485_v58  ;;  %v1521_v2 = vand.u32 2139095040, %v3506_v45  ;;  %v3351_v27 = vmov 683565275  }
 0x1b1   :  { %v1210_v35 = vshrl.u32 %v1209_v28, 23  ;;  %v1213_v37 = vand.u32 8388607, %v1206_v26  ;;  %v1314_v38 = vshrl.u32 %v1313_v31, 23  ;;  %v1317_v39 = vand.u32 8388607, %v1310_v30 }
 0x1b2   :  { %v1418_v44 = vshrl.u32 %v1417_v40, 23  ;;  %v3515_v61 = vand.u32 8388607, %v1414_v50  ;;  %v3352_v7 = vmov 2475754826   ;;  %vm1208_vm14 = vcmp.lt.s32.totalorder %v3481_v20, 0 }
 0x1b3   :  { %v3034_v41 = vadd.s32 4294967169, %v1210_v35  ;;  %v3038_v43 = vadd.s32 4294967169, %v1314_v38  ;;  %v1214_v46 = vor.u32 8388608, %v1213_v37  ;;  %v1318_v48 = vor.u32 8388608, %v1317_v39 }
 0x1b4   :  { %v3042_v51 = vadd.s32 4294967169, %v1418_v44  ;;  %v3353_v9 = vmov 2131351028   ;;  %v3354_v11 = vmov 2102212464  }
 0x1b5   :  { %v1216_v47 = vadd.s32 1, %v3034_v41  ;;  %v1320_v34 = vadd.s32 1, %v3038_v43  ;;  %v3509_v55 = vshll.u32 %v1214_v46, 8  ;;  %v3511_v60 = vshll.u32 %v1318_v48, 8 }
 0x1b6   :  { %v3517_v1 = vadd.s32 1, %v3042_v51  ;;  %v3355_v63 = vmov 920167782   ;;  %v3356_v18 = vmov 1326507024  }
 0x1b7   :  { %vm1217_vm1 = vcmp.gt.s32.totalorder %v1216_v47, 0  ;;  %vm1321_vm2 = vcmp.gt.s32.totalorder %v1320_v34, 0  ;;  %vm3605_vm15 = vcmp.le.f32.partialorder %v1206_v26, 0.7853982 }
 0x1b8   :  { %v1218_v52 = vsel %vm1217_vm1, %v1216_v47, 0  ;;  %v1322_v57 = vsel %vm1321_vm2, %v1320_v34, 0  ;;  %vm1425_vm7 = vcmp.gt.s32.totalorder %v3517_v1, 0 }
 0x1b9   :  { %v1219_v53 = vshrl.u32 %v1218_v52, 5  ;;  %v1220_v54 = vand.u32 31, %v1218_v52  ;;  %v3521_v5 = vshrl.u32 %v1322_v57, 5  ;;  %v1324_v6 = vand.u32 31, %v1322_v57 }
 0x1bb   :  { %v1221_v3 = vsub.s32 32, %v1220_v54  ;;  %v1223_v4 = vshll.u32 %v3351_v27, %v1220_v54  ;;  %v1226_v8 = vshll.u32 %v3352_v7, %v1220_v54  ;;  %v1229_v10 = vshll.u32 %v3353_v9, %v1220_v54 }
 0x1bc   :  { %v1232_v49 = vshll.u32 %v3354_v11, %v1220_v54  ;;  %v1235_v12 = vshll.u32 %v3355_v63, %v1220_v54  ;;  %vm1238_vm3 = vcmp.lt.s32.totalorder %v1219_v53, 1  ;;  %vm1239_vm4 = vcmp.lt.s32.totalorder %v1219_v53, 2 }
 0x1bd   :  { %v1224_v13 = vshrl.u32 %v3352_v7, %v1221_v3  ;;  %v1227_v14 = vshrl.u32 %v3353_v9, %v1221_v3  ;;  %v1230_v15 = vshrl.u32 %v3354_v11, %v1221_v3  ;;  %v1222_v16 = vshrl.u32 %v3351_v27, %v1221_v3 }
 0x1be   :  { %v1233_v17 = vshrl.u32 %v3355_v63, %v1221_v3  ;;  %v1236_v19 = vshrl.u32 %v3356_v18, %v1221_v3  ;;  %v1325_v33 = vsub.s32 32, %v1324_v6  ;;  %vm1240_vm5 = vcmp.lt.s32.totalorder %v1219_v53, 3 }
 0x1bf   :  { %v1225_v28 = vor.u32 %v1224_v13, %v1223_v4  ;;  %v1228_v31 = vor.u32 %v1227_v14, %v1226_v8  ;;  %v1231_v32 = vor.u32 %v1230_v15, %v1229_v10  ;;  %vm1241_vm6 = vcmp.lt.s32.totalorder %v1219_v53, 4 }
 0x1c0   :  { %v1234_v35 = vor.u32 %v1233_v17, %v1232_v49  ;;  %v1237_v37 = vor.u32 %v1236_v19, %v1235_v12  ;;  %v1327_v46 = vshll.u32 %v3351_v27, %v1324_v6  ;;  %v1328_v34 = vshrl.u32 %v3352_v7, %v1325_v33 }
 0x1c1   :  { %v1242_v38 = vsel %vm1238_vm3, %v1222_v16, %v1225_v28  ;;  %v1243_v39 = vsel %vm1241_vm6, %v1231_v32, 2102212464  ;;  %v1246_v40 = vsel %vm1238_vm3, %v1225_v28, %v1228_v31  ;;  %v1250_v41 = vsel %vm1238_vm3, %v1228_v31, %v1231_v32 }
 0x1c2   :  { %v1244_v42 = vsel %vm1240_vm5, %v1228_v31, %v1243_v39  ;;  %v1247_v43 = vsel %vm1241_vm6, %v1234_v35, 920167782  ;;  %v1251_v44 = vsel %vm1241_vm6, %v1237_v37, 1326507024  ;;  %v1330_v51 = vshll.u32 %v3352_v7, %v1324_v6 }
 0x1c3   :  { %v1248_v47 = vsel %vm1240_vm5, %v1231_v32, %v1247_v43  ;;  %v1252_v48 = vsel %vm1240_vm5, %v1234_v35, %v1251_v44  ;;  %v1245_v52 = vsel %vm1239_vm4, %v1242_v38, %v1244_v42  ;;  %v1331_v3 = vshrl.u32 %v3353_v9, %v1325_v33 }
 0x1c4   :  { %v1249_v54 = vsel %vm1239_vm4, %v1246_v40, %v1248_v47  ;;  %v1253_v57 = vsel %vm1239_vm4, %v1250_v41, %v1252_v48  ;;  %v1329_v12 = vor.u32 %v1328_v34, %v1327_v46  ;;  %v1333_v14 = vshll.u32 %v3353_v9, %v1324_v6 }
 0x1c5   :  { %v3545_v4 = vmul.u32.u64.low %v3509_v55, %v1253_v57  ;;  %v3546_v8 = vmul.u32.u64.high %v3509_v55, %v1253_v57, %v3545_v4  ;;  %v3549_v10 = vmul.u32.u64.low %v3509_v55, %v1249_v54  ;;  %v3550_v49 = vmul.u32.u64.high %v3509_v55, %v1249_v54, %v3549_v10 }
 0x1c6   :  { %v1332_v13 = vor.u32 %v1331_v3, %v1330_v51  ;;  %v1334_v15 = vshrl.u32 %v3354_v11, %v1325_v33  ;;  %v1326_v16 = vshrl.u32 %v3351_v27, %v1325_v33  ;;  %v1336_v53 = vshll.u32 %v3354_v11, %v1324_v6 }
 0x1c7   :  { %v1337_v17 = vshrl.u32 %v3355_v63, %v1325_v33  ;;  %v1340_v19 = vshrl.u32 %v3356_v18, %v1325_v33  ;;  %v1261_v28 = vmul.u32 %v3509_v55, %v1245_v52  ;;  %v1339_v32 = vshll.u32 %v3355_v63, %v1324_v6 }
 0x1c8   :  { %v1335_v31 = vor.u32 %v1334_v15, %v1333_v14  ;;  %vm1342_vm8 = vcmp.lt.s32.totalorder %v3521_v5, 1  ;;  %vm1263_vm9 = vc.u32 %v3546_v8, %v3549_v10  ;;  %v1264_v35 = vadd.s32 1, %v3550_v49 }
 0x1c9   :  { %v1338_v37 = vor.u32 %v1337_v17, %v1336_v53  ;;  %vm1343_vm10 = vcmp.lt.s32.totalorder %v3521_v5, 2  ;;  %v1341_v38 = vor.u32 %v1340_v19, %v1339_v32  ;;  %vm1344_vm11 = vcmp.lt.s32.totalorder %v3521_v5, 3 }
 0x1ca   :  { %vm1345_vm12 = vcmp.lt.s32.totalorder %v3521_v5, 4  ;;  %v1350_v33 = vsel %vm1342_vm8, %v1329_v12, %v1332_v13  ;;  %v1265_v55 = vsel %vm1263_vm9, %v1264_v35, %v3550_v49  ;;  %v1354_v6 = vsel %vm1342_vm8, %v1332_v13, %v1335_v31 }
 0x1cb   :  { %v1347_v39 = vsel %vm1345_vm12, %v1335_v31, 2102212464  ;;  %v1351_v40 = vsel %vm1345_vm12, %v1338_v37, 920167782  ;;  %v1266_v41 = vadd.s32 %v1265_v55, %v1261_v28  ;;  %v1346_v42 = vsel %vm1342_vm8, %v1326_v16, %v1329_v12 }
 0x1cc   :  { %v1352_v43 = vsel %vm1344_vm11, %v1335_v31, %v1351_v40  ;;  %v1355_v44 = vsel %vm1345_vm12, %v1341_v38, 1326507024  ;;  %v1348_v46 = vsel %vm1344_vm11, %v1332_v13, %v1347_v39  ;;  %v1426_v34 = vsel %vm1425_vm7, %v3517_v1, 0 }
 0x1cd   :  { %v1353_v47 = vsel %vm1343_vm10, %v1350_v33, %v1352_v43  ;;  %v1356_v48 = vsel %vm1344_vm11, %v1338_v37, %v1355_v44  ;;  %v1267_v51 = vadd.s32 536870912, %v1266_v41  ;;  %v1518_v49 = vand.u32 2147483647, %v3506_v45 }
 0x1ce   :  { %v1357_v52 = vsel %vm1343_vm10, %v1354_v6, %v1356_v48  ;;  %v3575_v54 = vmul.u32.u64.low %v3511_v60, %v1353_v47  ;;  %v3576_v57 = vmul.u32.u64.high %v3511_v60, %v1353_v47, %v3575_v54  ;;  %v1349_v13 = vsel %vm1343_vm10, %v1346_v42, %v1348_v46 }
 0x1cf   :  { %v3580_v3 = vmul.u32.u64.low %v3511_v60, %v1357_v52  ;;  %v3581_v4 = vmul.u32.u64.high %v3511_v60, %v1357_v52, %v3580_v3  ;;  %v1268_v12 = vshrl.u32 %v1267_v51, 30  ;;  %v1422_v1 = vor.u32 8388608, %v3515_v61 }
 0x1d0   :  { %v1428_v14 = vand.u32 31, %v1426_v34  ;;  %v1368_v16 = vadd.s32 1, %v3576_v57  ;;  %v1522_v17 = vshrl.u32 %v1521_v2, 23  ;;  %v1365_v19 = vmul.u32 %v3511_v60, %v1349_v13 }
 0x1d1   :  { %v1269_v15 = vshll.u32 %v1268_v12, 30  ;;  %vm1367_vm13 = vc.u32 %v3581_v4, %v3575_v54  ;;  %v3595_v28 = vand.u32 8388607, %v1518_v49  ;;  %v3601_v31 = vshll.u32 %v1422_v1, 8 }
 0x1d2   :  { %v1429_v53 = vsub.s32 32, %v1428_v14  ;;  %v1369_v5 = vsel %vm1367_vm13, %v1368_v16, %v3576_v57  ;;  %v1262_v60 = vadd.s32 %v3549_v10, %v3546_v8  ;;  %v3610_v35 = vshrl.u32 %v1426_v34, 5 }
 0x1d3   :  { %v3598_v61 = vsub.s32 %v1266_v41, %v1269_v15  ;;  %v1370_v32 = vadd.s32 %v1369_v5, %v1365_v19  ;;  %v3046_v39 = vadd.s32 4294967169, %v1522_v17  ;;  %v1292_v40 = vsub.s32 4, %v1268_v12 }
 0x1d4   :  { %v1432_v37 = vshrl.u32 %v3352_v7, %v1429_v53  ;;  %v1435_v33 = vshrl.u32 %v3353_v9, %v1429_v53  ;;  %v1438_v55 = vshrl.u32 %v3354_v11, %v1429_v53  ;;  %v1431_v26 = vshll.u32 %v3351_v27, %v1428_v14 }
 0x1d5   :  { %v1272_v38 = vsub.s32 0, %v3598_v61  ;;  %v1371_v6 = vadd.s32 536870912, %v1370_v32  ;;  %v1526_v41 = vor.u32 8388608, %v3595_v28  ;;  %v1434_v10 = vshll.u32 %v3352_v7, %v1428_v14 }
 0x1d6   :  { %v1437_v42 = vshll.u32 %v3353_v9, %v1428_v14  ;;  %v1441_v43 = vshrl.u32 %v3355_v63, %v1429_v53  ;;  %v1433_v46 = vor.u32 %v1432_v37, %v1431_v26  ;;  %v1440_v47 = vshll.u32 %v3354_v11, %v1428_v14 }
 0x1d7   :  { %v3035_v8 = vmin.u32 %v1272_v38, %v3598_v61  ;;  %v1372_v44 = vshrl.u32 %v1371_v6, 30  ;;  %v1444_v48 = vshrl.u32 %v3356_v18, %v1429_v53  ;;  %v1436_v51 = vor.u32 %v1435_v33, %v1434_v10 }
 0x1d8   :  { %v1439_v52 = vor.u32 %v1438_v55, %v1437_v42  ;;  %v1443_v57 = vshll.u32 %v3355_v63, %v1428_v14  ;;  %v1293_v3 = vsel %vm1208_vm14, %v1292_v40, %v1268_v12  ;;  %v1442_v1 = vor.u32 %v1441_v43, %v1440_v47 }
 0x1d9   :  { %v1274_v34 = vclz %v3035_v8  ;;  %v1373_v13 = vshll.u32 %v1372_v44, 30  ;;  %vm1446_vm0 = vcmp.lt.s32.totalorder %v3610_v35, 1  ;;  %vm1447_vm1 = vcmp.lt.s32.totalorder %v3610_v35, 2 }
 0x1da   :  { %v1445_v16 = vor.u32 %v1444_v48, %v1443_v57  ;;  %vm1449_vm2 = vcmp.lt.s32.totalorder %v3610_v35, 4  ;;  %vm1312_vm3 = vcmp.lt.s32.totalorder %v3483_v21, 0  ;;  %v1430_v19 = vshrl.u32 %v3351_v27, %v1429_v53 }
 0x1db   :  { %v3036_v15 = vadd.s32 4294967294, %v1274_v34  ;;  %v3631_v17 = vsub.s32 %v1370_v32, %v1373_v13  ;;  %vm1448_vm4 = vcmp.lt.s32.totalorder %v3610_v35, 3  ;;  %v1455_v12 = vsel %vm1449_vm2, %v1442_v1, 920167782 }
 0x1dc   :  { %v1295_v14 = vsel %vm3605_vm15, 0, %v1293_v3  ;;  %v1454_v5 = vsel %vm1446_vm0, %v1433_v46, %v1436_v51  ;;  %v1456_v37 = vsel %vm1448_vm4, %v1439_v52, %v1455_v12  ;;  %v1396_v33 = vsub.s32 4, %v1372_v44 }
 0x1dd   :  { %vm3037_vm5 = vcmp.lt.s32.totalorder %v3036_v15, 0  ;;  %v1376_v32 = vsub.s32 0, %v3631_v17  ;;  %v1458_v53 = vsel %vm1446_vm0, %v1436_v51, %v1439_v52  ;;  %vm3648_vm6 = vcmp.le.f32.partialorder %v1310_v30, 0.7853982 }
 0x1de   :  { %v1277_v38 = vsel %vm3037_vm5, 0, %v3036_v15  ;;  %v1451_v26 = vsel %vm1449_vm2, %v1439_v52, 2102212464  ;;  %v1459_v8 = vsel %vm1449_vm2, %v1445_v16, 1326507024  ;;  %v1457_v43 = vsel %vm1447_vm1, %v1454_v5, %v1456_v37 }
 0x1df   :  { %v1278_v55 = vsub.s32 32, %v1277_v38  ;;  %v1282_v40 = vsub.s32 4294967266, %v1277_v38  ;;  %v1279_v10 = vshll.u32 %v3598_v61, %v1277_v38  ;;  %v3039_v42 = vmin.u32 %v1376_v32, %v3631_v17 }
 0x1e0   :  { %v1460_v47 = vsel %vm1448_vm4, %v1442_v1, %v1459_v8  ;;  %v1528_v57 = vadd.s32 1, %v3046_v39  ;;  %v1299_v52 = vadd.s32 3, %v1295_v14  ;;  %v1450_v13 = vsel %vm1446_vm0, %v1430_v19, %v1433_v46 }
 0x1e1   :  { %v1280_v30 = vshrl.u32 %v1262_v60, %v1278_v55  ;;  %v1283_v48 = vadd.s32 127, %v1282_v40  ;;  %v1461_v34 = vsel %vm1447_vm1, %v1458_v53, %v1460_v47  ;;  %v1378_v3 = vclz %v3039_v42 }
 0x1e2   :  { %v1452_v61 = vsel %vm1448_vm4, %v1436_v51, %v1451_v26  ;;  %v3669_v12 = vmul.u32.u64.low %v3601_v31, %v1461_v34  ;;  %v3670_v5 = vmul.u32.u64.high %v3601_v31, %v1461_v34, %v3669_v12  ;;  %vm1529_vm7 = vcmp.gt.s32.totalorder %v1528_v57, 0 }
 0x1e3   :  { %v1281_v15 = vor.u32 %v1280_v30, %v1279_v10  ;;  %v1284_v16 = vshll.u32 %v1283_v48, 23  ;;  %v3040_v60 = vadd.s32 4294967294, %v1378_v3  ;;  %v1366_v46 = vadd.s32 %v3575_v54, %v3581_v4 }
 0x1e4   :  { %v3673_v1 = vmul.u32.u64.low %v3601_v31, %v1457_v43  ;;  %v3674_v37 = vmul.u32.u64.high %v3601_v31, %v1457_v43, %v3673_v1  ;;  %v1397_v51 = vsel %vm1312_vm3, %v1396_v33, %v1372_v44  ;;  %v1530_v19 = vsel %vm1529_vm7, %v1528_v57, 0 }
 0x1e5   :  { %v1285_v39 = vor.u32 4788187, %v1284_v16  ;;  %v3681_v14 = vand.u32 3, %v1299_v52  ;;  %vm3041_vm8 = vcmp.lt.s32.totalorder %v3040_v60, 0  ;;  %v1453_v38 = vsel %vm1447_vm1, %v1450_v13, %v1452_v61 }
 0x1e6   :  { %v1532_v32 = vand.u32 31, %v1530_v19  ;;  %v1288_v55 = vcvt.s32.f32 %v1281_v15  ;;  %v1381_v40 = vsel %vm3041_vm8, 0, %v3040_v60  ;;  %vm1471_vm9 = vc.u32 %v3670_v5, %v3673_v1 }
 0x1e7   :  { %v1286_v53 = vand.u32 2147483647, %v1285_v39  ;;  %v1382_v26 = vsub.s32 32, %v1381_v40  ;;  %v1386_v8 = vsub.s32 4294967266, %v1381_v40  ;;  %v1399_v54 = vsel %vm3648_vm6, 0, %v1397_v51 }
 0x1e8   :  { %v1472_v4 = vadd.s32 1, %v3674_v37  ;;  %v1469_v33 = vmul.u32 %v3601_v31, %v1453_v38  ;;  %v3691_v10 = vshrl.u32 %v1530_v19, 5  ;;  %v1533_v35 = vsub.s32 32, %v1532_v32 }
 0x1e9   :  { %v1289_v44 = vmul.f32 %v1288_v55, %v1286_v53  ;;  %v1383_v42 = vshll.u32 %v3631_v17, %v1381_v40  ;;  %v1384_v43 = vshrl.u32 %v1366_v46, %v1382_v26  ;;  %v1387_v47 = vadd.s32 127, %v1386_v8 }
 0x1ea   :  { %v1473_v30 = vsel %vm1471_vm9, %v1472_v4, %v3674_v37  ;;  %v1535_v57 = vshll.u32 %v3351_v27, %v1532_v32  ;;  %v1536_v52 = vshrl.u32 %v3352_v7, %v1533_v35  ;;  %v1538_v61 = vshll.u32 %v3352_v7, %v1532_v32 }
 0x1eb   :  { %v1290_v48 = vxor.u32 2147483648, %v1289_v44  ;;  %v1474_v34 = vadd.s32 %v1473_v30, %v1469_v33  ;;  %v1385_v3 = vor.u32 %v1384_v43, %v1383_v42  ;;  %v1388_v13 = vshll.u32 %v1387_v47, 23 }
 0x1ec   :  { %v1539_v31 = vshrl.u32 %v3353_v9, %v1533_v35  ;;  %v1541_v16 = vshll.u32 %v3353_v9, %v1532_v32  ;;  %v1542_v12 = vshrl.u32 %v3354_v11, %v1533_v35  ;;  %v1537_v39 = vor.u32 %v1536_v52, %v1535_v57 }
 0x1ed   :  { %v1291_v15 = vsel %vm1208_vm14, %v1290_v48, %v1289_v44  ;;  %v1475_v17 = vadd.s32 536870912, %v1474_v34  ;;  %v1389_v37 = vor.u32 4788187, %v1388_v13  ;;  %v1544_v46 = vshll.u32 %v3354_v11, %v1532_v32 }
 0x1ee   :  { %v1294_v60 = vsel %vm3605_vm15, %v3481_v20, %v1291_v15  ;;  %v1392_v51 = vcvt.s32.f32 %v1385_v3  ;;  %v1545_v38 = vshrl.u32 %v3355_v63, %v1533_v35  ;;  %v1540_v55 = vor.u32 %v1539_v31, %v1538_v61 }
 0x1ef   :  { %3183 = vcosq.f32 %v1294_v60  ;;  %v3707_v19 = vshrl.u32 %v1475_v17, 30  ;;  %v1390_v53 = vand.u32 2147483647, %v1389_v37  ;;  %v1548_v40 = vshrl.u32 %v3356_v18, %v1533_v35 }
 0x1f0   :  { %3185 = vsinq.f32 %v1294_v60  ;;  %v1546_v8 = vor.u32 %v1545_v38, %v1544_v46  ;;  %v1543_v4 = vor.u32 %v1542_v12, %v1541_v16  ;;  %v1547_v44 = vshll.u32 %v3355_v63, %v1532_v32 }
 0x1f1   :  { %v1477_v26 = vshll.u32 %v3707_v19, 30  ;;  %v1393_v2 = vmul.f32 %v1392_v51, %v1390_v53  ;;  %v1403_v33 = vadd.s32 3, %v1399_v54  ;;  %vm1550_vm10 = vcmp.lt.s32.totalorder %v3691_v10, 1 }
 0x1f2   :  { %v3718_v43 = vshll.u32 %v1526_v41, 8  ;;  %vm1302_vm11 = vcmp.eq.s32.totalorder %v3681_v14, 0  ;;  %v1549_v30 = vor.u32 %v1548_v40, %v1547_v44  ;;  %vm1553_vm12 = vcmp.lt.s32.totalorder %v3691_v10, 4 }
 0x1f3   :  { %v3713_v42 = vsub.s32 %v1474_v34, %v1477_v26  ;;  %v1394_v47 = vxor.u32 2147483648, %v1393_v2  ;;  %v1558_v48 = vsel %vm1550_vm10, %v1537_v39, %v1540_v55  ;;  %vm1301_vm13 = vcmp.lt.s32.totalorder %v3681_v14, 2 }
 0x1f4   :  { %v1534_v54 = vshrl.u32 %v3351_v27, %v1533_v35  ;;  %vm1552_vm14 = vcmp.lt.s32.totalorder %v3691_v10, 3  ;;  %v1559_v28 = vsel %vm1553_vm12, %v1546_v8, 920167782  ;;  %vm1298_vm15 = vweird.f32 %v3481_v20 }
 0x1f5   :  { %v1480_v32 = vsub.s32 0, %v3713_v42  ;;  %v1395_v41 = vsel %vm1312_vm3, %v1394_v47, %v1393_v2  ;;  %vm1416_vm0 = vcmp.lt.s32.totalorder %v3485_v58, 0  ;;  %vm1551_vm1 = vcmp.lt.s32.totalorder %v3691_v10, 2 }
 0x1f6   :  { %v1555_v34 = vsel %vm1553_vm12, %v1543_v4, 2102212464  ;;  %v1560_v35 = vsel %vm1552_vm14, %v1543_v4, %v1559_v28  ;;  %v1398_v57 = vsel %vm3648_vm6, %v3483_v21, %v1395_v41  ;;  %v1562_v13 = vsel %vm1550_vm10, %v1540_v55, %v1543_v4 }
 0x1f7   :  { %v3043_v52 = vmin.u32 %v1480_v32, %v3713_v42  ;;  %v1561_v3 = vsel %vm1551_vm1, %v1558_v48, %v1560_v35  ;;  %3187 = vcosq.f32 %v1398_v57  ;;  %v1563_v61 = vsel %vm1553_vm12, %v1549_v30, 1326507024 }
 0x1f8   :  { %v3750_v31 = vmul.u32.u64.low %v3718_v43, %v1561_v3  ;;  %v3751_v15 = vmul.u32.u64.high %v3718_v43, %v1561_v3, %v3750_v31  ;;  %vm1305_vm2 = vcmp.eq.s32.totalorder %v3681_v14, 2  ;;  %3189 = vsinq.f32 %v1398_v57 }
 0x1f9   :  { %v3184_v17 = vpop.eup %3183  ;;  %v3755_v6 = vand.u32 3, %v1403_v33  ;;  %vm3759_vm3 = vcmp.le.f32.partialorder %v1414_v50, 0.7853982  ;;  %v1482_v12 = vclz %v3043_v52  ;;  %v1554_v46 = vsel %vm1550_vm10, %v1534_v54, %v1537_v39 }
 0x1fa   :  { %v3186_v60 = vpop.eup %3185  ;;  %v1306_v37 = vxor.u32 2147483648, %v3184_v17  ;;  %v1556_v51 = vsel %vm1552_vm14, %v1540_v55, %v1555_v34  ;;  %v1564_v38 = vsel %vm1552_vm14, %v1546_v8, %v1563_v61  ;;  %v1500_v26 = vsub.s32 4, %v3707_v19 }
 0x1fb   :  { %v1303_v53 = vxor.u32 2147483648, %v3186_v60  ;;  %v3044_v40 = vadd.s32 4294967294, %v1482_v12  ;;  %v1565_v50 = vsel %vm1551_vm1, %v1562_v13, %v1564_v38  ;;  %v1470_v4 = vadd.s32 %v3673_v1, %v3670_v5 }
 0x1fc   :  { %v1307_v2 = vsel %vm1305_vm2, %v1306_v37, %v3186_v60  ;;  %v3775_v44 = vmul.u32.u64.low %v3718_v43, %v1565_v50  ;;  %v3776_v39 = vmul.u32.u64.high %v3718_v43, %v1565_v50, %v3775_v44  ;;  %v1557_v8 = vsel %vm1551_vm1, %v1554_v46, %v1556_v51 }
 0x1fd   :  { %v1304_v55 = vsel %vm1302_vm11, %v3184_v17, %v1303_v53  ;;  %vm3045_vm4 = vcmp.lt.s32.totalorder %v3044_v40, 0  ;;  %v1576_v33 = vadd.s32 1, %v3751_v15  ;;  %vm1405_vm5 = vcmp.lt.s32.totalorder %v3755_v6, 2 }
 0x1fe   :  { %v1308_v47 = vsel %vm1301_vm13, %v1304_v55, %v1307_v2  ;;  %v1485_v30 = vsel %vm3045_vm4, 0, %v3044_v40  ;;  %v2038_v5 = vand.u32 2147483647, %v3487_v22  ;;  %v2041_v1 = vand.u32 2139095040, %v3487_v22 }
 0x1ff   :  { %v1309_v48 = vsel %vm1298_vm15, nan, %v1308_v47  ;;  %vm1402_vm6 = vweird.f32 %v3483_v21  ;;  %v1486_v32 = vsub.s32 32, %v1485_v30  ;;  %v1490_v10 = vsub.s32 4294967266, %v1485_v30 }
 0x200   :  { %v1501_v54 = vsel %vm1416_vm0, %v1500_v26, %v3707_v19  ;;  %vm1406_vm7 = vcmp.eq.s32.totalorder %v3755_v6, 0  ;;  %v1573_v14 = vmul.u32 %v3718_v43, %v1557_v8  ;;  %vm1575_vm8 = vc.u32 %v3776_v39, %v3750_v31  ;;  %2870 = vst [vmem:[#allocation8] sm:$0xff] %v1309_v48 }
 0x201   :  { %v2042_v28 = vshrl.u32 %v2041_v1, 23  ;;  %v1487_v20 = vshll.u32 %v3713_v42, %v1485_v30  ;;  %v1488_v41 = vshrl.u32 %v1470_v4, %v1486_v32  ;;  %v1491_v34 = vadd.s32 127, %v1490_v10  ;;  %v3188_v57 = vpop.eup %3187 }
 0x202   :  { %v1577_v35 = vsel %vm1575_vm8, %v1576_v33, %v3751_v15  ;;  %v1503_v52 = vsel %vm3759_vm3, 0, %v1501_v54  ;;  %v2045_v43 = vand.u32 8388607, %v2038_v5  ;;  %v3190_v13 = vpop.eup %3189  ;;  %vm1409_vm9 = vcmp.eq.s32.totalorder %v3755_v6, 2 }
 0x203   :  { %v1578_v19 = vadd.s32 %v1577_v35, %v1573_v14  ;;  %v3066_v3 = vadd.s32 4294967169, %v2042_v28  ;;  %v1410_v61 = vxor.u32 2147483648, %v3188_v57  ;;  %v1489_v17 = vor.u32 %v1488_v41, %v1487_v20 }
 0x204   :  { %v1492_v12 = vshll.u32 %v1491_v34, 23  ;;  %v1407_v42 = vxor.u32 2147483648, %v3190_v13  ;;  %v2142_v15 = vand.u32 2147483647, %v3489_v23  ;;  %v1507_v38 = vadd.s32 3, %v1503_v52 }
 0x205   :  { %v1579_v60 = vadd.s32 536870912, %v1578_v19  ;;  %v2048_v37 = vadd.s32 1, %v3066_v3  ;;  %v1411_v46 = vsel %vm1409_vm9, %v1410_v61, %v3190_v13  ;;  %v2145_v53 = vand.u32 2139095040, %v3489_v23 }
 0x206   :  { %v1493_v51 = vor.u32 4788187, %v1492_v12  ;;  %v1408_v40 = vsel %vm1406_vm7, %v3188_v57, %v1407_v42  ;;  %v2046_v50 = vor.u32 8388608, %v2045_v43  ;;  %v1496_v44 = vcvt.s32.f32 %v1489_v17 }
 0x207   :  { %v1580_v26 = vshrl.u32 %v1579_v60, 30  ;;  %vm2049_vm10 = vcmp.gt.s32.totalorder %v2048_v37, 0  ;;  %v1412_v2 = vsel %vm1405_vm5, %v1408_v40, %v1411_v46  ;;  %v2146_v47 = vshrl.u32 %v2145_v53, 23 }
 0x208   :  { %v1494_v4 = vand.u32 2147483647, %v1493_v51  ;;  %v2050_v55 = vsel %vm2049_vm10, %v2048_v37, 0  ;;  %v1413_v8 = vsel %vm1402_vm6, nan, %v1412_v2  ;;  %v3815_v30 = vand.u32 8388607, %v2142_v15 }
 0x209   :  { %v1581_v33 = vshll.u32 %v1580_v26, 30  ;;  %v2052_v48 = vand.u32 31, %v2050_v55  ;;  %2871 = vst [vmem:[#allocation8 + $0x8] sm:$0xff] %v1413_v8  ;;  %v3817_v32 = vand.u32 3, %v1507_v38  ;;  %vm1520_vm11 = vcmp.lt.s32.totalorder %v3506_v45, 0 }
 0x20a   :  { %v1497_v1 = vmul.f32 %v1496_v44, %v1494_v4  ;;  %v1574_v6 = vadd.s32 %v3750_v31, %v3776_v39  ;;  %v1604_v54 = vsub.s32 4, %v1580_v26  ;;  %v3824_v14 = vshrl.u32 %v2050_v55, 5 }
 0x20b   :  { %v3822_v10 = vsub.s32 %v1578_v19, %v1581_v33  ;;  %v2053_v28 = vsub.s32 32, %v2052_v48  ;;  %v3827_v41 = vshll.u32 %v2046_v50, 8  ;;  %v3070_v34 = vadd.s32 4294967169, %v2146_v47 }
 0x20c   :  { %v1498_v21 = vxor.u32 2147483648, %v1497_v1  ;;  %v2150_v35 = vor.u32 8388608, %v3815_v30  ;;  %v2055_v52 = vshll.u32 %v3351_v27, %v2052_v48  ;;  %v2058_v43 = vshll.u32 %v3352_v7, %v2052_v48 }
 0x20d   :  { %v1584_v20 = vsub.s32 0, %v3822_v10  ;;  %v2056_v31 = vshrl.u32 %v3352_v7, %v2053_v28  ;;  %v2059_v39 = vshrl.u32 %v3353_v9, %v2053_v28  ;;  %v2062_v13 = vshrl.u32 %v3354_v11, %v2053_v28 }
 0x20e   :  { %v1499_v57 = vsel %vm1416_vm0, %v1498_v21, %v1497_v1  ;;  %v3843_v61 = vsel %vm1520_vm11, %v1604_v54, %v1580_v26  ;;  %v2061_v17 = vshll.u32 %v3353_v9, %v2052_v48  ;;  %vm2070_vm12 = vcmp.lt.s32.totalorder %v3824_v14, 1 }
 0x20f   :  { %v1502_v19 = vsel %vm3759_vm3, %v3485_v58, %v1499_v57  ;;  %v3047_v3 = vmin.u32 %v1584_v20, %v3822_v10  ;;  %v2057_v42 = vor.u32 %v2056_v31, %v2055_v52  ;;  %v2060_v16 = vor.u32 %v2059_v39, %v2058_v43 }
 0x210   :  { %3191 = vcosq.f32 %v1502_v19  ;;  %v2054_v60 = vshrl.u32 %v3351_v27, %v2053_v28  ;;  %v2063_v37 = vor.u32 %v2062_v13, %v2061_v17  ;;  %v2064_v46 = vshll.u32 %v3354_v11, %v2052_v48 }
 0x211   :  { %3193 = vsinq.f32 %v1502_v19  ;;  %v1586_v12 = vclz %v3047_v3  ;;  %v2065_v51 = vshrl.u32 %v3355_v63, %v2053_v28  ;;  %vm3852_vm13 = vcmp.le.f32.partialorder %v1518_v49, 0.7853982 }
 0x212   :  { %v2067_v40 = vshll.u32 %v3355_v63, %v2052_v48  ;;  %v2068_v26 = vshrl.u32 %v3356_v18, %v2053_v28  ;;  %vm2073_vm14 = vcmp.lt.s32.totalorder %v3824_v14, 4  ;;  %vm1513_vm15 = vcmp.eq.s32.totalorder %v3817_v32, 2 }
 0x213   :  { %v3048_v53 = vadd.s32 4294967294, %v1586_v12  ;;  %v2066_v50 = vor.u32 %v2065_v51, %v2064_v46  ;;  %vm2071_vm0 = vcmp.lt.s32.totalorder %v3824_v14, 2  ;;  %vm2072_vm1 = vcmp.lt.s32.totalorder %v3824_v14, 3 }
 0x214   :  { %v2075_v49 = vsel %vm2073_vm14, %v2063_v37, 2102212464  ;;  %vm1510_vm2 = vcmp.eq.s32.totalorder %v3817_v32, 0  ;;  %v2069_v2 = vor.u32 %v2068_v26, %v2067_v40  ;;  %v2074_v4 = vsel %vm2070_vm12, %v2054_v60, %v2057_v42 }
 0x215   :  { %vm3049_vm3 = vcmp.lt.s32.totalorder %v3048_v53, 0  ;;  %v2078_v44 = vsel %vm2070_vm12, %v2057_v42, %v2060_v16  ;;  %vm1509_vm4 = vcmp.lt.s32.totalorder %v3817_v32, 2  ;;  %v2076_v8 = vsel %vm2072_vm1, %v2060_v16, %v2075_v49 }
 0x216   :  { %v1589_v55 = vsel %vm3049_vm3, 0, %v3048_v53  ;;  %v2079_v33 = vsel %vm2073_vm14, %v2066_v50, 920167782  ;;  %v2152_v47 = vadd.s32 1, %v3070_v34  ;;  %vm1506_vm5 = vweird.f32 %v3485_v58 }
 0x217   :  { %v1590_v1 = vsub.s32 32, %v1589_v55  ;;  %v1594_v48 = vsub.s32 4294967266, %v1589_v55  ;;  %v2080_v21 = vsel %vm2072_vm1, %v2063_v37, %v2079_v33  ;;  %v2082_v54 = vsel %vm2070_vm12, %v2060_v16, %v2063_v37 }
 0x218   :  { %v1591_v28 = vshll.u32 %v3822_v10, %v1589_v55  ;;  %v2081_v20 = vsel %vm2071_vm0, %v2078_v44, %v2080_v21  ;;  %v2083_v57 = vsel %vm2073_vm14, %v2069_v2, 1326507024  ;;  %vm2153_vm6 = vcmp.gt.s32.totalorder %v2152_v47, 0 }
 0x219   :  { %v1592_v34 = vshrl.u32 %v1574_v6, %v1590_v1  ;;  %v1595_v52 = vadd.s32 127, %v1594_v48  ;;  %v2084_v31 = vsel %vm2072_vm1, %v2066_v50, %v2083_v57  ;;  %v2154_v39 = vsel %vm2153_vm6, %v2152_v47, 0 }
 0x21a   :  { %v3192_v19 = vpop.eup %3191  ;;  %v2077_v3 = vsel %vm2071_vm0, %v2074_v4, %v2076_v8  ;;  %v2085_v10 = vsel %vm2071_vm0, %v2082_v54, %v2084_v31  ;;  %v3891_v43 = vmul.u32.u64.low %v3827_v41, %v2081_v20  ;;  %v3892_v13 = vmul.u32.u64.high %v3827_v41, %v2081_v20, %v3891_v43 }
 0x21b   :  { %v3194_v17 = vpop.eup %3193  ;;  %v1514_v12 = vxor.u32 2147483648, %v3192_v19  ;;  %v1593_v6 = vor.u32 %v1592_v34, %v1591_v28  ;;  %v1596_v42 = vshll.u32 %v1595_v52, 23  ;;  %v2156_v16 = vand.u32 31, %v2154_v39 }
 0x21c   :  { %v1511_v60 = vxor.u32 2147483648, %v3194_v17  ;;  %v1607_v37 = vsel %vm3852_vm13, 0, %v3843_v61  ;;  %v3899_v46 = vmul.u32.u64.low %v3827_v41, %v2085_v10  ;;  %v3900_v51 = vmul.u32.u64.high %v3827_v41, %v2085_v10, %v3899_v46 }
 0x21d   :  { %v1515_v14 = vsel %vm1513_vm15, %v1514_v12, %v3194_v17  ;;  %v1597_v53 = vor.u32 4788187, %v1596_v42  ;;  %v2093_v40 = vmul.u32 %v3827_v41, %v2077_v3  ;;  %v2157_v26 = vsub.s32 32, %v2156_v16 }
 0x21e   :  { %v1512_v50 = vsel %vm1510_vm2, %v3192_v19, %v1511_v60  ;;  %v1600_v49 = vcvt.s32.f32 %v1593_v6  ;;  %v2096_v2 = vadd.s32 1, %v3892_v13  ;;  %v2155_v4 = vshrl.u32 %v2154_v39, 5 }
 0x21f   :  { %v1516_v61 = vsel %vm1509_vm4, %v1512_v50, %v1515_v14  ;;  %v1598_v44 = vand.u32 2147483647, %v1597_v53  ;;  %v2159_v55 = vshll.u32 %v3351_v27, %v2156_v16  ;;  %v2160_v8 = vshrl.u32 %v3352_v7, %v2157_v26 }
 0x220   :  { %v1517_v33 = vsel %vm1506_vm5, nan, %v1516_v61  ;;  %vm2095_vm7 = vc.u32 %v3900_v51, %v3891_v43  ;;  %v2162_v41 = vshll.u32 %v3352_v7, %v2156_v16  ;;  %v2163_v47 = vshrl.u32 %v3353_v9, %v2157_v26 }
 0x221   :  { %v1601_v1 = vmul.f32 %v1600_v49, %v1598_v44  ;;  %v2097_v48 = vsel %vm2095_vm7, %v2096_v2, %v3892_v13  ;;  %v2161_v32 = vor.u32 %v2160_v8, %v2159_v55  ;;  %v2165_v21 = vshll.u32 %v3353_v9, %v2156_v16  ;;  %2872 = vst [vmem:[#allocation8 + $0x10] sm:$0xff] %v1517_v33 }
 0x222   :  { %v2098_v54 = vadd.s32 %v2097_v48, %v2093_v40  ;;  %v2164_v28 = vor.u32 %v2163_v47, %v2162_v41  ;;  %v2166_v20 = vshrl.u32 %v3354_v11, %v2157_v26  ;;  %v2168_v58 = vshll.u32 %v3354_v11, %v2156_v16 }
 0x223   :  { %v1602_v57 = vxor.u32 2147483648, %v1601_v1  ;;  %v2169_v34 = vshrl.u32 %v3355_v63, %v2157_v26  ;;  %v2171_v52 = vshll.u32 %v3355_v63, %v2156_v16  ;;  %v2172_v31 = vshrl.u32 %v3356_v18, %v2157_v26 }
 0x224   :  { %v1611_v39 = vadd.s32 3, %v1607_v37  ;;  %v2099_v19 = vadd.s32 536870912, %v2098_v54  ;;  %v2167_v3 = vor.u32 %v2166_v20, %v2165_v21  ;;  %vm2174_vm8 = vcmp.lt.s32.totalorder %v2155_v4, 1 }
 0x225   :  { %v1603_v10 = vsel %vm1520_vm11, %v1602_v57, %v1601_v1  ;;  %v2158_v13 = vshrl.u32 %v3351_v27, %v2157_v26  ;;  %v2170_v17 = vor.u32 %v2169_v34, %v2168_v58  ;;  %v2173_v12 = vor.u32 %v2172_v31, %v2171_v52 }
 0x226   :  { %v1606_v6 = vsel %vm3852_vm13, %v3506_v45, %v1603_v10  ;;  %v2100_v42 = vshrl.u32 %v2099_v19, 30  ;;  %vm2175_vm9 = vcmp.lt.s32.totalorder %v2155_v4, 2  ;;  %vm2177_vm10 = vcmp.lt.s32.totalorder %v2155_v4, 4 }
 0x227   :  { %3195 = vcosq.f32 %v1606_v6  ;;  %v2179_v16 = vsel %vm2177_vm10, %v2167_v3, 2102212464  ;;  %v2182_v60 = vsel %vm2174_vm8, %v2161_v32, %v2164_v28  ;;  %v2183_v37 = vsel %vm2177_vm10, %v2170_v17, 920167782 }
 0x228   :  { %3197 = vsinq.f32 %v1606_v6  ;;  %v2101_v46 = vshll.u32 %v2100_v42, 30  ;;  %vm2176_vm12 = vcmp.lt.s32.totalorder %v2155_v4, 3  ;;  %v2178_v14 = vsel %vm2174_vm8, %v2158_v13, %v2161_v32 }
 0x229   :  { %v2184_v53 = vsel %vm2176_vm12, %v2167_v3, %v2183_v37  ;;  %v2186_v40 = vsel %vm2174_vm8, %v2164_v28, %v2167_v3  ;;  %v2187_v26 = vsel %vm2177_vm10, %v2173_v12, 1326507024  ;;  %v2190_v38 = vshll.u32 %v2150_v35, 8 }
 0x22a   :  { %v3936_v50 = vsub.s32 %v2098_v54, %v2101_v46  ;;  %v2180_v49 = vsel %vm2176_vm12, %v2164_v28, %v2179_v16  ;;  %v2185_v2 = vsel %vm2175_vm9, %v2182_v60, %v2184_v53  ;;  %v2188_v61 = vsel %vm2176_vm12, %v2170_v17, %v2187_v26 }
 0x22b   :  { %v2124_v44 = vsub.s32 4, %v2100_v42  ;;  %v2189_v55 = vsel %vm2175_vm9, %v2186_v40, %v2188_v61  ;;  %v3940_v8 = vmul.u32.u64.low %v2190_v38, %v2185_v2  ;;  %v3941_v33 = vmul.u32.u64.high %v2190_v38, %v2185_v2, %v3940_v8 }
 0x22c   :  { %v1612_v41 = vand.u32 3, %v1611_v39  ;;  %v2104_v47 = vsub.s32 0, %v3936_v50  ;;  %v3945_v1 = vmul.u32.u64.low %v2190_v38, %v2189_v55  ;;  %v3946_v48 = vmul.u32.u64.high %v2190_v38, %v2189_v55, %v3945_v1 }
 0x22d   :  { %vm2040_vm11 = vcmp.lt.s32.totalorder %v3487_v22, 0  ;;  %v2181_v35 = vsel %vm2175_vm9, %v2178_v14, %v2180_v49  ;;  %v2249_v32 = vand.u32 2139095040, %v3491_v24  ;;  %vm1610_vm13 = vweird.f32 %v3506_v45 }
 0x22e   :  { %v3067_v30 = vmin.u32 %v2104_v47, %v3936_v50  ;;  %v2125_v21 = vsel %vm2040_vm11, %v2124_v44, %v2100_v42  ;;  %v2200_v54 = vadd.s32 1, %v3941_v33  ;;  %v2246_v28 = vand.u32 2147483647, %v3491_v24 }
 0x22f   :  { %vm1613_vm14 = vcmp.lt.s32.totalorder %v1612_v41, 2  ;;  %vm1614_vm15 = vcmp.eq.s32.totalorder %v1612_v41, 0  ;;  %vm3959_vm0 = vcmp.le.f32.partialorder %v2038_v5, 0.7853982  ;;  %vm1617_vm1 = vcmp.eq.s32.totalorder %v1612_v41, 2 }
 0x230   :  { %v2106_v4 = vclz %v3067_v30  ;;  %v2197_v57 = vmul.u32 %v2190_v38, %v2181_v35  ;;  %vm2199_vm2 = vc.u32 %v3946_v48, %v3940_v8  ;;  %v2250_v34 = vshrl.u32 %v2249_v32, 23 }
 0x231   :  { %v3196_v58 = vpop.eup %3195  ;;  %v2127_v19 = vsel %vm3959_vm0, 0, %v2125_v21  ;;  %v2201_v3 = vsel %vm2199_vm2, %v2200_v54, %v3941_v33  ;;  %v2253_v17 = vand.u32 8388607, %v2246_v28  ;;  %v2094_v6 = vadd.s32 %v3891_v43, %v3900_v51 }
 0x232   :  { %v3198_v52 = vpop.eup %3197  ;;  %v1618_v31 = vxor.u32 2147483648, %v3196_v58  ;;  %v3068_v39 = vadd.s32 4294967294, %v2106_v4  ;;  %v2202_v10 = vadd.s32 %v2201_v3, %v2197_v57  ;;  %v3074_v13 = vadd.s32 4294967169, %v2250_v34 }
 0x233   :  { %v1615_v5 = vxor.u32 2147483648, %v3198_v52  ;;  %v2353_v42 = vand.u32 2139095040, %v3493_v25  ;;  %v2131_v26 = vadd.s32 3, %v2127_v19  ;;  %v2254_v2 = vor.u32 8388608, %v2253_v17 }
 0x234   :  { %v1619_v12 = vsel %vm1617_vm1, %v1618_v31, %v3198_v52  ;;  %vm3069_vm3 = vcmp.lt.s32.totalorder %v3068_v39, 0  ;;  %v2203_v37 = vadd.s32 536870912, %v2202_v10  ;;  %v2256_v46 = vadd.s32 1, %v3074_v13 }
 0x235   :  { %v1616_v16 = vsel %vm1614_vm15, %v3196_v58, %v1615_v5  ;;  %v2109_v60 = vsel %vm3069_vm3, 0, %v3068_v39  ;;  %v2354_v47 = vshrl.u32 %v2353_v42, 23  ;;  %v3978_v30 = vand.u32 3, %v2131_v26 }
 0x236   :  { %v1620_v14 = vsel %vm1613_vm14, %v1616_v16, %v1619_v12  ;;  %v2110_v53 = vsub.s32 32, %v2109_v60  ;;  %v2114_v40 = vsub.s32 4294967266, %v2109_v60  ;;  %v2204_v49 = vshrl.u32 %v2203_v37, 30 }
 0x237   :  { %v1621_v38 = vsel %vm1610_vm13, nan, %v1620_v14  ;;  %vm2257_vm4 = vcmp.gt.s32.totalorder %v2256_v46, 0  ;;  %v2111_v43 = vshll.u32 %v3936_v50, %v2109_v60  ;;  %vm2144_vm5 = vcmp.lt.s32.totalorder %v3489_v23, 0 }
 0x238   :  { %v2112_v51 = vshrl.u32 %v2094_v6, %v2110_v53  ;;  %v2115_v61 = vadd.s32 127, %v2114_v40  ;;  %v2258_v44 = vsel %vm2257_vm4, %v2256_v46, 0  ;;  %2873 = vst [vmem:[#allocation8 + $0x18] sm:$0xff] %v1621_v38  ;;  %v2205_v55 = vshll.u32 %v2204_v49, 30 }
 0x239   :  { %v2260_v33 = vand.u32 31, %v2258_v44  ;;  %v2198_v21 = vadd.s32 %v3940_v8, %v3946_v48  ;;  %v2228_v50 = vsub.s32 4, %v2204_v49  ;;  %v3983_v54 = vshll.u32 %v2254_v2, 8 }
 0x23a   :  { %v2113_v41 = vor.u32 %v2112_v51, %v2111_v43  ;;  %v2116_v1 = vshll.u32 %v2115_v61, 23  ;;  %v2206_v45 = vsub.s32 %v2202_v10, %v2205_v55  ;;  %v2259_v58 = vshrl.u32 %v2258_v44, 5 }
 0x23b   :  { %v2261_v35 = vsub.s32 32, %v2260_v33  ;;  %v3078_v34 = vadd.s32 4294967169, %v2354_v47  ;;  %v2263_v5 = vshll.u32 %v3351_v27, %v2260_v33  ;;  %v2266_v10 = vshll.u32 %v3352_v7, %v2260_v33 }
 0x23c   :  { %v2117_v32 = vor.u32 4788187, %v2116_v1  ;;  %v2208_v4 = vsub.s32 0, %v2206_v45  ;;  %v2120_v31 = vcvt.s32.f32 %v2113_v41  ;;  %v2269_v8 = vshll.u32 %v3353_v9, %v2260_v33 }
 0x23d   :  { %v2264_v57 = vshrl.u32 %v3352_v7, %v2261_v35  ;;  %v2267_v39 = vshrl.u32 %v3353_v9, %v2261_v35  ;;  %v2270_v19 = vshrl.u32 %v3354_v11, %v2261_v35  ;;  %v3993_v13 = vsel %vm2144_vm5, %v2228_v50, %v2204_v49 }
 0x23e   :  { %v2118_v52 = vand.u32 2147483647, %v2117_v32  ;;  %v3071_v3 = vmin.u32 %v2208_v4, %v2206_v45  ;;  %v2272_v17 = vshll.u32 %v3354_v11, %v2260_v33  ;;  %v2273_v12 = vshrl.u32 %v3355_v63, %v2261_v35 }
 0x23f   :  { %v2265_v42 = vor.u32 %v2264_v57, %v2263_v5  ;;  %v2268_v16 = vor.u32 %v2267_v39, %v2266_v10  ;;  %v2271_v60 = vor.u32 %v2270_v19, %v2269_v8  ;;  %v2275_v14 = vshll.u32 %v3355_v63, %v2260_v33 }
 0x240   :  { %v2121_v48 = vmul.f32 %v2120_v31, %v2118_v52  ;;  %v2210_v6 = vclz %v3071_v3  ;;  %v2274_v46 = vor.u32 %v2273_v12, %v2272_v17  ;;  %v2276_v53 = vshrl.u32 %v3356_v18, %v2261_v35 }
 0x241   :  { %v2262_v26 = vshrl.u32 %v3351_v27, %v2261_v35  ;;  %vm2278_vm6 = vcmp.lt.s32.totalorder %v2259_v58, 1  ;;  %vm2279_vm7 = vcmp.lt.s32.totalorder %v2259_v58, 2  ;;  %vm2280_vm8 = vcmp.lt.s32.totalorder %v2259_v58, 3 }
 0x242   :  { %v2122_v37 = vxor.u32 2147483648, %v2121_v48  ;;  %v3072_v40 = vadd.s32 4294967294, %v2210_v6  ;;  %v2277_v49 = vor.u32 %v2276_v53, %v2275_v14  ;;  %vm2281_vm9 = vcmp.lt.s32.totalorder %v2259_v58, 4 }
 0x243   :  { %v2282_v43 = vsel %vm2278_vm6, %v2262_v26, %v2265_v42  ;;  %v2283_v51 = vsel %vm2281_vm9, %v2271_v60, 2102212464  ;;  %v2286_v44 = vsel %vm2278_vm6, %v2265_v42, %v2268_v16  ;;  %v2287_v55 = vsel %vm2281_vm9, %v2274_v46, 920167782 }
 0x244   :  { %v2123_v38 = vsel %vm2040_vm11, %v2122_v37, %v2121_v48  ;;  %vm3073_vm10 = vcmp.lt.s32.totalorder %v3072_v40, 0  ;;  %v2284_v41 = vsel %vm2280_vm8, %v2268_v16, %v2283_v51  ;;  %v2288_v20 = vsel %vm2280_vm8, %v2271_v60, %v2287_v55 }
 0x245   :  { %v2126_v2 = vsel %vm3959_vm0, %v3487_v22, %v2123_v38  ;;  %v2213_v61 = vsel %vm3073_vm10, 0, %v3072_v40  ;;  %v2290_v35 = vsel %vm2278_vm6, %v2268_v16, %v2271_v60  ;;  %v2291_v32 = vsel %vm2281_vm9, %v2277_v49, 1326507024 }
 0x246   :  { %3199 = vcosq.f32 %v2126_v2  ;;  %v2214_v33 = vsub.s32 32, %v2213_v61  ;;  %v2218_v47 = vsub.s32 4294967266, %v2213_v61  ;;  %v2215_v1 = vshll.u32 %v2206_v45, %v2213_v61 }
 0x247   :  { %3201 = vsinq.f32 %v2126_v2  ;;  %v2289_v57 = vsel %vm2279_vm7, %v2286_v44, %v2288_v20  ;;  %v2292_v52 = vsel %vm2280_vm8, %v2274_v46, %v2291_v32  ;;  %v2285_v31 = vsel %vm2279_vm7, %v2282_v43, %v2284_v41 }
 0x248   :  { %v2216_v50 = vshrl.u32 %v2198_v21, %v2214_v33  ;;  %v2219_v4 = vadd.s32 127, %v2218_v47  ;;  %v2293_v39 = vsel %vm2279_vm7, %v2290_v35, %v2292_v52  ;;  %vm4028_vm12 = vcmp.le.f32.partialorder %v2142_v15, 0.7853982 }
 0x249   :  { %v4018_v19 = vmul.u32.u64.low %v3983_v54, %v2289_v57  ;;  %v4019_v3 = vmul.u32.u64.high %v3983_v54, %v2289_v57, %v4018_v19  ;;  %v4023_v10 = vmul.u32.u64.low %v3983_v54, %v2293_v39  ;;  %v4024_v8 = vmul.u32.u64.high %v3983_v54, %v2293_v39, %v4023_v10 }
 0x24a   :  { %v2217_v45 = vor.u32 %v2216_v50, %v2215_v1  ;;  %v2220_v5 = vshll.u32 %v2219_v4, 23  ;;  %v2360_v48 = vadd.s32 1, %v3078_v34  ;;  %vm2130_vm11 = vweird.f32 %v3487_v22 }
 0x24b   :  { %vm2133_vm13 = vcmp.lt.s32.totalorder %v3978_v30, 2  ;;  %v2231_v17 = vsel %vm4028_vm12, 0, %v3993_v13  ;;  %v2350_v12 = vand.u32 2147483647, %v3493_v25  ;;  %v2301_v6 = vmul.u32 %v3983_v54, %v2285_v31 }
 0x24c   :  { %v2221_v58 = vor.u32 4788187, %v2220_v5  ;;  %v2304_v42 = vadd.s32 1, %v4019_v3  ;;  %vm2361_vm14 = vcmp.gt.s32.totalorder %v2360_v48, 0  ;;  %v1061_v15 = vadd.f32 1e-06, %v3497_v29 }
 0x24d   :  { %v2224_v34 = vcvt.s32.f32 %v2217_v45  ;;  %vm2303_vm15 = vc.u32 %v4024_v8, %v4018_v19  ;;  %v2362_v60 = vsel %vm2361_vm14, %v2360_v48, 0  ;;  %vm2134_vm0 = vcmp.eq.s32.totalorder %v3978_v30, 0 }
 0x24e   :  { %v2222_v16 = vand.u32 2147483647, %v2221_v58  ;;  %vm2137_vm1 = vcmp.eq.s32.totalorder %v3978_v30, 2  ;;  %v2305_v13 = vsel %vm2303_vm15, %v2304_v42, %v4019_v3  ;;  %v2364_v46 = vand.u32 31, %v2362_v60 }
 0x24f   :  { %v2306_v40 = vadd.s32 %v2305_v13, %v2301_v6  ;;  %v2357_v29 = vand.u32 8388607, %v2350_v12  ;;  %v2235_v38 = vadd.s32 3, %v2231_v17  ;;  %3203 = vrcp.f32 %v1061_v15 }
 0x250   :  { %v3200_v37 = vpop.eup %3199  ;;  %v2225_v53 = vmul.f32 %v2224_v34, %v2222_v16  ;;  %v2365_v49 = vsub.s32 32, %v2364_v46  ;;  %v2367_v61 = vshll.u32 %v3351_v27, %v2364_v46  ;;  %v2370_v33 = vshll.u32 %v3352_v7, %v2364_v46 }
 0x251   :  { %v3202_v54 = vpop.eup %3201  ;;  %v2138_v14 = vxor.u32 2147483648, %v3200_v37  ;;  %v2307_v51 = vadd.s32 536870912, %v2306_v40  ;;  %v2363_v4 = vshrl.u32 %v2362_v60, 5  ;;  %v2373_v57 = vshll.u32 %v3353_v9, %v2364_v46 }
 0x252   :  { %v2135_v26 = vxor.u32 2147483648, %v3202_v54  ;;  %v2226_v43 = vxor.u32 2147483648, %v2225_v53  ;;  %v2368_v55 = vshrl.u32 %v3352_v7, %v2365_v49  ;;  %v2371_v47 = vshrl.u32 %v3353_v9, %v2365_v49 }
 0x253   :  { %v2139_v2 = vsel %vm2137_vm1, %v2138_v14, %v3202_v54  ;;  %v4058_v20 = vshrl.u32 %v2307_v51, 30  ;;  %v2374_v35 = vshrl.u32 %v3354_v11, %v2365_v49  ;;  %v2376_v3 = vshll.u32 %v3354_v11, %v2364_v46 }
 0x254   :  { %v2136_v44 = vsel %vm2134_vm0, %v3200_v37, %v2135_v26  ;;  %v2227_v1 = vsel %vm2144_vm5, %v2226_v43, %v2225_v53  ;;  %v2369_v52 = vor.u32 %v2368_v55, %v2367_v61  ;;  %v2372_v31 = vor.u32 %v2371_v47, %v2370_v33 }
 0x255   :  { %v2140_v41 = vsel %vm2133_vm13, %v2136_v44, %v2139_v2  ;;  %v2230_v50 = vsel %vm4028_vm12, %v3489_v23, %v2227_v1  ;;  %v2309_v30 = vshll.u32 %v4058_v20, 30  ;;  %v2375_v39 = vor.u32 %v2374_v35, %v2373_v57 }
 0x256   :  { %v2141_v32 = vsel %vm2130_vm11, nan, %v2140_v41  ;;  %3205 = vcosq.f32 %v2230_v50  ;;  %v2377_v22 = vshrl.u32 %v3355_v63, %v2365_v49  ;;  %v2379_v5 = vshll.u32 %v3355_v63, %v2364_v46 }
 0x257   :  { %2878 = vst [vmem:[#allocation8 + $0x40] sm:$0xff] %v2141_v32  ;;  %3207 = vsinq.f32 %v2230_v50  ;;  %v4070_v45 = vsub.s32 %v2306_v40, %v2309_v30  ;;  %v2380_v10 = vshrl.u32 %v3356_v18, %v2365_v49  ;;  %v2236_v21 = vand.u32 3, %v2235_v38 }
 0x258   :  { %v2358_v48 = vor.u32 8388608, %v2357_v29  ;;  %v2378_v58 = vor.u32 %v2377_v22, %v2376_v3  ;;  %vm2382_vm2 = vcmp.lt.s32.totalorder %v2363_v4, 1  ;;  %vm2385_vm3 = vcmp.lt.s32.totalorder %v2363_v4, 4 }
 0x259   :  { %v2312_v17 = vsub.s32 0, %v4070_v45  ;;  %v2381_v6 = vor.u32 %v2380_v10, %v2379_v5  ;;  %v3204_v42 = vpop.eup %3203  ;;  %vm2384_vm4 = vcmp.lt.s32.totalorder %v2363_v4, 3  ;;  %v2387_v15 = vsel %vm2385_vm3, %v2375_v39, 2102212464 }
 0x25a   :  { %v2390_v16 = vsel %vm2382_vm2, %v2369_v52, %v2372_v31  ;;  %v2391_v34 = vsel %vm2385_vm3, %v2378_v58, 920167782  ;;  %v2366_v37 = vshrl.u32 %v3351_v27, %v2365_v49  ;;  %vm2383_vm5 = vcmp.lt.s32.totalorder %v2363_v4, 2 }
 0x25b   :  { %v3075_v60 = vmin.u32 %v2312_v17, %v4070_v45  ;;  %v2392_v13 = vsel %vm2384_vm4, %v2375_v39, %v2391_v34  ;;  %v2394_v54 = vsel %vm2382_vm2, %v2372_v31, %v2375_v39  ;;  %v2395_v14 = vsel %vm2385_vm3, %v2381_v6, 1326507024 }
 0x25c   :  { %v2393_v46 = vsel %vm2383_vm5, %v2390_v16, %v2392_v13  ;;  %v2398_v53 = vshll.u32 %v2358_v48, 8  ;;  %vm2234_vm6 = vweird.f32 %v3489_v23  ;;  %v2386_v29 = vsel %vm2382_vm2, %v2366_v37, %v2369_v52  ;;  %v1162_v13 = vld [vmem:[#allocation5 + $0x20] sm:$0xff] }
 0x25d   :  { %v2314_v40 = vclz %v3075_v60  ;;  %v2388_v26 = vsel %vm2384_vm4, %v2372_v31, %v2387_v15  ;;  %vm2237_vm7 = vcmp.lt.s32.totalorder %v2236_v21, 2  ;;  %v2396_v38 = vsel %vm2384_vm4, %v2378_v58, %v2395_v14 }
 0x25e   :  { %v4085_v49 = vmul.u32.u64.low %v2398_v53, %v2393_v46  ;;  %v4086_v2 = vmul.u32.u64.high %v2398_v53, %v2393_v46, %v4085_v49  ;;  %vm2238_vm8 = vcmp.eq.s32.totalorder %v2236_v21, 0  ;;  %v2397_v61 = vsel %vm2383_vm5, %v2394_v54, %v2396_v38 }
 0x25f   :  { %v3076_v51 = vadd.s32 4294967294, %v2314_v40  ;;  %v1065_v44 = vmul.f32 6.2831855, %v3204_v42  ;;  %v2389_v47 = vsel %vm2383_vm5, %v2386_v29, %v2388_v26  ;;  %vm2241_vm9 = vcmp.eq.s32.totalorder %v2236_v21, 2 }
 0x260   :  { %v3206_v43 = vpop.eup %3205  ;;  %v4091_v41 = vmul.u32.u64.low %v2398_v53, %v2397_v61  ;;  %v4092_v1 = vmul.u32.u64.high %v2398_v53, %v2397_v61, %v4091_v41  ;;  %v2302_v57 = vadd.s32 %v4018_v19, %v4024_v8  ;;  %v2408_v52 = vadd.s32 1, %v4086_v2 }
 0x261   :  { %v3208_v55 = vpop.eup %3207  ;;  %v2242_v33 = vxor.u32 2147483648, %v3206_v43  ;;  %vm3077_vm10 = vcmp.lt.s32.totalorder %v3076_v51, 0  ;;  %v1067_v32 = vmul.f32 %v1065_v44, %v3464_v36  ;;  %v2405_v3 = vmul.u32 %v2398_v53, %v2389_v47  ;;  %v1163_v53 = vld [vmem:[#allocation5 + $0x28] sm:$0xff] }
 0x262   :  { %v2239_v35 = vxor.u32 2147483648, %v3208_v55  ;;  %v2317_v30 = vsel %vm3077_vm10, 0, %v3076_v51  ;;  %vm2407_vm12 = vc.u32 %v4092_v1, %v4085_v49  ;;  %vm2248_vm11 = vcmp.lt.s32.totalorder %v3491_v24, 0  ;;  %v1187_v41 = vld [vmem:[#allocation7 + $0x28] sm:$0xff] }
 0x263   :  { %v2243_v50 = vsel %vm2241_vm9, %v2242_v33, %v3208_v55  ;;  %v2318_v39 = vsub.s32 32, %v2317_v30  ;;  %v2322_v4 = vsub.s32 4294967266, %v2317_v30  ;;  %v2319_v5 = vshll.u32 %v4070_v45, %v2317_v30  ;;  %v1186_v55 = vld [vmem:[#allocation7 + $0x20] sm:$0xff]  ;;  %v4132_v33 = vld [vmem:[#allocation5 + $0x38] sm:$0xff] }
 0x264   :  { %v2240_v31 = vsel %vm2238_vm8, %v3206_v43, %v2239_v35  ;;  %v1115_v36 = vcombine.low %v3466_v56, %v1067_v32  ;;  %v2409_v48 = vsel %vm2407_vm12, %v2408_v52, %v4086_v2  ;;  %v2332_v45 = vsub.s32 4, %v4058_v20 }
 0x265   :  { %v2244_v22 = vsel %vm2237_vm7, %v2240_v31, %v2243_v50  ;;  %v2320_v8 = vshrl.u32 %v2302_v57, %v2318_v39  ;;  %v2323_v10 = vadd.s32 127, %v2322_v4  ;;  %v2410_v58 = vadd.s32 %v2409_v48, %v2405_v3  ;;  %v1188_v4 = vld [vmem:[#allocation7 + $0x30] sm:$0xff]  ;;  %v4153_v3 = vld [vmem:[#allocation7 + $0x38] sm:$0xff] }
 0x266   :  { %v2245_v19 = vsel %vm2234_vm6, nan, %v2244_v22  ;;  %v1122_v17 = vrot.slane %v1115_v36, %v3433_v59  ;;  %v2333_v14 = vsel %vm2248_vm11, %v2332_v45, %v4058_v20  ;;  %vm4123_vm13 = vcmp.le.f32.partialorder %v2246_v28, 0.7853982  ;;  %v1164_v20 = vld [vmem:[#allocation5 + $0x30] sm:$0xff] }
 0x267   :  { %2879 = vst [vmem:[#allocation8 + $0x48] sm:$0xff] %v2245_v19  ;;  %v2321_v21 = vor.u32 %v2320_v8, %v2319_v5  ;;  %v2324_v6 = vshll.u32 %v2323_v10, 23  ;;  %v2411_v42 = vadd.s32 536870912, %v2410_v58  ;;  %v2335_v51 = vsel %vm4123_vm13, 0, %v2333_v14 }
 0x268   :  { %v1123_v15 = vcombine.high %v1122_v17, %v1122_v17  ;;  %v1130_v16 = vrot.slane %v1122_v17, %v3433_v59  ;;  %vm4136_vm14 = vcmp.le.f32.partialorder %v2350_v12, 0.7853982  ;;  %vm2352_vm15 = vcmp.lt.s32.totalorder %v3493_v25, 0 }
 0x269   :  { %v2325_v56 = vor.u32 4788187, %v2324_v6  ;;  %v2412_v23 = vshrl.u32 %v2411_v42, 30  ;;  %v2328_v54 = vcvt.s32.f32 %v2321_v21  ;;  %v2339_v30 = vadd.s32 3, %v2335_v51 }
 0x26a   :  { %v1137_v34 = vrot.slane %v1123_v15, %v3433_v59  ;;  %v1141_v60 = vrot.slane %v1130_v16, %v3470_v62  ;;  %v4114_v37 = vrot.slane %v1130_v16, %v3473_v0  ;;  %vm2338_vm2 = vweird.f32 %v3491_v24 }
 0x26b   :  { %v2326_v46 = vand.u32 2147483647, %v2325_v56  ;;  %v2413_v40 = vshll.u32 %v2412_v23, 30  ;;  %v2436_v2 = vsub.s32 4, %v2412_v23  ;;  %v2340_v17 = vand.u32 3, %v2339_v30 }
 0x26c   :  { %v1149_v29 = vrot.slane %v1137_v34, %v3470_v62  ;;  %v1153_v26 = vrot.slane %v1137_v34, %v3473_v0  ;;  %v1170_v43 = vmul.f32 %v1162_v13, %v1141_v60  ;;  %v1171_v44 = vmul.f32 %v1163_v53, %v4114_v37 }
 0x26d   :  { %v2329_v38 = vmul.f32 %v2328_v54, %v2326_v46  ;;  %v4129_v61 = vsub.s32 %v2410_v58, %v2413_v40  ;;  %v2437_v52 = vsel %vm2352_vm15, %v2436_v2, %v2412_v23  ;;  %v1172_v58 = vmul.f32 %v1164_v20, %v1141_v60 }
 0x26e   :  { %v1178_v62 = vmul.f32 %v1162_v13, %v1149_v29  ;;  %v1179_v28 = vmul.f32 %v1163_v53, %v1153_v26  ;;  %v1180_v47 = vmul.f32 %v1164_v20, %v1149_v29  ;;  %v1181_v50 = vmul.f32 %v4132_v33, %v1153_v26 }
 0x26f   :  { %v2330_v0 = vxor.u32 2147483648, %v2329_v38  ;;  %v2416_v32 = vsub.s32 0, %v4129_v61  ;;  %v4147_v31 = vadd.f32 %v1186_v55, %v1170_v43  ;;  %v4155_v22 = vadd.f32 %v1187_v41, %v1171_v44 }
 0x270   :  { %v4157_v5 = vadd.f32 %v1186_v55, %v1178_v62  ;;  %v4159_v36 = vadd.f32 %v1187_v41, %v1179_v28  ;;  %v4161_v19 = vadd.f32 %v1188_v4, %v1180_v47  ;;  %v4164_v8 = vadd.f32 %v4153_v3, %v1181_v50 }
 0x271   :  { %v2331_v57 = vsel %vm2248_vm11, %v2330_v0, %v2329_v38  ;;  %v3079_v39 = vmin.u32 %v2416_v32, %v4129_v61  ;;  %v2439_v48 = vsel %vm4136_vm14, 0, %v2437_v52  ;;  %v1622_v21 = vand.u32 2147483647, %v4147_v31 }
 0x272   :  { %v2334_v12 = vsel %vm4123_vm13, %v3491_v24, %v2331_v57  ;;  %v1625_v6 = vand.u32 2139095040, %v4147_v31  ;;  %v1726_v42 = vand.u32 2147483647, %v4155_v22  ;;  %v2443_v15 = vadd.s32 3, %v2439_v48 }
 0x273   :  { %3209 = vcosq.f32 %v2334_v12  ;;  %v2418_v10 = vclz %v3079_v39  ;;  %v1629_v56 = vand.u32 8388607, %v1622_v21  ;;  %v1729_v23 = vand.u32 2139095040, %v4155_v22 }
 0x274   :  { %3211 = vsinq.f32 %v2334_v12  ;;  %v1626_v16 = vshrl.u32 %v1625_v6, 23  ;;  %v4174_v34 = vadd.f32 %v1188_v4, %v1172_v58  ;;  %v4178_v60 = vand.u32 8388607, %v1726_v42 }
 0x275   :  { %v3080_v45 = vadd.s32 4294967294, %v2418_v10  ;;  %vm2341_vm1 = vcmp.lt.s32.totalorder %v2340_v17, 2  ;;  %v1630_v54 = vor.u32 8388608, %v1629_v56  ;;  %v1730_v14 = vshrl.u32 %v1729_v23, 23 }
 0x276   :  { %v3050_v46 = vadd.s32 4294967169, %v1626_v16  ;;  %vm2342_vm3 = vcmp.eq.s32.totalorder %v2340_v17, 0  ;;  %v2406_v53 = vadd.s32 %v4085_v49, %v4092_v1  ;;  %vm2345_vm4 = vcmp.eq.s32.totalorder %v2340_v17, 2 }
 0x277   :  { %vm3081_vm0 = vcmp.lt.s32.totalorder %v3080_v45, 0  ;;  %v4183_v26 = vand.u32 3, %v2443_v15  ;;  %v3054_v38 = vadd.s32 4294967169, %v1730_v14  ;;  %v1734_v20 = vor.u32 8388608, %v4178_v60 }
 0x278   :  { %v2421_v13 = vsel %vm3081_vm0, 0, %v3080_v45  ;;  %v1632_v59 = vadd.s32 1, %v3050_v46  ;;  %v4187_v62 = vshll.u32 %v1630_v54, 8  ;;  %v1833_v49 = vand.u32 2139095040, %v4174_v34 }
 0x279   :  { %v2422_v40 = vsub.s32 32, %v2421_v13  ;;  %v2426_v29 = vsub.s32 4294967266, %v2421_v13  ;;  %v2423_v2 = vshll.u32 %v4129_v61, %v2421_v13  ;;  %v1736_v55 = vadd.s32 1, %v3054_v38 }
 0x27a   :  { %vm1633_vm5 = vcmp.gt.s32.totalorder %v1632_v59, 0  ;;  %vm2449_vm12 = vcmp.eq.s32.totalorder %v4183_v26, 2  ;;  %vm2446_vm11 = vcmp.eq.s32.totalorder %v4183_v26, 0  ;;  %vm2445_vm13 = vcmp.lt.s32.totalorder %v4183_v26, 2 }
 0x27b   :  { %v2424_v43 = vshrl.u32 %v2406_v53, %v2422_v40  ;;  %v2427_v51 = vadd.s32 127, %v2426_v29  ;;  %v1634_v41 = vsel %vm1633_vm5, %v1632_v59, 0  ;;  %vm1737_vm6 = vcmp.gt.s32.totalorder %v1736_v55, 0 }
 0x27c   :  { %v1635_v50 = vshrl.u32 %v1634_v41, 5  ;;  %v1636_v57 = vand.u32 31, %v1634_v41  ;;  %v1738_v12 = vsel %vm1737_vm6, %v1736_v55, 0 }
 0x27d   :  { %v3210_v44 = vpop.eup %3209  ;;  %v2425_v28 = vor.u32 %v2424_v43, %v2423_v2  ;;  %v2428_v47 = vshll.u32 %v2427_v51, 23 }
 0x27e   :  { %v3212_v1 = vpop.eup %3211  ;;  %v2346_v0 = vxor.u32 2147483648, %v3210_v44  ;;  %v1637_v4 = vsub.s32 32, %v1636_v57  ;;  %v1639_v10 = vshll.u32 %v3351_v27, %v1636_v57  ;;  %v1642_v48 = vshll.u32 %v3352_v7, %v1636_v57 }
 0x27f   :  { %v2343_v32 = vxor.u32 2147483648, %v3212_v1  ;;  %v2429_v30 = vor.u32 4788187, %v2428_v47  ;;  %v2432_v52 = vcvt.s32.f32 %v2425_v28  ;;  %v1645_v45 = vshll.u32 %v3353_v9, %v1636_v57 }
 0x280   :  { %v2347_v61 = vsel %vm2345_vm4, %v2346_v0, %v3212_v1  ;;  %v1648_v15 = vshll.u32 %v3354_v11, %v1636_v57  ;;  %v1638_v56 = vshrl.u32 %v3351_v27, %v1637_v4  ;;  %v1640_v23 = vshrl.u32 %v3352_v7, %v1637_v4 }
 0x281   :  { %v2344_v39 = vsel %vm2342_vm3, %v3210_v44, %v2343_v32  ;;  %v2430_v6 = vand.u32 2147483647, %v2429_v30  ;;  %v1643_v13 = vshrl.u32 %v3353_v9, %v1637_v4  ;;  %v1646_v54 = vshrl.u32 %v3354_v11, %v1637_v4 }
 0x282   :  { %v2348_v58 = vsel %vm2341_vm1, %v2344_v39, %v2347_v61  ;;  %v1649_v17 = vshrl.u32 %v3355_v63, %v1637_v4  ;;  %v1651_v14 = vshll.u32 %v3355_v63, %v1636_v57  ;;  %v1641_v53 = vor.u32 %v1640_v23, %v1639_v10 }
 0x283   :  { %v2349_v16 = vsel %vm2338_vm2, nan, %v2348_v58  ;;  %v2433_v46 = vmul.f32 %v2432_v52, %v2430_v6  ;;  %v1644_v40 = vor.u32 %v1643_v13, %v1642_v48  ;;  %v1652_v29 = vshrl.u32 %v3356_v18, %v1637_v4 }
 0x284   :  { %2880 = vst [vmem:[#allocation8 + $0x50] sm:$0xff] %v2349_v16  ;;  %vm1654_vm7 = vcmp.lt.s32.totalorder %v1635_v50, 1  ;;  %v1647_v59 = vor.u32 %v1646_v54, %v1645_v45  ;;  %v1650_v38 = vor.u32 %v1649_v17, %v1648_v15  ;;  %vm1655_vm8 = vcmp.lt.s32.totalorder %v1635_v50, 2 }
 0x285   :  { %v2434_v24 = vxor.u32 2147483648, %v2433_v46  ;;  %v1653_v2 = vor.u32 %v1652_v29, %v1651_v14  ;;  %vm1656_vm9 = vcmp.lt.s32.totalorder %v1635_v50, 3  ;;  %vm1657_vm10 = vcmp.lt.s32.totalorder %v1635_v50, 4 }
 0x286   :  { %v1658_v43 = vsel %vm1654_vm7, %v1638_v56, %v1641_v53  ;;  %v1659_v44 = vsel %vm1657_vm10, %v1647_v59, 2102212464  ;;  %v1662_v55 = vsel %vm1654_vm7, %v1641_v53, %v1644_v40  ;;  %v1663_v1 = vsel %vm1657_vm10, %v1650_v38, 920167782 }
 0x287   :  { %v2435_v51 = vsel %vm2352_vm15, %v2434_v24, %v2433_v46  ;;  %v1660_v28 = vsel %vm1656_vm9, %v1644_v40, %v1659_v44  ;;  %v1664_v47 = vsel %vm1656_vm9, %v1647_v59, %v1663_v1  ;;  %v1666_v41 = vsel %vm1654_vm7, %v1644_v40, %v1647_v59 }
 0x288   :  { %v2438_v0 = vsel %vm4136_vm14, %v3493_v25, %v2435_v51  ;;  %v1661_v32 = vsel %vm1655_vm8, %v1658_v43, %v1660_v28  ;;  %v1665_v57 = vsel %vm1655_vm8, %v1662_v55, %v1664_v47  ;;  %v1667_v61 = vsel %vm1657_vm10, %v1653_v2, 1326507024 }
 0x289   :  { %3213 = vcosq.f32 %v2438_v0  ;;  %v1668_v30 = vsel %vm1656_vm9, %v1650_v38, %v1667_v61  ;;  %v4220_v52 = vmul.u32.u64.low %v4187_v62, %v1665_v57  ;;  %v4221_v39 = vmul.u32.u64.high %v4187_v62, %v1665_v57, %v4220_v52 }
 0x28a   :  { %3215 = vsinq.f32 %v2438_v0  ;;  %v1669_v35 = vsel %vm1655_vm8, %v1666_v41, %v1668_v30  ;;  %v1740_v4 = vand.u32 31, %v1738_v12  ;;  %v4227_v10 = vmul.f32 %v4132_v33, %v4114_v37 }
 0x28b   :  { %v4230_v48 = vmul.u32.u64.low %v4187_v62, %v1669_v35  ;;  %v4231_v58 = vmul.u32.u64.high %v4187_v62, %v1669_v35, %v4230_v48  ;;  %v4235_v6 = vshll.u32 %v1734_v20, 8  ;;  %v1677_v45 = vmul.u32 %v4187_v62, %v1661_v32 }
 0x28c   :  { %v4239_v15 = vshrl.u32 %v1738_v12, 5  ;;  %v1741_v50 = vsub.s32 32, %v1740_v4  ;;  %v1834_v16 = vshrl.u32 %v1833_v49, 23  ;;  %v1680_v37 = vadd.s32 1, %v4221_v39 }
 0x28d   :  { %v1743_v33 = vshll.u32 %v3351_v27, %v1740_v4  ;;  %v1746_v60 = vshll.u32 %v3352_v7, %v1740_v4  ;;  %v1749_v20 = vshll.u32 %v3353_v9, %v1740_v4  ;;  %v1752_v49 = vshll.u32 %v3354_v11, %v1740_v4 }
 0x28e   :  { %v1744_v62 = vshrl.u32 %v3352_v7, %v1741_v50  ;;  %v1747_v12 = vshrl.u32 %v3353_v9, %v1741_v50  ;;  %v1750_v56 = vshrl.u32 %v3354_v11, %v1741_v50  ;;  %vm2442_vm14 = vweird.f32 %v3493_v25 }
 0x28f   :  { %vm1679_vm15 = vc.u32 %v4231_v58, %v4220_v52  ;;  %v1753_v23 = vshrl.u32 %v3355_v63, %v1741_v50  ;;  %v1755_v13 = vshll.u32 %v3355_v63, %v1740_v4  ;;  %v1756_v46 = vshrl.u32 %v3356_v18, %v1741_v50 }
 0x290   :  { %v1681_v54 = vsel %vm1679_vm15, %v1680_v37, %v4221_v39  ;;  %v1745_v17 = vor.u32 %v1744_v62, %v1743_v33  ;;  %v1748_v14 = vor.u32 %v1747_v12, %v1746_v60  ;;  %v1751_v53 = vor.u32 %v1750_v56, %v1749_v20 }
 0x291   :  { %v1682_v40 = vadd.s32 %v1681_v54, %v1677_v45  ;;  %v1742_v29 = vshrl.u32 %v3351_v27, %v1741_v50  ;;  %v1754_v24 = vor.u32 %v1753_v23, %v1752_v49  ;;  %vm1758_vm0 = vcmp.lt.s32.totalorder %v4239_v15, 1 }
 0x292   :  { %v1757_v38 = vor.u32 %v1756_v46, %v1755_v13  ;;  %vm1759_vm1 = vcmp.lt.s32.totalorder %v4239_v15, 2  ;;  %vm1761_vm2 = vcmp.lt.s32.totalorder %v4239_v15, 4  ;;  %v1766_v2 = vsel %vm1758_vm0, %v1745_v17, %v1748_v14 }
 0x293   :  { %v3214_v59 = vpop.eup %3213  ;;  %v1683_v44 = vadd.s32 536870912, %v1682_v40  ;;  %vm1760_vm3 = vcmp.lt.s32.totalorder %v4239_v15, 3  ;;  %v1767_v55 = vsel %vm1761_vm2, %v1754_v24, 920167782  ;;  %v1762_v0 = vsel %vm1758_vm0, %v1742_v29, %v1745_v17 }
 0x294   :  { %v3216_v43 = vpop.eup %3215  ;;  %v2450_v51 = vxor.u32 2147483648, %v3214_v59  ;;  %v1763_v28 = vsel %vm1761_vm2, %v1751_v53, 2102212464  ;;  %v1768_v47 = vsel %vm1760_vm3, %v1751_v53, %v1767_v55  ;;  %v1770_v61 = vsel %vm1758_vm0, %v1748_v14, %v1751_v53 }
 0x295   :  { %v2447_v1 = vxor.u32 2147483648, %v3216_v43  ;;  %v1684_v32 = vshrl.u32 %v1683_v44, 30  ;;  %v1769_v57 = vsel %vm1759_vm1, %v1766_v2, %v1768_v47  ;;  %v1771_v39 = vsel %vm1761_vm2, %v1757_v38, 1326507024 }
 0x296   :  { %v2451_v41 = vsel %vm2449_vm12, %v2450_v51, %v3216_v43  ;;  %v4286_v35 = vmul.u32.u64.low %v4235_v6, %v1769_v57  ;;  %v4287_v4 = vmul.u32.u64.high %v4235_v6, %v1769_v57, %v4286_v35  ;;  %v1764_v50 = vsel %vm1760_vm3, %v1748_v14, %v1763_v28 }
 0x297   :  { %v2448_v30 = vsel %vm2446_vm11, %v3214_v59, %v2447_v1  ;;  %v1685_v45 = vshll.u32 %v1684_v32, 30  ;;  %v1772_v37 = vsel %vm1760_vm3, %v1754_v24, %v1771_v39  ;;  %v1708_v60 = vsub.s32 4, %v1684_v32 }
 0x298   :  { %v2452_v48 = vsel %vm2445_vm13, %v2448_v30, %v2451_v41  ;;  %v1773_v20 = vsel %vm1759_vm1, %v1770_v61, %v1772_v37  ;;  %v3058_v62 = vadd.s32 4294967169, %v1834_v16  ;;  %v1830_v49 = vand.u32 2147483647, %v4174_v34 }
 0x299   :  { %v2453_v33 = vsel %vm2442_vm14, nan, %v2452_v48  ;;  %v1686_v12 = vsub.s32 %v1682_v40, %v1685_v45  ;;  %v4301_v26 = vmul.u32.u64.low %v4235_v6, %v1773_v20  ;;  %v4302_v56 = vmul.u32.u64.high %v4235_v6, %v1773_v20, %v4301_v26 }
 0x29a   :  { %2881 = vst [vmem:[#allocation8 + $0x58] sm:$0xff] %v2453_v33  ;;  %v1784_v23 = vadd.s32 1, %v4287_v4  ;;  %v1840_v13 = vadd.s32 1, %v3058_v62  ;;  %v4308_v25 = vadd.f32 %v4153_v3, %v4227_v10  ;;  %vm1624_vm4 = vcmp.lt.s32.totalorder %v4147_v31, 0 }
 0x29b   :  { %v1688_v46 = vsub.s32 0, %v1686_v12  ;;  %v1765_v16 = vsel %vm1759_vm1, %v1762_v0, %v1764_v50  ;;  %v1709_v54 = vsel %vm1624_vm4, %v1708_v60, %v1684_v32  ;;  %vm1783_vm6 = vc.u32 %v4302_v56, %v4286_v35 }
 0x29c   :  { %vm1841_vm5 = vcmp.gt.s32.totalorder %v1840_v13, 0  ;;  %v1837_v14 = vand.u32 8388607, %v1830_v49  ;;  %vm4321_vm7 = vcmp.le.f32.partialorder %v1622_v21, 0.7853982  ;;  %v1781_v10 = vmul.u32 %v4235_v6, %v1765_v16 }
 0x29d   :  { %v3051_v17 = vmin.u32 %v1688_v46, %v1686_v12  ;;  %v1785_v15 = vsel %vm1783_vm6, %v1784_v23, %v4287_v4  ;;  %v1842_v53 = vsel %vm1841_vm5, %v1840_v13, 0  ;;  %v1711_v29 = vsel %vm4321_vm7, 0, %v1709_v54 }
 0x29e   :  { %v1937_v24 = vand.u32 2139095040, %v4308_v25  ;;  %v1786_v59 = vadd.s32 %v1785_v15, %v1781_v10  ;;  %v1844_v38 = vand.u32 31, %v1842_v53  ;;  %v1678_v2 = vadd.s32 %v4220_v52, %v4231_v58 }
 0x29f   :  { %v1690_v40 = vclz %v3051_v17  ;;  %v1838_v43 = vor.u32 8388608, %v1837_v14  ;;  %v1715_v51 = vadd.s32 3, %v1711_v29  ;;  %v1934_v6 = vand.u32 2147483647, %v4308_v25 }
 0x2a0   :  { %v1787_v44 = vadd.s32 536870912, %v1786_v59  ;;  %v1845_v55 = vsub.s32 32, %v1844_v38  ;;  %v4333_v1 = vshrl.u32 %v1842_v53, 5  ;;  %v1847_v0 = vshll.u32 %v3351_v27, %v1844_v38 }
 0x2a1   :  { %v3052_v21 = vadd.s32 4294967294, %v1690_v40  ;;  %v1938_v28 = vshrl.u32 %v1937_v24, 23  ;;  %v1850_v57 = vshll.u32 %v3352_v7, %v1844_v38  ;;  %vm1728_vm9 = vcmp.lt.s32.totalorder %v4155_v22, 0 }
 0x2a2   :  { %v1788_v41 = vshrl.u32 %v1787_v44, 30  ;;  %v1848_v32 = vshrl.u32 %v3352_v7, %v1845_v55  ;;  %v1851_v61 = vshrl.u32 %v3353_v9, %v1845_v55  ;;  %v1853_v30 = vshll.u32 %v3353_v9, %v1844_v38 }
 0x2a3   :  { %vm3053_vm8 = vcmp.lt.s32.totalorder %v3052_v21, 0  ;;  %v1854_v4 = vshrl.u32 %v3354_v11, %v1845_v55  ;;  %v1856_v48 = vshll.u32 %v3354_v11, %v1844_v38  ;;  %v1859_v45 = vshll.u32 %v3355_v63, %v1844_v38 }
 0x2a4   :  { %v1693_v47 = vsel %vm3053_vm8, 0, %v3052_v21  ;;  %v1789_v39 = vshll.u32 %v1788_v41, 30  ;;  %v1857_v60 = vshrl.u32 %v3355_v63, %v1845_v55  ;;  %v1849_v62 = vor.u32 %v1848_v32, %v1847_v0 }
 0x2a5   :  { %v1694_v52 = vsub.s32 32, %v1693_v47  ;;  %v1698_v58 = vsub.s32 4294967266, %v1693_v47  ;;  %v1695_v50 = vshll.u32 %v1686_v12, %v1693_v47  ;;  %v1852_v26 = vor.u32 %v1851_v61, %v1850_v57 }
 0x2a6   :  { %v4345_v20 = vsub.s32 %v1786_v59, %v1789_v39  ;;  %v1860_v23 = vshrl.u32 %v3356_v18, %v1845_v55  ;;  %vm4350_vm10 = vcmp.le.f32.partialorder %v1726_v42, 0.7853982  ;;  %v1855_v54 = vor.u32 %v1854_v4, %v1853_v30 }
 0x2a7   :  { %v1696_v37 = vshrl.u32 %v1678_v2, %v1694_v52  ;;  %v1699_v33 = vadd.s32 127, %v1698_v58  ;;  %v1858_v12 = vor.u32 %v1857_v60, %v1856_v48  ;;  %v4354_v17 = vand.u32 3, %v1715_v51 }
 0x2a8   :  { %v1792_v14 = vsub.s32 0, %v4345_v20  ;;  %v1812_v10 = vsub.s32 4, %v1788_v41  ;;  %v1878_v15 = vshll.u32 %v1838_v43, 8  ;;  %v1846_v40 = vshrl.u32 %v3351_v27, %v1845_v55 }
 0x2a9   :  { %v1697_v13 = vor.u32 %v1696_v37, %v1695_v50  ;;  %v1700_v46 = vshll.u32 %v1699_v33, 23  ;;  %v1861_v29 = vor.u32 %v1860_v23, %v1859_v45  ;;  %v3062_v24 = vadd.s32 4294967169, %v1938_v28 }
 0x2aa   :  { %v3055_v38 = vmin.u32 %v1792_v14, %v4345_v20  ;;  %vm1862_vm12 = vcmp.lt.s32.totalorder %v4333_v1, 1  ;;  %vm1865_vm11 = vcmp.lt.s32.totalorder %v4333_v1, 4  ;;  %v1813_v44 = vsel %vm1728_vm9, %v1812_v10, %v1788_v41 }
 0x2ab   :  { %v1701_v53 = vor.u32 4788187, %v1700_v46  ;;  %v1704_v59 = vcvt.s32.f32 %v1697_v13  ;;  %v1867_v2 = vsel %vm1865_vm11, %v1855_v54, 2102212464  ;;  %v1870_v21 = vsel %vm1862_vm12, %v1849_v62, %v1852_v26 }
 0x2ac   :  { %v1871_v43 = vsel %vm1865_vm11, %v1858_v12, 920167782  ;;  %v1794_v51 = vclz %v3055_v38  ;;  %vm1863_vm13 = vcmp.lt.s32.totalorder %v4333_v1, 2  ;;  %vm1864_vm14 = vcmp.lt.s32.totalorder %v4333_v1, 3 }
 0x2ad   :  { %v1702_v42 = vand.u32 2147483647, %v1701_v53  ;;  %v1866_v0 = vsel %vm1862_vm12, %v1846_v40, %v1849_v62  ;;  %v1872_v28 = vsel %vm1864_vm14, %v1855_v54, %v1871_v43  ;;  %v1874_v47 = vsel %vm1862_vm12, %v1852_v26, %v1855_v54 }
 0x2ae   :  { %v3056_v32 = vadd.s32 4294967294, %v1794_v51  ;;  %v1868_v57 = vsel %vm1864_vm14, %v1852_v26, %v1867_v2  ;;  %v1873_v52 = vsel %vm1863_vm13, %v1870_v21, %v1872_v28  ;;  %v1875_v58 = vsel %vm1865_vm11, %v1861_v29, 1326507024 }
 0x2af   :  { %v1705_v55 = vmul.f32 %v1704_v59, %v1702_v42  ;;  %v1876_v30 = vsel %vm1864_vm14, %v1858_v12, %v1875_v58  ;;  %v4373_v39 = vmul.u32.u64.low %v1878_v15, %v1873_v52  ;;  %v4374_v41 = vmul.u32.u64.high %v1878_v15, %v1873_v52, %v4373_v39 }
 0x2b0   :  { %v1782_v4 = vadd.s32 %v4286_v35, %v4302_v56  ;;  %vm3057_vm15 = vcmp.lt.s32.totalorder %v3056_v32, 0  ;;  %v1815_v48 = vsel %vm4350_vm10, 0, %v1813_v44  ;;  %v1877_v45 = vsel %vm1863_vm13, %v1874_v47, %v1876_v30 }
 0x2b1   :  { %v1706_v61 = vxor.u32 2147483648, %v1705_v55  ;;  %v1797_v37 = vsel %vm3057_vm15, 0, %v3056_v32  ;;  %v4385_v33 = vmul.u32.u64.low %v1878_v15, %v1877_v45  ;;  %v4386_v60 = vmul.u32.u64.high %v1878_v15, %v1877_v45, %v4385_v33 }
 0x2b2   :  { %v1798_v26 = vsub.s32 32, %v1797_v37  ;;  %v1802_v35 = vsub.s32 4294967266, %v1797_v37  ;;  %v1869_v56 = vsel %vm1863_vm13, %v1866_v0, %v1868_v57  ;;  %v1888_v23 = vadd.s32 1, %v4374_v41 }
 0x2b3   :  { %v1707_v50 = vsel %vm1624_vm4, %v1706_v61, %v1705_v55  ;;  %v1941_v13 = vand.u32 8388607, %v1934_v6  ;;  %v1944_v46 = vadd.s32 1, %v3062_v24  ;;  %v1799_v54 = vshll.u32 %v4345_v20, %v1797_v37 }
 0x2b4   :  { %v1710_v62 = vsel %vm4321_vm7, %v4147_v31, %v1707_v50  ;;  %v1800_v12 = vshrl.u32 %v1782_v4, %v1798_v26  ;;  %v1803_v14 = vadd.s32 127, %v1802_v35  ;;  %v1819_v10 = vadd.s32 3, %v1815_v48 }
 0x2b5   :  { %3217 = vcosq.f32 %v1710_v62  ;;  %v1885_v3 = vmul.u32 %v1878_v15, %v1869_v56  ;;  %vm1887_vm0 = vc.u32 %v4386_v60, %v4373_v39  ;;  %vm1945_vm1 = vcmp.gt.s32.totalorder %v1944_v46, 0 }
 0x2b6   :  { %3219 = vsinq.f32 %v1710_v62  ;;  %v1801_v1 = vor.u32 %v1800_v12, %v1799_v54  ;;  %v1804_v53 = vshll.u32 %v1803_v14, 23  ;;  %v1889_v40 = vsel %vm1887_vm0, %v1888_v23, %v4374_v41 }
 0x2b7   :  { %v1946_v29 = vsel %vm1945_vm1, %v1944_v46, 0  ;;  %v1890_v59 = vadd.s32 %v1889_v40, %v1885_v3  ;;  %v1942_v38 = vor.u32 8388608, %v1941_v13  ;;  %vm1717_vm2 = vcmp.lt.s32.totalorder %v4354_v17, 2 }
 0x2b8   :  { %v1948_v42 = vand.u32 31, %v1946_v29  ;;  %v1805_v24 = vor.u32 4788187, %v1804_v53  ;;  %vm1718_vm3 = vcmp.eq.s32.totalorder %v4354_v17, 0  ;;  %vm1721_vm4 = vcmp.eq.s32.totalorder %v4354_v17, 2 }
 0x2b9   :  { %v1891_v20 = vadd.s32 536870912, %v1890_v59  ;;  %vm1714_vm5 = vweird.f32 %v4147_v31  ;;  %v1808_v21 = vcvt.s32.f32 %v1801_v1  ;;  %v4404_v43 = vand.u32 3, %v1819_v10 }
 0x2ba   :  { %v1949_v15 = vsub.s32 32, %v1948_v42  ;;  %v1806_v2 = vand.u32 2147483647, %v1805_v24  ;;  %v2454_v51 = vand.u32 2147483647, %v4157_v5  ;;  %v4407_v55 = vshrl.u32 %v1946_v29, 5 }
 0x2bb   :  { %v1892_v44 = vshrl.u32 %v1891_v20, 30  ;;  %v4409_v0 = vshll.u32 %v1942_v38, 8  ;;  %v2457_v28 = vand.u32 2139095040, %v4157_v5  ;;  %v1951_v32 = vshll.u32 %v3351_v27, %v1948_v42 }
 0x2bc   :  { %v1809_v47 = vmul.f32 %v1808_v21, %v1806_v2  ;;  %v1952_v57 = vshrl.u32 %v3352_v7, %v1949_v15  ;;  %v1955_v52 = vshrl.u32 %v3353_v9, %v1949_v15  ;;  %v1954_v30 = vshll.u32 %v3352_v7, %v1948_v42 }
 0x2bd   :  { %v1893_v61 = vshll.u32 %v1892_v44, 30  ;;  %v1957_v41 = vshll.u32 %v3353_v9, %v1948_v42  ;;  %v1958_v4 = vshrl.u32 %v3354_v11, %v1949_v15  ;;  %v1961_v37 = vshrl.u32 %v3355_v63, %v1949_v15 }
 0x2be   :  { %v1810_v50 = vxor.u32 2147483648, %v1809_v47  ;;  %v1964_v33 = vshrl.u32 %v3356_v18, %v1949_v15  ;;  %vm1832_vm6 = vcmp.lt.s32.totalorder %v4174_v34, 0  ;;  %v1960_v35 = vshll.u32 %v3354_v11, %v1948_v42 }
 0x2bf   :  { %v3218_v58 = vpop.eup %3217  ;;  %v4421_v26 = vsub.s32 %v1890_v59, %v1893_v61  ;;  %v1963_v56 = vshll.u32 %v3355_v63, %v1948_v42  ;;  %v1953_v46 = vor.u32 %v1952_v57, %v1951_v32  ;;  %v1956_v54 = vor.u32 %v1955_v52, %v1954_v30 }
 0x2c0   :  { %v3220_v48 = vpop.eup %3219  ;;  %v1722_v45 = vxor.u32 2147483648, %v3218_v58  ;;  %v1811_v13 = vsel %vm1728_vm9, %v1810_v50, %v1809_v47  ;;  %v1959_v3 = vor.u32 %v1958_v4, %v1957_v41  ;;  %v1962_v53 = vor.u32 %v1961_v37, %v1960_v35 }
 0x2c1   :  { %v1719_v62 = vxor.u32 2147483648, %v3220_v48  ;;  %v1814_v14 = vsel %vm4350_vm10, %v4155_v22, %v1811_v13  ;;  %v1896_v10 = vsub.s32 0, %v4421_v26  ;;  %v1965_v40 = vor.u32 %v1964_v33, %v1963_v56 }
 0x2c2   :  { %v1723_v23 = vsel %vm1721_vm4, %v1722_v45, %v3220_v48  ;;  %3221 = vcosq.f32 %v1814_v14  ;;  %vm4441_vm7 = vcmp.le.f32.partialorder %v1830_v49, 0.7853982  ;;  %v1950_v38 = vshrl.u32 %v3351_v27, %v1949_v15 }
 0x2c3   :  { %v1720_v12 = vsel %vm1718_vm3, %v3218_v58, %v1719_v62  ;;  %3223 = vsinq.f32 %v1814_v14  ;;  %v3059_v16 = vmin.u32 %v1896_v10, %v4421_v26  ;;  %v1916_v42 = vsub.s32 4, %v1892_v44 }
 0x2c4   :  { %v1724_v1 = vsel %vm1717_vm2, %v1720_v12, %v1723_v23  ;;  %vm1966_vm8 = vcmp.lt.s32.totalorder %v4407_v55, 1  ;;  %vm1967_vm9 = vcmp.lt.s32.totalorder %v4407_v55, 2  ;;  %vm1968_vm10 = vcmp.lt.s32.totalorder %v4407_v55, 3 }
 0x2c5   :  { %v1725_v29 = vsel %vm1714_vm5, nan, %v1724_v1  ;;  %v1898_v31 = vclz %v3059_v16  ;;  %vm1969_vm12 = vcmp.lt.s32.totalorder %v4407_v55, 4  ;;  %v1974_v17 = vsel %vm1966_vm8, %v1953_v46, %v1956_v54 }
 0x2c6   :  { %2874 = vst [vmem:[#allocation8 + $0x20] sm:$0xff] %v1725_v29  ;;  %v1978_v49 = vsel %vm1966_vm8, %v1956_v54, %v1959_v3  ;;  %v1970_v24 = vsel %vm1966_vm8, %v1950_v38, %v1953_v46  ;;  %v1971_v20 = vsel %vm1969_vm12, %v1959_v3, 2102212464  ;;  %v1975_v2 = vsel %vm1969_vm12, %v1962_v53, 920167782 }
 0x2c7   :  { %v1979_v21 = vsel %vm1969_vm12, %v1965_v40, 1326507024  ;;  %v3060_v47 = vadd.s32 4294967294, %v1898_v31  ;;  %v1972_v32 = vsel %vm1968_vm10, %v1956_v54, %v1971_v20  ;;  %v1976_v15 = vsel %vm1968_vm10, %v1959_v3, %v1975_v2 }
 0x2c8   :  { %v1980_v57 = vsel %vm1968_vm10, %v1962_v53, %v1979_v21  ;;  %vm1821_vm11 = vcmp.lt.s32.totalorder %v4404_v43, 2  ;;  %v1917_v52 = vsel %vm1832_vm6, %v1916_v42, %v1892_v44  ;;  %v1977_v58 = vsel %vm1967_vm9, %v1974_v17, %v1976_v15 }
 0x2c9   :  { %v1981_v61 = vsel %vm1967_vm9, %v1978_v49, %v1980_v57  ;;  %v2458_v30 = vshrl.u32 %v2457_v28, 23  ;;  %vm3061_vm13 = vcmp.lt.s32.totalorder %v3060_v47, 0  ;;  %v1973_v41 = vsel %vm1967_vm9, %v1970_v24, %v1972_v32 }
 0x2ca   :  { %v4461_v4 = vmul.u32.u64.low %v4409_v0, %v1981_v61  ;;  %v4462_v48 = vmul.u32.u64.high %v4409_v0, %v1981_v61, %v4461_v4  ;;  %v1901_v45 = vsel %vm3061_vm13, 0, %v3060_v47  ;;  %vm1822_vm14 = vcmp.eq.s32.totalorder %v4404_v43, 0 }
 0x2cb   :  { %v4465_v50 = vmul.u32.u64.low %v4409_v0, %v1977_v58  ;;  %v4466_v37 = vmul.u32.u64.high %v4409_v0, %v1977_v58, %v4465_v50  ;;  %v3082_v44 = vadd.s32 4294967169, %v2458_v30  ;;  %v1886_v28 = vadd.s32 %v4373_v39, %v4386_v60 }
 0x2cc   :  { %v1902_v33 = vsub.s32 32, %v1901_v45  ;;  %v1906_v62 = vsub.s32 4294967266, %v1901_v45  ;;  %v3222_v55 = vpop.eup %3221  ;;  %vm1825_vm15 = vcmp.eq.s32.totalorder %v4404_v43, 2  ;;  %v1919_v35 = vsel %vm4441_vm7, 0, %v1917_v52 }
 0x2cd   :  { %v1989_v56 = vmul.u32 %v4409_v0, %v1973_v41  ;;  %v2464_v23 = vadd.s32 1, %v3082_v44  ;;  %v3224_v13 = vpop.eup %3223  ;;  %v1826_v46 = vxor.u32 2147483648, %v3222_v55  ;;  %v1903_v54 = vshll.u32 %v4421_v26, %v1901_v45 }
 0x2ce   :  { %v1904_v12 = vshrl.u32 %v1886_v28, %v1902_v33  ;;  %v1907_v14 = vadd.s32 127, %v1906_v62  ;;  %v1823_v10 = vxor.u32 2147483648, %v3224_v13  ;;  %vm1991_vm0 = vc.u32 %v4462_v48, %v4465_v50 }
 0x2cf   :  { %v1992_v39 = vadd.s32 1, %v4466_v37  ;;  %vm2465_vm1 = vcmp.gt.s32.totalorder %v2464_v23, 0  ;;  %v1827_v60 = vsel %vm1825_vm15, %v1826_v46, %v3224_v13  ;;  %v1923_v40 = vadd.s32 3, %v1919_v35 }
 0x2d0   :  { %v1905_v3 = vor.u32 %v1904_v12, %v1903_v54  ;;  %v1908_v1 = vshll.u32 %v1907_v14, 23  ;;  %v2466_v53 = vsel %vm2465_vm1, %v2464_v23, 0  ;;  %v1824_v0 = vsel %vm1822_vm14, %v3222_v55, %v1823_v10 }
 0x2d1   :  { %v1993_v29 = vsel %vm1991_vm0, %v1992_v39, %v4466_v37  ;;  %v2468_v26 = vand.u32 31, %v2466_v53  ;;  %vm1818_vm2 = vweird.f32 %v4155_v22  ;;  %v1828_v16 = vsel %vm1821_vm11, %v1824_v0, %v1827_v60 }
 0x2d2   :  { %v1909_v38 = vor.u32 4788187, %v1908_v1  ;;  %v1994_v42 = vadd.s32 %v1993_v29, %v1989_v56  ;;  %v1829_v31 = vsel %vm1818_vm2, nan, %v1828_v16  ;;  %v1912_v24 = vcvt.s32.f32 %v1905_v3 }
 0x2d3   :  { %v2469_v17 = vsub.s32 32, %v2468_v26  ;;  %2875 = vst [vmem:[#allocation8 + $0x28] sm:$0xff] %v1829_v31  ;;  %v4486_v2 = vand.u32 3, %v1923_v40  ;;  %v2461_v21 = vand.u32 8388607, %v2454_v51  ;;  %v2471_v52 = vshll.u32 %v3351_v27, %v2468_v26 }
 0x2d4   :  { %v1910_v49 = vand.u32 2147483647, %v1909_v38  ;;  %v1995_v20 = vadd.s32 536870912, %v1994_v42  ;;  %v2474_v58 = vshll.u32 %v3352_v7, %v2468_v26  ;;  %v2480_v61 = vshll.u32 %v3354_v11, %v2468_v26 }
 0x2d5   :  { %v2472_v47 = vshrl.u32 %v3352_v7, %v2469_v17  ;;  %v2475_v22 = vshrl.u32 %v3353_v9, %v2469_v17  ;;  %v2478_v15 = vshrl.u32 %v3354_v11, %v2469_v17  ;;  %v2481_v57 = vshrl.u32 %v3355_v63, %v2469_v17 }
 0x2d6   :  { %v1913_v32 = vmul.f32 %v1912_v24, %v1910_v49  ;;  %v4492_v43 = vshrl.u32 %v1995_v20, 30  ;;  %v2484_v30 = vshrl.u32 %v3356_v18, %v2469_v17  ;;  %v2467_v45 = vshrl.u32 %v2466_v53, 5 }
 0x2d7   :  { %v2477_v37 = vshll.u32 %v3353_v9, %v2468_v26  ;;  %v2473_v44 = vor.u32 %v2472_v47, %v2471_v52  ;;  %v2476_v28 = vor.u32 %v2475_v22, %v2474_v58  ;;  %v2482_v33 = vor.u32 %v2481_v57, %v2480_v61 }
 0x2d8   :  { %v1914_v41 = vxor.u32 2147483648, %v1913_v32  ;;  %v1997_v4 = vshll.u32 %v4492_v43, 30  ;;  %v2483_v62 = vshll.u32 %v3355_v63, %v2468_v26  ;;  %v2462_v56 = vor.u32 8388608, %v2461_v21 }
 0x2d9   :  { %v2479_v23 = vor.u32 %v2478_v15, %v2477_v37  ;;  %v2470_v46 = vshrl.u32 %v3351_v27, %v2469_v17  ;;  %v2561_v12 = vand.u32 2139095040, %v4159_v36  ;;  %vm2486_vm3 = vcmp.lt.s32.totalorder %v2467_v45, 1 }
 0x2da   :  { %v1915_v55 = vsel %vm1832_vm6, %v1914_v41, %v1913_v32  ;;  %v4505_v35 = vsub.s32 %v1994_v42, %v1997_v4  ;;  %v2485_v54 = vor.u32 %v2484_v30, %v2483_v62  ;;  %vm2489_vm4 = vcmp.lt.s32.totalorder %v2467_v45, 4 }
 0x2db   :  { %v1918_v13 = vsel %vm4441_vm7, %v4174_v34, %v1915_v55  ;;  %vm2488_vm5 = vcmp.lt.s32.totalorder %v2467_v45, 3  ;;  %v2494_v10 = vsel %vm2486_vm3, %v2473_v44, %v2476_v28  ;;  %v2495_v39 = vsel %vm2489_vm4, %v2482_v33, 920167782 }
 0x2dc   :  { %3225 = vcosq.f32 %v1918_v13  ;;  %v2000_v14 = vsub.s32 0, %v4505_v35  ;;  %vm2487_vm6 = vcmp.lt.s32.totalorder %v2467_v45, 2  ;;  %v2491_v59 = vsel %vm2489_vm4, %v2479_v23, 2102212464 }
 0x2dd   :  { %3227 = vsinq.f32 %v1918_v13  ;;  %v2496_v3 = vsel %vm2488_vm5, %v2479_v23, %v2495_v39  ;;  %v2498_v53 = vsel %vm2486_vm3, %v2476_v28, %v2479_v23  ;;  %v2499_v0 = vsel %vm2489_vm4, %v2485_v54, 1326507024 }
 0x2de   :  { %v3063_v60 = vmin.u32 %v2000_v14, %v4505_v35  ;;  %v2497_v1 = vsel %vm2487_vm6, %v2494_v10, %v2496_v3  ;;  %v2502_v40 = vshll.u32 %v2462_v56, 8  ;;  %vm1936_vm7 = vcmp.lt.s32.totalorder %v4308_v25, 0 }
 0x2df   :  { %v2490_v26 = vsel %vm2486_vm3, %v2470_v46, %v2473_v44  ;;  %v2492_v16 = vsel %vm2488_vm5, %v2476_v28, %v2491_v59  ;;  %v2500_v38 = vsel %vm2488_vm5, %v2482_v33, %v2499_v0  ;;  %v2020_v49 = vsub.s32 4, %v4492_v43 }
 0x2e0   :  { %v2002_v29 = vclz %v3063_v60  ;;  %v4519_v42 = vmul.u32.u64.low %v2502_v40, %v2497_v1  ;;  %v4520_v31 = vmul.u32.u64.high %v2502_v40, %v2497_v1, %v4519_v42  ;;  %v2501_v24 = vsel %vm2487_vm6, %v2498_v53, %v2500_v38 }
 0x2e1   :  { %v2562_v20 = vshrl.u32 %v2561_v12, 23  ;;  %vm1922_vm8 = vweird.f32 %v4174_v34  ;;  %vm1925_vm9 = vcmp.lt.s32.totalorder %v4486_v2, 2  ;;  %vm1926_vm10 = vcmp.eq.s32.totalorder %v4486_v2, 0 }
 0x2e2   :  { %v3064_v17 = vadd.s32 4294967294, %v2002_v29  ;;  %v4528_v21 = vmul.u32.u64.low %v2502_v40, %v2501_v24  ;;  %v4529_v47 = vmul.u32.u64.high %v2502_v40, %v2501_v24, %v4528_v21  ;;  %vm1929_vm12 = vcmp.eq.s32.totalorder %v4486_v2, 2 }
 0x2e3   :  { %v2493_v22 = vsel %vm2487_vm6, %v2490_v26, %v2492_v16  ;;  %v3086_v32 = vadd.s32 4294967169, %v2562_v20  ;;  %v1990_v15 = vadd.s32 %v4465_v50, %v4462_v48  ;;  %v2512_v52 = vadd.s32 1, %v4520_v31 }
 0x2e4   :  { %vm3065_vm11 = vcmp.lt.s32.totalorder %v3064_v17, 0  ;;  %v2558_v58 = vand.u32 2147483647, %v4159_v36  ;;  %v2021_v4 = vsel %vm1936_vm7, %v2020_v49, %v4492_v43  ;;  %v2509_v33 = vmul.u32 %v2502_v40, %v2493_v22 }
 0x2e5   :  { %v2005_v57 = vsel %vm3065_vm11, 0, %v3064_v17  ;;  %v2568_v37 = vadd.s32 1, %v3086_v32  ;;  %vm2511_vm13 = vc.u32 %v4529_v47, %v4519_v42  ;;  %v2665_v39 = vand.u32 2139095040, %v4161_v19 }
 0x2e6   :  { %v3226_v61 = vpop.eup %3225  ;;  %v2006_v30 = vsub.s32 32, %v2005_v57  ;;  %v2010_v41 = vsub.s32 4294967266, %v2005_v57  ;;  %v2007_v28 = vshll.u32 %v4505_v35, %v2005_v57  ;;  %v2513_v55 = vsel %vm2511_vm13, %v2512_v52, %v4520_v31 }
 0x2e7   :  { %v3228_v44 = vpop.eup %3227  ;;  %v1930_v45 = vxor.u32 2147483648, %v3226_v61  ;;  %v2514_v23 = vadd.s32 %v2513_v55, %v2509_v33  ;;  %v2565_v43 = vand.u32 8388607, %v2558_v58  ;;  %vm2569_vm14 = vcmp.gt.s32.totalorder %v2568_v37, 0 }
 0x2e8   :  { %v1927_v48 = vxor.u32 2147483648, %v3228_v44  ;;  %v2008_v50 = vshrl.u32 %v1990_v15, %v2006_v30  ;;  %v2011_v62 = vadd.s32 127, %v2010_v41  ;;  %v2570_v54 = vsel %vm2569_vm14, %v2568_v37, 0 }
 0x2e9   :  { %v1931_v56 = vsel %vm1929_vm12, %v1930_v45, %v3228_v44  ;;  %v2515_v14 = vadd.s32 536870912, %v2514_v23  ;;  %v2572_v10 = vand.u32 31, %v2570_v54  ;;  %vm4557_vm15 = vcmp.le.f32.partialorder %v1934_v6, 0.7853982 }
 0x2ea   :  { %v1928_v35 = vsel %vm1926_vm10, %v3226_v61, %v1927_v48  ;;  %v2009_v13 = vor.u32 %v2008_v50, %v2007_v28  ;;  %v2012_v46 = vshll.u32 %v2011_v62, 23  ;;  %v2023_v40 = vsel %vm4557_vm15, 0, %v2021_v4 }
 0x2eb   :  { %v1932_v12 = vsel %vm1925_vm9, %v1928_v35, %v1931_v56  ;;  %v4561_v1 = vshrl.u32 %v2515_v14, 30  ;;  %v2573_v53 = vsub.s32 32, %v2572_v10  ;;  %v2566_v29 = vor.u32 8388608, %v2565_v43 }
 0x2ec   :  { %v1933_v60 = vsel %vm1922_vm8, nan, %v1932_v12  ;;  %v2013_v59 = vor.u32 4788187, %v2012_v46  ;;  %v2016_v0 = vcvt.s32.f32 %v2009_v13  ;;  %v2575_v26 = vshll.u32 %v3351_v27, %v2572_v10 }
 0x2ed   :  { %2876 = vst [vmem:[#allocation8 + $0x30] sm:$0xff] %v1933_v60  ;;  %v2517_v34 = vshll.u32 %v4561_v1, 30  ;;  %v2576_v16 = vshrl.u32 %v3352_v7, %v2573_v53  ;;  %v2666_v6 = vshrl.u32 %v2665_v39, 23  ;;  %v2579_v31 = vshrl.u32 %v3353_v9, %v2573_v53 }
 0x2ee   :  { %v2014_v2 = vand.u32 2147483647, %v2013_v59  ;;  %v2582_v17 = vshrl.u32 %v3354_v11, %v2573_v53  ;;  %v2585_v49 = vshrl.u32 %v3355_v63, %v2573_v53  ;;  %v2578_v20 = vshll.u32 %v3352_v7, %v2572_v10 }
 0x2ef   :  { %v4571_v24 = vsub.s32 %v2514_v23, %v2517_v34  ;;  %v2581_v21 = vshll.u32 %v3353_v9, %v2572_v10  ;;  %v2588_v22 = vshrl.u32 %v3356_v18, %v2573_v53  ;;  %v2571_v15 = vshrl.u32 %v2570_v54, 5 }
 0x2f0   :  { %v2017_v38 = vmul.f32 %v2016_v0, %v2014_v2  ;;  %v2584_v57 = vshll.u32 %v3354_v11, %v2572_v10  ;;  %v2587_v52 = vshll.u32 %v3355_v63, %v2572_v10  ;;  %v2577_v30 = vor.u32 %v2576_v16, %v2575_v26 }
 0x2f1   :  { %v2520_v61 = vsub.s32 0, %v4571_v24  ;;  %v2580_v41 = vor.u32 %v2579_v31, %v2578_v20  ;;  %v2583_v4 = vor.u32 %v2582_v17, %v2581_v21  ;;  %v2027_v44 = vadd.s32 3, %v2023_v40 }
 0x2f2   :  { %v2018_v32 = vxor.u32 2147483648, %v2017_v38  ;;  %v2586_v45 = vor.u32 %v2585_v49, %v2584_v57  ;;  %v2606_v28 = vshll.u32 %v2566_v29, 8  ;;  %v2589_v50 = vor.u32 %v2588_v22, %v2587_v52 }
 0x2f3   :  { %v3083_v48 = vmin.u32 %v2520_v61, %v4571_v24  ;;  %v3090_v62 = vadd.s32 4294967169, %v2666_v6  ;;  %v2540_v55 = vsub.s32 4, %v4561_v1  ;;  %vm2590_vm0 = vcmp.lt.s32.totalorder %v2571_v15, 1 }
 0x2f4   :  { %v2019_v37 = vsel %vm1936_vm7, %v2018_v32, %v2017_v38  ;;  %vm2593_vm1 = vcmp.lt.s32.totalorder %v2571_v15, 4  ;;  %vm2456_vm2 = vcmp.lt.s32.totalorder %v4157_v5, 0  ;;  %v2598_v43 = vsel %vm2590_vm0, %v2577_v30, %v2580_v41 }
 0x2f5   :  { %v2022_v33 = vsel %vm4557_vm15, %v4308_v25, %v2019_v37  ;;  %v2522_v56 = vclz %v3083_v48  ;;  %v2595_v23 = vsel %vm2593_vm1, %v2583_v4, 2102212464  ;;  %v2574_v35 = vshrl.u32 %v3351_v27, %v2573_v53 }
 0x2f6   :  { %3229 = vcosq.f32 %v2022_v33  ;;  %vm2592_vm3 = vcmp.lt.s32.totalorder %v2571_v15, 3  ;;  %v2599_v13 = vsel %vm2593_vm1, %v2586_v45, 920167782  ;;  %v2602_v46 = vsel %vm2590_vm0, %v2580_v41, %v2583_v4 }
 0x2f7   :  { %3231 = vsinq.f32 %v2022_v33  ;;  %v3084_v54 = vadd.s32 4294967294, %v2522_v56  ;;  %vm2591_vm4 = vcmp.lt.s32.totalorder %v2571_v15, 2  ;;  %v2600_v12 = vsel %vm2592_vm3, %v2583_v4, %v2599_v13 }
 0x2f8   :  { %v2603_v14 = vsel %vm2593_vm1, %v2589_v50, 1326507024  ;;  %v2594_v10 = vsel %vm2590_vm0, %v2574_v35, %v2577_v30  ;;  %v2596_v39 = vsel %vm2592_vm3, %v2580_v41, %v2595_v23  ;;  %v2601_v60 = vsel %vm2591_vm4, %v2598_v43, %v2600_v12 }
 0x2f9   :  { %v2604_v59 = vsel %vm2592_vm3, %v2586_v45, %v2603_v14  ;;  %vm4591_vm5 = vcmp.le.f32.partialorder %v2454_v51, 0.7853982  ;;  %vm3085_vm6 = vcmp.lt.s32.totalorder %v3084_v54, 0  ;;  %v2672_v26 = vadd.s32 1, %v3090_v62 }
 0x2fa   :  { %v2605_v53 = vsel %vm2591_vm4, %v2602_v46, %v2604_v59  ;;  %v4596_v2 = vmul.u32.u64.low %v2606_v28, %v2601_v60  ;;  %v4597_v0 = vmul.u32.u64.high %v2606_v28, %v2601_v60, %v4596_v2  ;;  %v2525_v40 = vsel %vm3085_vm6, 0, %v3084_v54 }
 0x2fb   :  { %v4600_v29 = vmul.u32.u64.low %v2606_v28, %v2605_v53  ;;  %v4601_v34 = vmul.u32.u64.high %v2606_v28, %v2605_v53, %v4600_v29  ;;  %vm2026_vm7 = vweird.f32 %v4308_v25  ;;  %v2510_v51 = vadd.s32 %v4519_v42, %v4529_v47 }
 0x2fc   :  { %v2526_v16 = vsub.s32 32, %v2525_v40  ;;  %v2530_v6 = vsub.s32 4294967266, %v2525_v40  ;;  %v2597_v38 = vsel %vm2591_vm4, %v2594_v10, %v2596_v39  ;;  %v2028_v31 = vand.u32 3, %v2027_v44 }
 0x2fd   :  { %v2527_v17 = vshll.u32 %v4571_v24, %v2525_v40  ;;  %v2662_v49 = vand.u32 2147483647, %v4161_v19  ;;  %vm2673_vm8 = vcmp.gt.s32.totalorder %v2672_v26, 0  ;;  %v2616_v22 = vadd.s32 1, %v4597_v0 }
 0x2fe   :  { %v2528_v20 = vshrl.u32 %v2510_v51, %v2526_v16  ;;  %v2531_v21 = vadd.s32 127, %v2530_v6  ;;  %v2674_v32 = vsel %vm2673_vm8, %v2672_v26, 0  ;;  %v2541_v42 = vsel %vm2456_vm2, %v2540_v55, %v4561_v1 }
 0x2ff   :  { %v2613_v47 = vmul.u32 %v2606_v28, %v2597_v38  ;;  %vm2615_vm9 = vc.u32 %v4601_v34, %v4596_v2  ;;  %v2676_v15 = vand.u32 31, %v2674_v32  ;;  %vm2033_vm10 = vcmp.eq.s32.totalorder %v2028_v31, 2 }
 0x300   :  { %v3230_v57 = vpop.eup %3229  ;;  %v2529_v61 = vor.u32 %v2528_v20, %v2527_v17  ;;  %v2532_v30 = vshll.u32 %v2531_v21, 23  ;;  %v2617_v41 = vsel %vm2615_vm9, %v2616_v22, %v4597_v0  ;;  %vm2029_vm12 = vcmp.lt.s32.totalorder %v2028_v31, 2 }
 0x301   :  { %v3232_v52 = vpop.eup %3231  ;;  %v2034_v24 = vxor.u32 2147483648, %v3230_v57  ;;  %v2618_v37 = vadd.s32 %v2617_v41, %v2613_v47  ;;  %v2677_v44 = vsub.s32 32, %v2676_v15  ;;  %vm2030_vm11 = vcmp.eq.s32.totalorder %v2028_v31, 0 }
 0x302   :  { %v2031_v4 = vxor.u32 2147483648, %v3232_v52  ;;  %v2533_v33 = vor.u32 4788187, %v2532_v30  ;;  %v2543_v28 = vsel %vm4591_vm5, 0, %v2541_v42  ;;  %v2669_v50 = vand.u32 8388607, %v2662_v49 }
 0x303   :  { %v2035_v45 = vsel %vm2033_vm10, %v2034_v24, %v3232_v52  ;;  %v2619_v48 = vadd.s32 536870912, %v2618_v37  ;;  %v2536_v56 = vcvt.s32.f32 %v2529_v61  ;;  %v2680_v23 = vshrl.u32 %v3352_v7, %v2677_v44 }
 0x304   :  { %v2032_v1 = vsel %vm2030_vm11, %v3230_v57, %v2031_v4  ;;  %v2534_v55 = vand.u32 2147483647, %v2533_v33  ;;  %v2683_v13 = vshrl.u32 %v3353_v9, %v2677_v44  ;;  %v2686_v46 = vshrl.u32 %v3354_v11, %v2677_v44 }
 0x305   :  { %v2036_v62 = vsel %vm2029_vm12, %v2032_v1, %v2035_v45  ;;  %v4623_v35 = vshrl.u32 %v2619_v48, 30  ;;  %v2675_v12 = vshrl.u32 %v2674_v32, 5  ;;  %v2688_v14 = vshll.u32 %v3354_v11, %v2676_v15 }
 0x306   :  { %v2037_v43 = vsel %vm2026_vm7, nan, %v2036_v62  ;;  %v2537_v54 = vmul.f32 %v2536_v56, %v2534_v55  ;;  %v2689_v10 = vshrl.u32 %v3355_v63, %v2677_v44  ;;  %v2679_v60 = vshll.u32 %v3351_v27, %v2676_v15 }
 0x307   :  { %2877 = vst [vmem:[#allocation8 + $0x38] sm:$0xff] %v2037_v43  ;;  %v2621_v39 = vshll.u32 %v4623_v35, 30  ;;  %v2682_v25 = vshll.u32 %v3352_v7, %v2676_v15  ;;  %v2685_v59 = vshll.u32 %v3353_v9, %v2676_v15  ;;  %v2691_v40 = vshll.u32 %v3355_v63, %v2676_v15 }
 0x308   :  { %v2538_v53 = vxor.u32 2147483648, %v2537_v54  ;;  %v2690_v0 = vor.u32 %v2689_v10, %v2688_v14  ;;  %v2692_v29 = vshrl.u32 %v3356_v18, %v2677_v44  ;;  %v2681_v51 = vor.u32 %v2680_v23, %v2679_v60 }
 0x309   :  { %v4635_v26 = vsub.s32 %v2618_v37, %v2621_v39  ;;  %v2684_v16 = vor.u32 %v2683_v13, %v2682_v25  ;;  %v2687_v6 = vor.u32 %v2686_v46, %v2685_v59  ;;  %v2547_v31 = vadd.s32 3, %v2543_v28 }
 0x30a   :  { %v2539_v38 = vsel %vm2456_vm2, %v2538_v53, %v2537_v54  ;;  %v2693_v17 = vor.u32 %v2692_v29, %v2691_v40  ;;  %v2670_v22 = vor.u32 8388608, %v2669_v50  ;;  %vm2697_vm13 = vcmp.lt.s32.totalorder %v2675_v12, 4 }
 0x30b   :  { %v2542_v20 = vsel %vm4591_vm5, %v4157_v5, %v2539_v38  ;;  %v2624_v21 = vsub.s32 0, %v4635_v26  ;;  %vm2694_vm14 = vcmp.lt.s32.totalorder %v2675_v12, 1  ;;  %vm2696_vm15 = vcmp.lt.s32.totalorder %v2675_v12, 3 }
 0x30c   :  { %3233 = vcosq.f32 %v2542_v20  ;;  %v2703_v32 = vsel %vm2697_vm13, %v2690_v0, 920167782  ;;  %v2699_v42 = vsel %vm2697_vm13, %v2687_v6, 2102212464  ;;  %v2702_v47 = vsel %vm2694_vm14, %v2681_v51, %v2684_v16 }
 0x30d   :  { %3235 = vsinq.f32 %v2542_v20  ;;  %v3087_v57 = vmin.u32 %v2624_v21, %v4635_v26  ;;  %v2678_v15 = vshrl.u32 %v3351_v27, %v2677_v44  ;;  %v2704_v52 = vsel %vm2696_vm15, %v2687_v6, %v2703_v32 }
 0x30e   :  { %v2706_v24 = vsel %vm2694_vm14, %v2684_v16, %v2687_v6  ;;  %v2707_v3 = vsel %vm2697_vm13, %v2693_v17, 1326507024  ;;  %v2548_v61 = vand.u32 3, %v2547_v31  ;;  %vm2695_vm0 = vcmp.lt.s32.totalorder %v2675_v12, 2 }
 0x30f   :  { %v2626_v30 = vclz %v3087_v57  ;;  %v2710_v41 = vshll.u32 %v2670_v22, 8  ;;  %v2698_v4 = vsel %vm2694_vm14, %v2678_v15, %v2681_v51  ;;  %v2700_v37 = vsel %vm2696_vm15, %v2684_v16, %v2699_v42 }
 0x310   :  { %v2705_v45 = vsel %vm2695_vm0, %v2702_v47, %v2704_v52  ;;  %v2708_v33 = vsel %vm2696_vm15, %v2690_v0, %v2707_v3  ;;  %v2769_v55 = vand.u32 2139095040, %v4164_v8  ;;  %vm2546_vm1 = vweird.f32 %v4157_v5 }
 0x311   :  { %v3088_v1 = vadd.s32 4294967294, %v2626_v30  ;;  %v2709_v28 = vsel %vm2695_vm0, %v2706_v24, %v2708_v33  ;;  %v4648_v48 = vmul.u32.u64.low %v2710_v41, %v2705_v45  ;;  %v4649_v50 = vmul.u32.u64.high %v2710_v41, %v2705_v45, %v4648_v48 }
 0x312   :  { %v4652_v44 = vmul.u32.u64.low %v2710_v41, %v2709_v28  ;;  %v4653_v62 = vmul.u32.u64.high %v2710_v41, %v2709_v28, %v4652_v44  ;;  %vm2560_vm2 = vcmp.lt.s32.totalorder %v4159_v36, 0  ;;  %v2701_v56 = vsel %vm2695_vm0, %v2698_v4, %v2700_v37 }
 0x313   :  { %vm3089_vm3 = vcmp.lt.s32.totalorder %v3088_v1, 0  ;;  %vm2549_vm4 = vcmp.lt.s32.totalorder %v2548_v61, 2  ;;  %v2614_v23 = vadd.s32 %v4596_v2, %v4601_v34  ;;  %v2770_v13 = vshrl.u32 %v2769_v55, 23 }
 0x314   :  { %v2629_v43 = vsel %vm3089_vm3, 0, %v3088_v1  ;;  %v2644_v12 = vsub.s32 4, %v4623_v35  ;;  %v2720_v14 = vadd.s32 1, %v4649_v50  ;;  %v2717_v60 = vmul.u32 %v2710_v41, %v2701_v56 }
 0x315   :  { %v2630_v46 = vsub.s32 32, %v2629_v43  ;;  %v2634_v54 = vsub.s32 4294967266, %v2629_v43  ;;  %v2631_v39 = vshll.u32 %v4635_v26, %v2629_v43  ;;  %vm2719_vm5 = vc.u32 %v4653_v62, %v4648_v48 }
 0x316   :  { %v3234_v10 = vpop.eup %3233  ;;  %v3094_v25 = vadd.s32 4294967169, %v2770_v13  ;;  %v2721_v34 = vsel %vm2719_vm5, %v2720_v14, %v4649_v50  ;;  %vm2553_vm6 = vcmp.eq.s32.totalorder %v2548_v61, 2  ;;  %vm2550_vm7 = vcmp.eq.s32.totalorder %v2548_v61, 0 }
 0x317   :  { %v3236_v59 = vpop.eup %3235  ;;  %v2554_v53 = vxor.u32 2147483648, %v3234_v10  ;;  %v2632_v0 = vshrl.u32 %v2614_v23, %v2630_v46  ;;  %v2635_v2 = vadd.s32 127, %v2634_v54  ;;  %v2722_v29 = vadd.s32 %v2721_v34, %v2717_v60 }
 0x318   :  { %v2551_v40 = vxor.u32 2147483648, %v3236_v59  ;;  %v2776_v51 = vadd.s32 1, %v3094_v25  ;;  %v2645_v31 = vsel %vm2560_vm2, %v2644_v12, %v4623_v35  ;;  %vm4672_vm9 = vcmp.le.f32.partialorder %v2558_v58, 0.7853982 }
 0x319   :  { %v2555_v16 = vsel %vm2553_vm6, %v2554_v53, %v3236_v59  ;;  %v2633_v6 = vor.u32 %v2632_v0, %v2631_v39  ;;  %v2636_v38 = vshll.u32 %v2635_v2, 23  ;;  %v2723_v17 = vadd.s32 536870912, %v2722_v29 }
 0x31a   :  { %v2552_v26 = vsel %vm2550_vm7, %v3234_v10, %v2551_v40  ;;  %vm2777_vm8 = vcmp.gt.s32.totalorder %v2776_v51, 0  ;;  %v2766_v47 = vand.u32 2147483647, %v4164_v8  ;;  %v2647_v24 = vsel %vm4672_vm9, 0, %v2645_v31 }
 0x31b   :  { %v2556_v20 = vsel %vm2549_vm4, %v2552_v26, %v2555_v16  ;;  %v2637_v22 = vor.u32 4788187, %v2636_v38  ;;  %v2778_v32 = vsel %vm2777_vm8, %v2776_v51, 0  ;;  %v4678_v42 = vshrl.u32 %v2723_v17, 30 }
 0x31c   :  { %v2557_v57 = vsel %vm2546_vm1, nan, %v2556_v20  ;;  %v2780_v35 = vand.u32 31, %v2778_v32  ;;  %v2640_v52 = vcvt.s32.f32 %v2633_v6  ;;  %v2651_v30 = vadd.s32 3, %v2647_v24 }
 0x31d   :  { %v2638_v15 = vand.u32 2147483647, %v2637_v22  ;;  %2882 = vst [vmem:[#allocation8 + $0x60] sm:$0xff] %v2557_v57  ;;  %v2725_v58 = vshll.u32 %v4678_v42, 30  ;;  %v2773_v5 = vand.u32 8388607, %v2766_v47 }
 0x31e   :  { %v2781_v3 = vsub.s32 32, %v2780_v35  ;;  %v2783_v45 = vshll.u32 %v3351_v27, %v2780_v35  ;;  %v2786_v50 = vshll.u32 %v3352_v7, %v2780_v35  ;;  %v2789_v44 = vshll.u32 %v3353_v9, %v2780_v35 }
 0x31f   :  { %v2641_v61 = vmul.f32 %v2640_v52, %v2638_v15  ;;  %v4684_v41 = vsub.s32 %v2722_v29, %v2725_v58  ;;  %v2779_v23 = vshrl.u32 %v2778_v32, 5  ;;  %v2792_v13 = vshll.u32 %v3354_v11, %v2780_v35 }
 0x320   :  { %v2784_v4 = vshrl.u32 %v3352_v7, %v2781_v3  ;;  %v2787_v33 = vshrl.u32 %v3353_v9, %v2781_v3  ;;  %v2790_v1 = vshrl.u32 %v3354_v11, %v2781_v3  ;;  %v2793_v55 = vshrl.u32 %v3355_v63, %v2781_v3 }
 0x321   :  { %v2642_v37 = vxor.u32 2147483648, %v2641_v61  ;;  %v2728_v28 = vsub.s32 0, %v4684_v41  ;;  %v2795_v9 = vshll.u32 %v3355_v63, %v2780_v35  ;;  %v2796_v10 = vshrl.u32 %v3356_v18, %v2781_v3 }
 0x322   :  { %v2785_v43 = vor.u32 %v2784_v4, %v2783_v45  ;;  %v2788_v12 = vor.u32 %v2787_v33, %v2786_v50  ;;  %v2791_v14 = vor.u32 %v2790_v1, %v2789_v44  ;;  %v2794_v7 = vor.u32 %v2793_v55, %v2792_v13 }
 0x323   :  { %v2643_v56 = vsel %vm2560_vm2, %v2642_v37, %v2641_v61  ;;  %v3091_v54 = vmin.u32 %v2728_v28, %v4684_v41  ;;  %v2652_v39 = vand.u32 3, %v2651_v30  ;;  %v2774_v25 = vor.u32 8388608, %v2773_v5 }
 0x324   :  { %v2646_v46 = vsel %vm4672_vm9, %v4159_v36, %v2643_v56  ;;  %v2718_v11 = vadd.s32 %v4648_v48, %v4653_v62  ;;  %v2782_v59 = vshrl.u32 %v3351_v27, %v2781_v3  ;;  %v2797_v53 = vor.u32 %v2796_v10, %v2795_v9 }
 0x325   :  { %3237 = vcosq.f32 %v2646_v46  ;;  %v2730_v60 = vclz %v3091_v54  ;;  %vm2798_vm10 = vcmp.lt.s32.totalorder %v2779_v23, 1  ;;  %vm2800_vm12 = vcmp.lt.s32.totalorder %v2779_v23, 3 }
 0x326   :  { %3239 = vsinq.f32 %v2646_v46  ;;  %vm2801_vm11 = vcmp.lt.s32.totalorder %v2779_v23, 4  ;;  %v2806_v2 = vsel %vm2798_vm10, %v2785_v43, %v2788_v12  ;;  %v2810_v18 = vsel %vm2798_vm10, %v2788_v12, %v2791_v14 }
 0x327   :  { %v3092_v0 = vadd.s32 4294967294, %v2730_v60  ;;  %v2803_v34 = vsel %vm2801_vm11, %v2791_v14, 2102212464  ;;  %v2807_v63 = vsel %vm2801_vm11, %v2794_v7, 920167782  ;;  %vm2799_vm14 = vcmp.lt.s32.totalorder %v2779_v23, 2 }
 0x328   :  { %v2811_v40 = vsel %vm2801_vm11, %v2797_v53, 1326507024  ;;  %v2808_v29 = vsel %vm2800_vm12, %v2791_v14, %v2807_v63  ;;  %v2814_v16 = vshll.u32 %v2774_v25, 8  ;;  %v2802_v26 = vsel %vm2798_vm10, %v2782_v59, %v2785_v43 }
 0x329   :  { %vm3093_vm13 = vcmp.lt.s32.totalorder %v3092_v0, 0  ;;  %v2812_v48 = vsel %vm2800_vm12, %v2794_v7, %v2811_v40  ;;  %v2809_v27 = vsel %vm2799_vm14, %v2806_v2, %v2808_v29  ;;  %v2804_v31 = vsel %vm2800_vm12, %v2788_v12, %v2803_v34 }
 0x32a   :  { %v2733_v62 = vsel %vm3093_vm13, 0, %v3092_v0  ;;  %v2813_v51 = vsel %vm2799_vm14, %v2810_v18, %v2812_v48  ;;  %v4719_v21 = vmul.u32.u64.low %v2814_v16, %v2809_v27  ;;  %v4720_v22 = vmul.u32.u64.high %v2814_v16, %v2809_v27, %v4719_v21 }
 0x32b   :  { %v2734_v6 = vsub.s32 32, %v2733_v62  ;;  %v2738_v38 = vsub.s32 4294967266, %v2733_v62  ;;  %v4716_v17 = vmul.u32.u64.low %v2814_v16, %v2813_v51  ;;  %v4717_v20 = vmul.u32.u64.high %v2814_v16, %v2813_v51, %v4716_v17 }
 0x32c   :  { %v2735_v32 = vshll.u32 %v4684_v41, %v2733_v62  ;;  %v2805_v52 = vsel %vm2799_vm14, %v2802_v26, %v2804_v31  ;;  %vm2657_vm15 = vcmp.eq.s32.totalorder %v2652_v39, 2  ;;  %v2824_v5 = vadd.s32 1, %v4720_v22 }
 0x32d   :  { %v2736_v57 = vshrl.u32 %v2718_v11, %v2734_v6  ;;  %v2739_v35 = vadd.s32 127, %v2738_v38  ;;  %vm2823_vm0 = vc.u32 %v4717_v20, %v4719_v21  ;;  %vm2654_vm1 = vcmp.eq.s32.totalorder %v2652_v39, 0 }
 0x32e   :  { %v2821_v45 = vmul.u32 %v2814_v16, %v2805_v52  ;;  %vm2650_vm2 = vweird.f32 %v4159_v36  ;;  %vm2653_vm3 = vcmp.lt.s32.totalorder %v2652_v39, 2  ;;  %v2825_v33 = vsel %vm2823_vm0, %v2824_v5, %v4720_v22 }
 0x32f   :  { %v3238_v15 = vpop.eup %3237  ;;  %v2737_v3 = vor.u32 %v2736_v57, %v2735_v32  ;;  %v2740_v61 = vshll.u32 %v2739_v35, 23  ;;  %v2748_v56 = vsub.s32 4, %v4678_v42  ;;  %vm2664_vm4 = vcmp.lt.s32.totalorder %v4161_v19, 0 }
 0x330   :  { %v3240_v24 = vpop.eup %3239  ;;  %v2658_v58 = vxor.u32 2147483648, %v3238_v15  ;;  %v2826_v44 = vadd.s32 %v2825_v33, %v2821_v45  ;;  %vm2663_vm5 = vcmp.le.f32.partialorder %v2662_v49, 0.7853982  ;;  %v2822_v34 = vadd.s32 %v4719_v21, %v4717_v20 }
 0x331   :  { %v2655_v30 = vxor.u32 2147483648, %v3240_v24  ;;  %v2741_v37 = vor.u32 4788187, %v2740_v61  ;;  %v2744_v50 = vcvt.s32.f32 %v2737_v3  ;;  %v2749_v36 = vsel %vm2664_vm4, %v2748_v56, %v4678_v42 }
 0x332   :  { %v2659_v4 = vsel %vm2657_vm15, %v2658_v58, %v3240_v24  ;;  %v2827_v43 = vadd.s32 536870912, %v2826_v44  ;;  %v2751_v7 = vsel %vm2663_vm5, 0, %v2749_v36  ;;  %vm2754_vm10 = vweird.f32 %v4161_v19 }
 0x333   :  { %v2656_v41 = vsel %vm2654_vm1, %v3238_v15, %v2655_v30  ;;  %v2742_v28 = vand.u32 2147483647, %v2741_v37  ;;  %v2755_v39 = vadd.s32 3, %v2751_v7  ;;  %vm2768_vm12 = vcmp.lt.s32.totalorder %v4164_v8, 0 }
 0x334   :  { %v2660_v1 = vsel %vm2653_vm3, %v2656_v41, %v2659_v4  ;;  %v2828_v46 = vshrl.u32 %v2827_v43, 30  ;;  %vm2767_vm11 = vcmp.le.f32.partialorder %v2766_v47, 0.7853982  ;;  %vm2858_vm0 = vweird.f32 %v4164_v8 }
 0x335   :  { %v2661_v55 = vsel %vm2650_vm2, nan, %v2660_v1  ;;  %v2745_v23 = vmul.f32 %v2744_v50, %v2742_v28  ;;  %v2756_v11 = vand.u32 3, %v2755_v39 }
 0x336   :  { %2883 = vst [vmem:[#allocation8 + $0x68] sm:$0xff] %v2661_v55  ;;  %v2829_v12 = vshll.u32 %v2828_v46, 30  ;;  %v2852_v21 = vsub.s32 4, %v2828_v46 }
 0x337   :  { %v2746_v13 = vxor.u32 2147483648, %v2745_v23  ;;  %vm2761_vm7 = vcmp.eq.s32.totalorder %v2756_v11, 2  ;;  %vm2757_vm8 = vcmp.lt.s32.totalorder %v2756_v11, 2  ;;  %vm2758_vm9 = vcmp.eq.s32.totalorder %v2756_v11, 0 }
 0x338   :  { %v2830_v9 = vsub.s32 %v2826_v44, %v2829_v12  ;;  %v2853_v57 = vsel %vm2768_vm12, %v2852_v21, %v2828_v46 }
 0x339   :  { %v2747_v54 = vsel %vm2664_vm4, %v2746_v13, %v2745_v23  ;;  %v2855_v35 = vsel %vm2767_vm11, 0, %v2853_v57 }
 0x33a   :  { %v2750_v14 = vsel %vm2663_vm5, %v4161_v19, %v2747_v54  ;;  %v2832_v10 = vsub.s32 0, %v2830_v9  ;;  %v2859_v15 = vadd.s32 3, %v2855_v35 }
 0x33b   :  { %3241 = vcosq.f32 %v2750_v14 }
 0x33c   :  { %3243 = vsinq.f32 %v2750_v14  ;;  %v3095_v60 = vmin.u32 %v2832_v10, %v2830_v9  ;;  %v2860_v52 = vand.u32 3, %v2859_v15 }
 0x33e   :  { %v2834_v25 = vclz %v3095_v60  ;;  %vm2865_vm13 = vcmp.eq.s32.totalorder %v2860_v52, 2  ;;  %vm2862_vm14 = vcmp.eq.s32.totalorder %v2860_v52, 0  ;;  %vm2861_vm15 = vcmp.lt.s32.totalorder %v2860_v52, 2 }
 0x340   :  { %v3096_v59 = vadd.s32 4294967294, %v2834_v25 }
 0x342   :  { %vm3097_vm6 = vcmp.lt.s32.totalorder %v3096_v59, 0 }
 0x343   :  { %v2837_v49 = vsel %vm3097_vm6, 0, %v3096_v59 }
 0x344   :  { %v2838_v63 = vsub.s32 32, %v2837_v49  ;;  %v2842_v18 = vsub.s32 4294967266, %v2837_v49  ;;  %v2839_v48 = vshll.u32 %v2830_v9, %v2837_v49 }
 0x345   :  { %v3242_v53 = vpop.eup %3241 }
 0x346   :  { %v3244_v42 = vpop.eup %3243  ;;  %v2762_v0 = vxor.u32 2147483648, %v3242_v53  ;;  %v2840_v62 = vshrl.u32 %v2822_v34, %v2838_v63  ;;  %v2843_v27 = vadd.s32 127, %v2842_v18 }
 0x347   :  { %v2759_v2 = vxor.u32 2147483648, %v3244_v42 }
 0x348   :  { %v2763_v40 = vsel %vm2761_vm7, %v2762_v0, %v3244_v42  ;;  %v2841_v6 = vor.u32 %v2840_v62, %v2839_v48  ;;  %v2844_v38 = vshll.u32 %v2843_v27, 23 }
 0x349   :  { %v2760_v29 = vsel %vm2758_vm9, %v3242_v53, %v2759_v2 }
 0x34a   :  { %v2764_v51 = vsel %vm2757_vm8, %v2760_v29, %v2763_v40  ;;  %v2845_v26 = vor.u32 4788187, %v2844_v38  ;;  %v2848_v17 = vcvt.s32.f32 %v2841_v6 }
 0x34b   :  { %v2765_v16 = vsel %vm2754_vm10, nan, %v2764_v51 }
 0x34c   :  { %2884 = vst [vmem:[#allocation8 + $0x70] sm:$0xff] %v2765_v16  ;;  %v2846_v31 = vand.u32 2147483647, %v2845_v26 }
 0x34e   :  { %v2849_v20 = vmul.f32 %v2848_v17, %v2846_v31 }
 0x350   :  { %v2850_v22 = vxor.u32 2147483648, %v2849_v20 }
 0x352   :  { %v2851_v32 = vsel %vm2768_vm12, %v2850_v22, %v2849_v20 }
 0x353   :  { %v2854_v19 = vsel %vm2767_vm11, %v4164_v8, %v2851_v32 }
 0x354   :  { %3245 = vcosq.f32 %v2854_v19 }
 0x355   :  { %3247 = vsinq.f32 %v2854_v19 }
 0x35e   :  { %v3246_v24 = vpop.eup %3245 }
 0x35f   :  { %v3248_v58 = vpop.eup %3247  ;;  %v2866_v3 = vxor.u32 2147483648, %v3246_v24 }
 0x360   :  { %v2863_v61 = vxor.u32 2147483648, %v3248_v58 }
 0x361   :  { %v2867_v30 = vsel %vm2865_vm13, %v2866_v3, %v3248_v58 }
 0x362   :  { %v2864_v47 = vsel %vm2862_vm14, %v3246_v24, %v2863_v61 }
 0x363   :  { %v2868_v5 = vsel %vm2861_vm15, %v2864_v47, %v2867_v30 }
 0x364   :  { %v2869_v4 = vsel %vm2858_vm0, nan, %v2868_v5 }
 0x365   :  { %2885 = vst [vmem:[#allocation8 + $0x78] sm:$0xff] %v2869_v4 }
 0x366   :  { %3326 = shalt.err (!%p3323_p0)
}
 0x367   :  { %s3327_s10 = scalar_lea.hbm %s4760_s4, 2048 }
 0x368   :  { %p3328_p1 = scmp.ne.s32.totalorder %s4760_s4, %s3327_s10  ;;  %p3331_p2 = scmp.lt.u32.totalorder %s3327_s10, %s4760_s4 }
 0x36a   :  { %p3333_p3 = pnand %p3331_p2, %p3328_p1 }
 0x36c   :  { %3336 = shalt.err (!%p3333_p3)
}
 0x36d   :  { %2897 = dma.vmem_to_hbm [thread:$0]  %s2892_s6, 2048, %s4760_s4, [#allocation4], %s3344_s25, %s3344_s25, %s3345_s26  }
 0x36e   :  { %3341 = dma.done.wait [#allocation4], 2048  }
 0x36f   :  { %3342 = vsyncadd [#allocation4], 4294965248 }
 0x370   :  { %2901 = vsyncpa [#allocation3], 1 }
 0x371   :  { %2902 = vsyncpa [#allocation6], 1 }
 0x372   :  { %2903 = vsyncpa [#allocation4], 1 }

</bundles_post_ra>
